<compile_context>
chip_gen: v6e
topology: v6e:2x2x1
jax: 0.10.0
libtpu: 0.0.40
codegen_flags: <defaults>
</compile_context>

<pallas_src>
import functools

import jax
import jax.numpy as jnp
from jax import lax
from jax.experimental import pallas as pl
from jax.experimental.pallas import tpu as pltpu


# ----------------------------- Pallas kernel --------------------------------

def _basic_block_kernel(mask_ref, x_ref, w1_ref, b1_ref, w2_ref, b2_ref,
                        o_ref, xcat_ref, slab_ref, *, C, D, H, W, NB):
    """Fused conv1+bn1+relu+conv2+bn2+residual+relu for NB batch elements."""
    DHW = D * H * W
    HW = H * W
    L = NB * DHW

    # Stack the NB batch elements of this grid step along the lane axis:
    # (C, NB*DHW) f32.  This copy doubles as the residual source.
    for b in range(NB):
        xcat_ref[:, b * DHW:(b + 1) * DHW] = x_ref[b].astype(jnp.float32)

    def im2col(v):
        # v: (C, L) f32 -> (27*C, L) bf16 patch slab.
        # Per tap: roll (XLU) -> boundary-mask multiply (f32, v5e-safe) ->
        # bf16 cast -> store.  One live f32 temporary per tap.
        for k in range(27):
            kd, kh, kw = k // 9, (k // 3) % 3, k % 3
            off = (kd - 1) * HW + (kh - 1) * W + (kw - 1)
            shifted = v if off == 0 else pltpu.roll(v, (-off) % L, 1)
            slab_ref[k * C:(k + 1) * C, :] = (
                shifted * mask_ref[k:k + 1, :]).astype(jnp.bfloat16)
        return slab_ref[...]

    # conv1 (BN1 scale folded into w1) + bias + ReLU.
    y = jnp.dot(w1_ref[...], im2col(xcat_ref[...]),
                preferred_element_type=jnp.float32)
    y = jnp.maximum(y + b1_ref[...], 0.0)            # (C, L) f32, stays in VMEM

    # conv2 (BN2 scale folded into w2) + bias + residual add + ReLU.
    z = jnp.dot(w2_ref[...], im2col(y), preferred_element_type=jnp.float32)
    z = jnp.maximum(z + b2_ref[...] + xcat_ref[...], 0.0)
    for b in range(NB):                               # bf16 writeback
        o_ref[b] = z[:, b * DHW:(b + 1) * DHW].astype(jnp.bfloat16)


# ------------------------------ JAX wrapper ----------------------------------

def _tap_mask(D, H, W):
    """(27, D*H*W) 0/1 mask: zero where a 3x3x3 tap reads outside the
    zero-padded volume.  Row k = kd*9 + kh*3 + kw."""
    d = jnp.arange(D)[:, None, None]
    h = jnp.arange(H)[None, :, None]
    w = jnp.arange(W)[None, None, :]
    rows = []
    for kd in range(3):
        for kh in range(3):
            for kw in range(3):
                ok = ((d + kd - 1 >= 0) & (d + kd - 1 < D) &
                      (h + kh - 1 >= 0) & (h + kh - 1 < H) &
                      (w + kw - 1 >= 0) & (w + kw - 1 < W))
                rows.append(ok.reshape(-1))
    return jnp.stack(rows, 0).astype(jnp.float32)     # (27, DHW)


def basic_block_forward(x_ncdhw, params, batch_per_step=None):
    """BasicBlock.forward (stride=1, downsample=None), eval-mode BatchNorm."""
    N, C, D, H, W = x_ncdhw.shape
    DHW = D * H * W
    if batch_per_step is None:
        # Pack batch elements along lanes but keep >= 2 grid steps (v7x has
        # 2 TensorCores; a single-step grid would park one of them).
        batch_per_step = N // 2 if (N >= 2 and N % 2 == 0) else 1
    nb = batch_per_step
    assert N % nb == 0
    G = N // nb
    L = nb * DHW

    x = x_ncdhw.reshape(N, C, DHW).astype(jnp.bfloat16)   # lane axis = DHW
    mask = jnp.tile(_tap_mask(D, H, W), (1, nb))           # (27, nb*DHW)

    kernel = functools.partial(_basic_block_kernel, C=C, D=D, H=H, W=W, NB=nb)
    flops = 2 * 2 * C * (27 * C) * N * DHW                 # two MXU matmuls
    bytes_accessed = (N * C * DHW * 2            # x read (bf16)
                      + N * C * DHW * 2          # out write (bf16)
                      + 2 * C * 27 * C * 2       # fused weights (bf16)
                      + 2 * C * 4                # biases
                      + 27 * L * 4)              # boundary mask
    out = pl.pallas_call(
        kernel,
        out_shape=jax.ShapeDtypeStruct((N, C, DHW), jnp.bfloat16),
        grid=(G,),
        in_specs=[
            # constant index maps -> fetched once, stay resident in VMEM
            pl.BlockSpec((27, L), lambda g: (0, 0)),          # boundary mask
            pl.BlockSpec((nb, C, DHW), lambda g: (g, 0, 0)),  # x (bf16)
            pl.BlockSpec((C, 27 * C), lambda g: (0, 0)),      # w1 * bn1_scale
            pl.BlockSpec((C, 1), lambda g: (0, 0)),           # bn1 bias
            pl.BlockSpec((C, 27 * C), lambda g: (0, 0)),      # w2 * bn2_scale
            pl.BlockSpec((C, 1), lambda g: (0, 0)),           # bn2 bias
        ],
        out_specs=pl.BlockSpec((nb, C, DHW), lambda g: (g, 0, 0)),
        scratch_shapes=[
            pltpu.VMEM((C, L), jnp.float32),            # lane-stacked x / residual
            pltpu.VMEM((27 * C, L), jnp.bfloat16),      # im2col slab (bf16)
        ],
        compiler_params=pltpu.CompilerParams(
            dimension_semantics=("parallel",)),
        cost_estimate=pl.CostEstimate(flops=flops, transcendentals=0,
                                      bytes_accessed=bytes_accessed),
    )(mask, x, params["w1_fused"], params["b1"],
      params["w2_fused"], params["b2"])
    return out.reshape(N, C, D, H, W)


# ----------------------------- parameter setup -------------------------------

def _fold_bn(gamma, beta, mean, var, eps=1e-5):
    scale = gamma / jnp.sqrt(var + eps)
    bias = beta - mean * scale
    return scale, bias


def _fuse_conv_bn(w_oidhw, scale):
    # (O, I, 3, 3, 3) -> (O, 3, 3, 3, I) -> (O, 27*I); fold BN scale per row.
    O, I = w_oidhw.shape[:2]
    w_flat = jnp.transpose(w_oidhw, (0, 2, 3, 4, 1)).reshape(O, 27 * I)
    return (w_flat * scale[:, None]).astype(jnp.bfloat16)


def init_params(key, planes):
    k1, k2, k3, k4, k5, k6 = jax.random.split(key, 6)
    w1 = jax.random.normal(k1, (planes, planes, 3, 3, 3), jnp.float32)
    w1 = w1 * (2.0 / (planes * 27)) ** 0.5
    w2 = jax.random.normal(k2, (planes, planes, 3, 3, 3), jnp.float32)
    w2 = w2 * (2.0 / (planes * 27)) ** 0.5
    gamma1 = jax.random.uniform(k3, (planes,), jnp.float32, 0.5, 1.5)
    beta1 = 0.1 * jax.random.normal(k4, (planes,), jnp.float32)
    gamma2 = jax.random.uniform(k5, (planes,), jnp.float32, 0.5, 1.5)
    beta2 = 0.1 * jax.random.normal(k6, (planes,), jnp.float32)
    zeros = jnp.zeros((planes,), jnp.float32)
    ones = jnp.ones((planes,), jnp.float32)
    # BatchNorm3d eval mode: fold running stats (mean=0, var=1) into scale/bias.
    scale1, bias1 = _fold_bn(gamma1, beta1, zeros, ones)
    scale2, bias2 = _fold_bn(gamma2, beta2, zeros, ones)
    return {
        # kernel-side (pre-laid-out, BN-scale-folded) parameters
        "w1_fused": _fuse_conv_bn(w1, scale1), "b1": bias1.reshape(-1, 1),
        "w2_fused": _fuse_conv_bn(w2, scale2), "b2": bias2.reshape(-1, 1),
        # raw parameters for the XLA reference
        "w1_raw": w1, "w2_raw": w2,
        "scale1": scale1, "bias1": bias1, "scale2": scale2, "bias2": bias2,
    }


# -------------------------------- reference ----------------------------------

def _reference_forward(x, p):
    dn = ("NCDHW", "OIDHW", "NCDHW")

    def conv(v, w):
        return lax.conv_general_dilated(v, w, window_strides=(1, 1, 1),
                                        padding=[(1, 1)] * 3,
                                        dimension_numbers=dn)

    def bn(v, scale, bias):
        return (v * scale[None, :, None, None, None]
                + bias[None, :, None, None, None])

    y = jnp.maximum(bn(conv(x, p["w1_raw"]), p["scale1"], p["bias1"]), 0.0)
    z = bn(conv(y, p["w2_raw"]), p["scale2"], p["bias2"]) + x
    return jnp.maximum(z, 0.0)


# ---------------------------------- main --------------------------------------

if __name__ == "__main__":
    key = jax.random.PRNGKey(0)
    kx, kp = jax.random.split(key)

    # N=4 -> 2 grid steps x 2 lane-stacked batch elements per step.
    N, C, D, H, W = 4, 4, 8, 8, 8              # inplanes = planes = 4
    x = jax.random.normal(kx, (N, C, D, H, W), jnp.float32)
    params = init_params(kp, planes=C)

    fwd = jax.jit(basic_block_forward)
    out = jax.block_until_ready(fwd(x, params)).astype(jnp.float32)
    ref = jax.block_until_ready(_reference_forward(x, params))

    assert out.shape == ref.shape == (N, C, D, H, W)
    err = jnp.abs(out - ref)
    # bf16 MXU inputs / bf16 output with f32 accumulation -> loosened tolerance.
    assert float(err.max()) < 1e-1, f"max abs err {float(err.max())}"
    assert float(err.mean()) < 2e-2, f"mean abs err {float(err.mean())}"
    print("KERNEL_OK")
</pallas_src>

<mosaic_0001>
module attributes {stable_mosaic.version = 11 : i64} {
  func.func @_basic_block_kernel(%arg0: i32, %arg1: memref<27x1024xf32, #tpu.memory_space<vmem>>, %arg2: memref<2x4x512xbf16, #tpu.memory_space<vmem>>, %arg3: memref<4x108xbf16, #tpu.memory_space<vmem>>, %arg4: memref<4x1xf32, #tpu.memory_space<vmem>>, %arg5: memref<4x108xbf16, #tpu.memory_space<vmem>>, %arg6: memref<4x1xf32, #tpu.memory_space<vmem>>, %arg7: memref<2x4x512xbf16, #tpu.memory_space<vmem>>, %arg8: memref<4x1024xf32, #tpu.memory_space<vmem>>, %arg9: memref<108x1024xbf16, #tpu.memory_space<vmem>>) attributes {dimension_semantics = [#tpu.dimension_semantics<parallel>], iteration_bounds = array<i64: 2>, scalar_prefetch = 0 : i64, scratch_operands = 2 : i64, tpu.core_type = #tpu.core_type<tc>, window_params = [{pipeline_mode = #tpu.pipeline_mode<synchronous>, transform_indices = @transform_0, window_bounds = array<i64: 27, 1024>}, {transform_indices = @transform_1, window_bounds = array<i64: 2, 4, 512>}, {pipeline_mode = #tpu.pipeline_mode<synchronous>, transform_indices = @transform_2, window_bounds = array<i64: 4, 108>}, {pipeline_mode = #tpu.pipeline_mode<synchronous>, transform_indices = @transform_3, window_bounds = array<i64: 4, 1>}, {pipeline_mode = #tpu.pipeline_mode<synchronous>, transform_indices = @transform_4, window_bounds = array<i64: 4, 108>}, {pipeline_mode = #tpu.pipeline_mode<synchronous>, transform_indices = @transform_5, window_bounds = array<i64: 4, 1>}, {transform_indices = @transform_6, window_bounds = array<i64: 2, 4, 512>}]} {
    %c0 = arith.constant 0 : index
    %c0_0 = arith.constant 0 : index
    %c0_1 = arith.constant 0 : index
    %0 = vector.load %arg2[%c0, %c0_0, %c0_1] : memref<2x4x512xbf16, #tpu.memory_space<vmem>>, vector<1x4x512xbf16>
    %1 = vector.shape_cast %0 : vector<1x4x512xbf16> to vector<4x512xbf16>
    %2 = arith.extf %1 : vector<4x512xbf16> to vector<4x512xf32>
    %c0_2 = arith.constant 0 : index
    %c0_3 = arith.constant 0 : index
    %3 = vector.load %arg8[%c0_2, %c0_3] : memref<4x1024xf32, #tpu.memory_space<vmem>>, vector<4x512xf32>
    tpu.vector_store %arg8[%c0_2, %c0_3], %2 {strides = array<i32>} : memref<4x1024xf32, #tpu.memory_space<vmem>>, vector<4x512xf32>,
    %c1 = arith.constant 1 : index
    %c0_4 = arith.constant 0 : index
    %c0_5 = arith.constant 0 : index
    %4 = vector.load %arg2[%c1, %c0_4, %c0_5] : memref<2x4x512xbf16, #tpu.memory_space<vmem>>, vector<1x4x512xbf16>
    %5 = vector.shape_cast %4 : vector<1x4x512xbf16> to vector<4x512xbf16>
    %6 = arith.extf %5 : vector<4x512xbf16> to vector<4x512xf32>
    %c0_6 = arith.constant 0 : index
    %c512 = arith.constant 512 : index
    %7 = vector.load %arg8[%c0_6, %c512] : memref<4x1024xf32, #tpu.memory_space<vmem>>, vector<4x512xf32>
    tpu.vector_store %arg8[%c0_6, %c512], %6 {strides = array<i32>} : memref<4x1024xf32, #tpu.memory_space<vmem>>, vector<4x512xf32>,
    %c0_7 = arith.constant 0 : index
    %c0_8 = arith.constant 0 : index
    %8 = vector.load %arg3[%c0_7, %c0_8] : memref<4x108xbf16, #tpu.memory_space<vmem>>, vector<4x108xbf16>
    %c0_9 = arith.constant 0 : index
    %c0_10 = arith.constant 0 : index
    %9 = vector.load %arg8[%c0_9, %c0_10] : memref<4x1024xf32, #tpu.memory_space<vmem>>, vector<4x1024xf32>
    %c73_i32 = arith.constant 73 : i32
    %10 = tpu.dynamic_rotate %9 by %c73_i32 dim 1 : vector<4x1024xf32>, i32 -> vector<4x1024xf32>
    %c0_11 = arith.constant 0 : index
    %c0_12 = arith.constant 0 : index
    %11 = vector.load %arg1[%c0_11, %c0_12] : memref<27x1024xf32, #tpu.memory_space<vmem>>, vector<1x1024xf32>
    %12 = vector.broadcast %11 : vector<1x1024xf32> to vector<4x1024xf32>
    %13 = arith.mulf %10, %12 : vector<4x1024xf32>
    %14 = arith.truncf %13 : vector<4x1024xf32> to vector<4x1024xbf16>
    %c0_13 = arith.constant 0 : index
    %c0_14 = arith.constant 0 : index
    %15 = vector.load %arg9[%c0_13, %c0_14] : memref<108x1024xbf16, #tpu.memory_space<vmem>>, vector<4x1024xbf16>
    tpu.vector_store %arg9[%c0_13, %c0_14], %14 {strides = array<i32>} : memref<108x1024xbf16, #tpu.memory_space<vmem>>, vector<4x1024xbf16>,
    %c72_i32 = arith.constant 72 : i32
    %16 = tpu.dynamic_rotate %9 by %c72_i32 dim 1 : vector<4x1024xf32>, i32 -> vector<4x1024xf32>
    %c1_15 = arith.constant 1 : index
    %c0_16 = arith.constant 0 : index
    %17 = vector.load %arg1[%c1_15, %c0_16] : memref<27x1024xf32, #tpu.memory_space<vmem>>, vector<1x1024xf32>
    %18 = vector.broadcast %17 : vector<1x1024xf32> to vector<4x1024xf32>
    %19 = arith.mulf %16, %18 : vector<4x1024xf32>
    %20 = arith.truncf %19 : vector<4x1024xf32> to vector<4x1024xbf16>
    %c4 = arith.constant 4 : index
    %c0_17 = arith.constant 0 : index
    %21 = vector.load %arg9[%c4, %c0_17] : memref<108x1024xbf16, #tpu.memory_space<vmem>>, vector<4x1024xbf16>
    tpu.vector_store %arg9[%c4, %c0_17], %20 {strides = array<i32>} : memref<108x1024xbf16, #tpu.memory_space<vmem>>, vector<4x1024xbf16>,
    %c71_i32 = arith.constant 71 : i32
    %22 = tpu.dynamic_rotate %9 by %c71_i32 dim 1 : vector<4x1024xf32>, i32 -> vector<4x1024xf32>
    %c2 = arith.constant 2 : index
    %c0_18 = arith.constant 0 : index
    %23 = vector.load %arg1[%c2, %c0_18] : memref<27x1024xf32, #tpu.memory_space<vmem>>, vector<1x1024xf32>
    %24 = vector.broadcast %23 : vector<1x1024xf32> to vector<4x1024xf32>
    %25 = arith.mulf %22, %24 : vector<4x1024xf32>
    %26 = arith.truncf %25 : vector<4x1024xf32> to vector<4x1024xbf16>
    %c8 = arith.constant 8 : index
    %c0_19 = arith.constant 0 : index
    %27 = vector.load %arg9[%c8, %c0_19] : memref<108x1024xbf16, #tpu.memory_space<vmem>>, vector<4x1024xbf16>
    tpu.vector_store %arg9[%c8, %c0_19], %26 {strides = array<i32>} : memref<108x1024xbf16, #tpu.memory_space<vmem>>, vector<4x1024xbf16>,
    %c65_i32 = arith.constant 65 : i32
    %28 = tpu.dynamic_rotate %9 by %c65_i32 dim 1 : vector<4x1024xf32>, i32 -> vector<4x1024xf32>
    %c3 = arith.constant 3 : index
    %c0_20 = arith.constant 0 : index
    %29 = vector.load %arg1[%c3, %c0_20] : memref<27x1024xf32, #tpu.memory_space<vmem>>, vector<1x1024xf32>
    %30 = vector.broadcast %29 : vector<1x1024xf32> to vector<4x1024xf32>
    %31 = arith.mulf %28, %30 : vector<4x1024xf32>
    %32 = arith.truncf %31 : vector<4x1024xf32> to vector<4x1024xbf16>
    %c12 = arith.constant 12 : index
    %c0_21 = arith.constant 0 : index
    %33 = vector.load %arg9[%c12, %c0_21] : memref<108x1024xbf16, #tpu.memory_space<vmem>>, vector<4x1024xbf16>
    tpu.vector_store %arg9[%c12, %c0_21], %32 {strides = array<i32>} : memref<108x1024xbf16, #tpu.memory_space<vmem>>, vector<4x1024xbf16>,
    %c64_i32 = arith.constant 64 : i32
    %34 = tpu.dynamic_rotate %9 by %c64_i32 dim 1 : vector<4x1024xf32>, i32 -> vector<4x1024xf32>
    %c4_22 = arith.constant 4 : index
    %c0_23 = arith.constant 0 : index
    %35 = vector.load %arg1[%c4_22, %c0_23] : memref<27x1024xf32, #tpu.memory_space<vmem>>, vector<1x1024xf32>
    %36 = vector.broadcast %35 : vector<1x1024xf32> to vector<4x1024xf32>
    %37 = arith.mulf %34, %36 : vector<4x1024xf32>
    %38 = arith.truncf %37 : vector<4x1024xf32> to vector<4x1024xbf16>
    %c16 = arith.constant 16 : index
    %c0_24 = arith.constant 0 : index
    %39 = vector.load %arg9[%c16, %c0_24] : memref<108x1024xbf16, #tpu.memory_space<vmem>>, vector<4x1024xbf16>
    tpu.vector_store %arg9[%c16, %c0_24], %38 {strides = array<i32>} : memref<108x1024xbf16, #tpu.memory_space<vmem>>, vector<4x1024xbf16>,
    %c63_i32 = arith.constant 63 : i32
    %40 = tpu.dynamic_rotate %9 by %c63_i32 dim 1 : vector<4x1024xf32>, i32 -> vector<4x1024xf32>
    %c5 = arith.constant 5 : index
    %c0_25 = arith.constant 0 : index
    %41 = vector.load %arg1[%c5, %c0_25] : memref<27x1024xf32, #tpu.memory_space<vmem>>, vector<1x1024xf32>
    %42 = vector.broadcast %41 : vector<1x1024xf32> to vector<4x1024xf32>
    %43 = arith.mulf %40, %42 : vector<4x1024xf32>
    %44 = arith.truncf %43 : vector<4x1024xf32> to vector<4x1024xbf16>
    %c20 = arith.constant 20 : index
    %c0_26 = arith.constant 0 : index
    %45 = vector.load %arg9[%c20, %c0_26] : memref<108x1024xbf16, #tpu.memory_space<vmem>>, vector<4x1024xbf16>
    tpu.vector_store %arg9[%c20, %c0_26], %44 {strides = array<i32>} : memref<108x1024xbf16, #tpu.memory_space<vmem>>, vector<4x1024xbf16>,
    %c57_i32 = arith.constant 57 : i32
    %46 = tpu.dynamic_rotate %9 by %c57_i32 dim 1 : vector<4x1024xf32>, i32 -> vector<4x1024xf32>
    %c6 = arith.constant 6 : index
    %c0_27 = arith.constant 0 : index
    %47 = vector.load %arg1[%c6, %c0_27] : memref<27x1024xf32, #tpu.memory_space<vmem>>, vector<1x1024xf32>
    %48 = vector.broadcast %47 : vector<1x1024xf32> to vector<4x1024xf32>
    %49 = arith.mulf %46, %48 : vector<4x1024xf32>
    %50 = arith.truncf %49 : vector<4x1024xf32> to vector<4x1024xbf16>
    %c24 = arith.constant 24 : index
    %c0_28 = arith.constant 0 : index
    %51 = vector.load %arg9[%c24, %c0_28] : memref<108x1024xbf16, #tpu.memory_space<vmem>>, vector<4x1024xbf16>
    tpu.vector_store %arg9[%c24, %c0_28], %50 {strides = array<i32>} : memref<108x1024xbf16, #tpu.memory_space<vmem>>, vector<4x1024xbf16>,
    %c56_i32 = arith.constant 56 : i32
    %52 = tpu.dynamic_rotate %9 by %c56_i32 dim 1 : vector<4x1024xf32>, i32 -> vector<4x1024xf32>
    %c7 = arith.constant 7 : index
    %c0_29 = arith.constant 0 : index
    %53 = vector.load %arg1[%c7, %c0_29] : memref<27x1024xf32, #tpu.memory_space<vmem>>, vector<1x1024xf32>
    %54 = vector.broadcast %53 : vector<1x1024xf32> to vector<4x1024xf32>
    %55 = arith.mulf %52, %54 : vector<4x1024xf32>
    %56 = arith.truncf %55 : vector<4x1024xf32> to vector<4x1024xbf16>
    %c28 = arith.constant 28 : index
    %c0_30 = arith.constant 0 : index
    %57 = vector.load %arg9[%c28, %c0_30] : memref<108x1024xbf16, #tpu.memory_space<vmem>>, vector<4x1024xbf16>
    tpu.vector_store %arg9[%c28, %c0_30], %56 {strides = array<i32>} : memref<108x1024xbf16, #tpu.memory_space<vmem>>, vector<4x1024xbf16>,
    %c55_i32 = arith.constant 55 : i32
    %58 = tpu.dynamic_rotate %9 by %c55_i32 dim 1 : vector<4x1024xf32>, i32 -> vector<4x1024xf32>
    %c8_31 = arith.constant 8 : index
    %c0_32 = arith.constant 0 : index
    %59 = vector.load %arg1[%c8_31, %c0_32] : memref<27x1024xf32, #tpu.memory_space<vmem>>, vector<1x1024xf32>
    %60 = vector.broadcast %59 : vector<1x1024xf32> to vector<4x1024xf32>
    %61 = arith.mulf %58, %60 : vector<4x1024xf32>
    %62 = arith.truncf %61 : vector<4x1024xf32> to vector<4x1024xbf16>
    %c32 = arith.constant 32 : index
    %c0_33 = arith.constant 0 : index
    %63 = vector.load %arg9[%c32, %c0_33] : memref<108x1024xbf16, #tpu.memory_space<vmem>>, vector<4x1024xbf16>
    tpu.vector_store %arg9[%c32, %c0_33], %62 {strides = array<i32>} : memref<108x1024xbf16, #tpu.memory_space<vmem>>, vector<4x1024xbf16>,
    %c9_i32 = arith.constant 9 : i32
    %64 = tpu.dynamic_rotate %9 by %c9_i32 dim 1 : vector<4x1024xf32>, i32 -> vector<4x1024xf32>
    %c9 = arith.constant 9 : index
    %c0_34 = arith.constant 0 : index
    %65 = vector.load %arg1[%c9, %c0_34] : memref<27x1024xf32, #tpu.memory_space<vmem>>, vector<1x1024xf32>
    %66 = vector.broadcast %65 : vector<1x1024xf32> to vector<4x1024xf32>
    %67 = arith.mulf %64, %66 : vector<4x1024xf32>
    %68 = arith.truncf %67 : vector<4x1024xf32> to vector<4x1024xbf16>
    %c36 = arith.constant 36 : index
    %c0_35 = arith.constant 0 : index
    %69 = vector.load %arg9[%c36, %c0_35] : memref<108x1024xbf16, #tpu.memory_space<vmem>>, vector<4x1024xbf16>
    tpu.vector_store %arg9[%c36, %c0_35], %68 {strides = array<i32>} : memref<108x1024xbf16, #tpu.memory_space<vmem>>, vector<4x1024xbf16>,
    %c8_i32 = arith.constant 8 : i32
    %70 = tpu.dynamic_rotate %9 by %c8_i32 dim 1 : vector<4x1024xf32>, i32 -> vector<4x1024xf32>
    %c10 = arith.constant 10 : index
    %c0_36 = arith.constant 0 : index
    %71 = vector.load %arg1[%c10, %c0_36] : memref<27x1024xf32, #tpu.memory_space<vmem>>, vector<1x1024xf32>
    %72 = vector.broadcast %71 : vector<1x1024xf32> to vector<4x1024xf32>
    %73 = arith.mulf %70, %72 : vector<4x1024xf32>
    %74 = arith.truncf %73 : vector<4x1024xf32> to vector<4x1024xbf16>
    %c40 = arith.constant 40 : index
    %c0_37 = arith.constant 0 : index
    %75 = vector.load %arg9[%c40, %c0_37] : memref<108x1024xbf16, #tpu.memory_space<vmem>>, vector<4x1024xbf16>
    tpu.vector_store %arg9[%c40, %c0_37], %74 {strides = array<i32>} : memref<108x1024xbf16, #tpu.memory_space<vmem>>, vector<4x1024xbf16>,
    %c7_i32 = arith.constant 7 : i32
    %76 = tpu.dynamic_rotate %9 by %c7_i32 dim 1 : vector<4x1024xf32>, i32 -> vector<4x1024xf32>
    %c11 = arith.constant 11 : index
    %c0_38 = arith.constant 0 : index
    %77 = vector.load %arg1[%c11, %c0_38] : memref<27x1024xf32, #tpu.memory_space<vmem>>, vector<1x1024xf32>
    %78 = vector.broadcast %77 : vector<1x1024xf32> to vector<4x1024xf32>
    %79 = arith.mulf %76, %78 : vector<4x1024xf32>
    %80 = arith.truncf %79 : vector<4x1024xf32> to vector<4x1024xbf16>
    %c44 = arith.constant 44 : index
    %c0_39 = arith.constant 0 : index
    %81 = vector.load %arg9[%c44, %c0_39] : memref<108x1024xbf16, #tpu.memory_space<vmem>>, vector<4x1024xbf16>
    tpu.vector_store %arg9[%c44, %c0_39], %80 {strides = array<i32>} : memref<108x1024xbf16, #tpu.memory_space<vmem>>, vector<4x1024xbf16>,
    %c1_i32 = arith.constant 1 : i32
    %82 = tpu.dynamic_rotate %9 by %c1_i32 dim 1 : vector<4x1024xf32>, i32 -> vector<4x1024xf32>
    %c12_40 = arith.constant 12 : index
    %c0_41 = arith.constant 0 : index
    %83 = vector.load %arg1[%c12_40, %c0_41] : memref<27x1024xf32, #tpu.memory_space<vmem>>, vector<1x1024xf32>
    %84 = vector.broadcast %83 : vector<1x1024xf32> to vector<4x1024xf32>
    %85 = arith.mulf %82, %84 : vector<4x1024xf32>
    %86 = arith.truncf %85 : vector<4x1024xf32> to vector<4x1024xbf16>
    %c48 = arith.constant 48 : index
    %c0_42 = arith.constant 0 : index
    %87 = vector.load %arg9[%c48, %c0_42] : memref<108x1024xbf16, #tpu.memory_space<vmem>>, vector<4x1024xbf16>
    tpu.vector_store %arg9[%c48, %c0_42], %86 {strides = array<i32>} : memref<108x1024xbf16, #tpu.memory_space<vmem>>, vector<4x1024xbf16>,
    %c13 = arith.constant 13 : index
    %c0_43 = arith.constant 0 : index
    %88 = vector.load %arg1[%c13, %c0_43] : memref<27x1024xf32, #tpu.memory_space<vmem>>, vector<1x1024xf32>
    %89 = vector.broadcast %88 : vector<1x1024xf32> to vector<4x1024xf32>
    %90 = arith.mulf %9, %89 : vector<4x1024xf32>
    %91 = arith.truncf %90 : vector<4x1024xf32> to vector<4x1024xbf16>
    %c52 = arith.constant 52 : index
    %c0_44 = arith.constant 0 : index
    %92 = vector.load %arg9[%c52, %c0_44] : memref<108x1024xbf16, #tpu.memory_space<vmem>>, vector<4x1024xbf16>
    tpu.vector_store %arg9[%c52, %c0_44], %91 {strides = array<i32>} : memref<108x1024xbf16, #tpu.memory_space<vmem>>, vector<4x1024xbf16>,
    %c1023_i32 = arith.constant 1023 : i32
    %93 = tpu.dynamic_rotate %9 by %c1023_i32 dim 1 : vector<4x1024xf32>, i32 -> vector<4x1024xf32>
    %c14 = arith.constant 14 : index
    %c0_45 = arith.constant 0 : index
    %94 = vector.load %arg1[%c14, %c0_45] : memref<27x1024xf32, #tpu.memory_space<vmem>>, vector<1x1024xf32>
    %95 = vector.broadcast %94 : vector<1x1024xf32> to vector<4x1024xf32>
    %96 = arith.mulf %93, %95 : vector<4x1024xf32>
    %97 = arith.truncf %96 : vector<4x1024xf32> to vector<4x1024xbf16>
    %c56 = arith.constant 56 : index
    %c0_46 = arith.constant 0 : index
    %98 = vector.load %arg9[%c56, %c0_46] : memref<108x1024xbf16, #tpu.memory_space<vmem>>, vector<4x1024xbf16>
    tpu.vector_store %arg9[%c56, %c0_46], %97 {strides = array<i32>} : memref<108x1024xbf16, #tpu.memory_space<vmem>>, vector<4x1024xbf16>,
    %c1017_i32 = arith.constant 1017 : i32
    %99 = tpu.dynamic_rotate %9 by %c1017_i32 dim 1 : vector<4x1024xf32>, i32 -> vector<4x1024xf32>
    %c15 = arith.constant 15 : index
    %c0_47 = arith.constant 0 : index
    %100 = vector.load %arg1[%c15, %c0_47] : memref<27x1024xf32, #tpu.memory_space<vmem>>, vector<1x1024xf32>
    %101 = vector.broadcast %100 : vector<1x1024xf32> to vector<4x1024xf32>
    %102 = arith.mulf %99, %101 : vector<4x1024xf32>
    %103 = arith.truncf %102 : vector<4x1024xf32> to vector<4x1024xbf16>
    %c60 = arith.constant 60 : index
    %c0_48 = arith.constant 0 : index
    %104 = vector.load %arg9[%c60, %c0_48] : memref<108x1024xbf16, #tpu.memory_space<vmem>>, vector<4x1024xbf16>
    tpu.vector_store %arg9[%c60, %c0_48], %103 {strides = array<i32>} : memref<108x1024xbf16, #tpu.memory_space<vmem>>, vector<4x1024xbf16>,
    %c1016_i32 = arith.constant 1016 : i32
    %105 = tpu.dynamic_rotate %9 by %c1016_i32 dim 1 : vector<4x1024xf32>, i32 -> vector<4x1024xf32>
    %c16_49 = arith.constant 16 : index
    %c0_50 = arith.constant 0 : index
    %106 = vector.load %arg1[%c16_49, %c0_50] : memref<27x1024xf32, #tpu.memory_space<vmem>>, vector<1x1024xf32>
    %107 = vector.broadcast %106 : vector<1x1024xf32> to vector<4x1024xf32>
    %108 = arith.mulf %105, %107 : vector<4x1024xf32>
    %109 = arith.truncf %108 : vector<4x1024xf32> to vector<4x1024xbf16>
    %c64 = arith.constant 64 : index
    %c0_51 = arith.constant 0 : index
    %110 = vector.load %arg9[%c64, %c0_51] : memref<108x1024xbf16, #tpu.memory_space<vmem>>, vector<4x1024xbf16>
    tpu.vector_store %arg9[%c64, %c0_51], %109 {strides = array<i32>} : memref<108x1024xbf16, #tpu.memory_space<vmem>>, vector<4x1024xbf16>,
    %c1015_i32 = arith.constant 1015 : i32
    %111 = tpu.dynamic_rotate %9 by %c1015_i32 dim 1 : vector<4x1024xf32>, i32 -> vector<4x1024xf32>
    %c17 = arith.constant 17 : index
    %c0_52 = arith.constant 0 : index
    %112 = vector.load %arg1[%c17, %c0_52] : memref<27x1024xf32, #tpu.memory_space<vmem>>, vector<1x1024xf32>
    %113 = vector.broadcast %112 : vector<1x1024xf32> to vector<4x1024xf32>
    %114 = arith.mulf %111, %113 : vector<4x1024xf32>
    %115 = arith.truncf %114 : vector<4x1024xf32> to vector<4x1024xbf16>
    %c68 = arith.constant 68 : index
    %c0_53 = arith.constant 0 : index
    %116 = vector.load %arg9[%c68, %c0_53] : memref<108x1024xbf16, #tpu.memory_space<vmem>>, vector<4x1024xbf16>
    tpu.vector_store %arg9[%c68, %c0_53], %115 {strides = array<i32>} : memref<108x1024xbf16, #tpu.memory_space<vmem>>, vector<4x1024xbf16>,
    %c969_i32 = arith.constant 969 : i32
    %117 = tpu.dynamic_rotate %9 by %c969_i32 dim 1 : vector<4x1024xf32>, i32 -> vector<4x1024xf32>
    %c18 = arith.constant 18 : index
    %c0_54 = arith.constant 0 : index
    %118 = vector.load %arg1[%c18, %c0_54] : memref<27x1024xf32, #tpu.memory_space<vmem>>, vector<1x1024xf32>
    %119 = vector.broadcast %118 : vector<1x1024xf32> to vector<4x1024xf32>
    %120 = arith.mulf %117, %119 : vector<4x1024xf32>
    %121 = arith.truncf %120 : vector<4x1024xf32> to vector<4x1024xbf16>
    %c72 = arith.constant 72 : index
    %c0_55 = arith.constant 0 : index
    %122 = vector.load %arg9[%c72, %c0_55] : memref<108x1024xbf16, #tpu.memory_space<vmem>>, vector<4x1024xbf16>
    tpu.vector_store %arg9[%c72, %c0_55], %121 {strides = array<i32>} : memref<108x1024xbf16, #tpu.memory_space<vmem>>, vector<4x1024xbf16>,
    %c968_i32 = arith.constant 968 : i32
    %123 = tpu.dynamic_rotate %9 by %c968_i32 dim 1 : vector<4x1024xf32>, i32 -> vector<4x1024xf32>
    %c19 = arith.constant 19 : index
    %c0_56 = arith.constant 0 : index
    %124 = vector.load %arg1[%c19, %c0_56] : memref<27x1024xf32, #tpu.memory_space<vmem>>, vector<1x1024xf32>
    %125 = vector.broadcast %124 : vector<1x1024xf32> to vector<4x1024xf32>
    %126 = arith.mulf %123, %125 : vector<4x1024xf32>
    %127 = arith.truncf %126 : vector<4x1024xf32> to vector<4x1024xbf16>
    %c76 = arith.constant 76 : index
    %c0_57 = arith.constant 0 : index
    %128 = vector.load %arg9[%c76, %c0_57] : memref<108x1024xbf16, #tpu.memory_space<vmem>>, vector<4x1024xbf16>
    tpu.vector_store %arg9[%c76, %c0_57], %127 {strides = array<i32>} : memref<108x1024xbf16, #tpu.memory_space<vmem>>, vector<4x1024xbf16>,
    %c967_i32 = arith.constant 967 : i32
    %129 = tpu.dynamic_rotate %9 by %c967_i32 dim 1 : vector<4x1024xf32>, i32 -> vector<4x1024xf32>
    %c20_58 = arith.constant 20 : index
    %c0_59 = arith.constant 0 : index
    %130 = vector.load %arg1[%c20_58, %c0_59] : memref<27x1024xf32, #tpu.memory_space<vmem>>, vector<1x1024xf32>
    %131 = vector.broadcast %130 : vector<1x1024xf32> to vector<4x1024xf32>
    %132 = arith.mulf %129, %131 : vector<4x1024xf32>
    %133 = arith.truncf %132 : vector<4x1024xf32> to vector<4x1024xbf16>
    %c80 = arith.constant 80 : index
    %c0_60 = arith.constant 0 : index
    %134 = vector.load %arg9[%c80, %c0_60] : memref<108x1024xbf16, #tpu.memory_space<vmem>>, vector<4x1024xbf16>
    tpu.vector_store %arg9[%c80, %c0_60], %133 {strides = array<i32>} : memref<108x1024xbf16, #tpu.memory_space<vmem>>, vector<4x1024xbf16>,
    %c961_i32 = arith.constant 961 : i32
    %135 = tpu.dynamic_rotate %9 by %c961_i32 dim 1 : vector<4x1024xf32>, i32 -> vector<4x1024xf32>
    %c21 = arith.constant 21 : index
    %c0_61 = arith.constant 0 : index
    %136 = vector.load %arg1[%c21, %c0_61] : memref<27x1024xf32, #tpu.memory_space<vmem>>, vector<1x1024xf32>
    %137 = vector.broadcast %136 : vector<1x1024xf32> to vector<4x1024xf32>
    %138 = arith.mulf %135, %137 : vector<4x1024xf32>
    %139 = arith.truncf %138 : vector<4x1024xf32> to vector<4x1024xbf16>
    %c84 = arith.constant 84 : index
    %c0_62 = arith.constant 0 : index
    %140 = vector.load %arg9[%c84, %c0_62] : memref<108x1024xbf16, #tpu.memory_space<vmem>>, vector<4x1024xbf16>
    tpu.vector_store %arg9[%c84, %c0_62], %139 {strides = array<i32>} : memref<108x1024xbf16, #tpu.memory_space<vmem>>, vector<4x1024xbf16>,
    %c960_i32 = arith.constant 960 : i32
    %141 = tpu.dynamic_rotate %9 by %c960_i32 dim 1 : vector<4x1024xf32>, i32 -> vector<4x1024xf32>
    %c22 = arith.constant 22 : index
    %c0_63 = arith.constant 0 : index
    %142 = vector.load %arg1[%c22, %c0_63] : memref<27x1024xf32, #tpu.memory_space<vmem>>, vector<1x1024xf32>
    %143 = vector.broadcast %142 : vector<1x1024xf32> to vector<4x1024xf32>
    %144 = arith.mulf %141, %143 : vector<4x1024xf32>
    %145 = arith.truncf %144 : vector<4x1024xf32> to vector<4x1024xbf16>
    %c88 = arith.constant 88 : index
    %c0_64 = arith.constant 0 : index
    %146 = vector.load %arg9[%c88, %c0_64] : memref<108x1024xbf16, #tpu.memory_space<vmem>>, vector<4x1024xbf16>
    tpu.vector_store %arg9[%c88, %c0_64], %145 {strides = array<i32>} : memref<108x1024xbf16, #tpu.memory_space<vmem>>, vector<4x1024xbf16>,
    %c959_i32 = arith.constant 959 : i32
    %147 = tpu.dynamic_rotate %9 by %c959_i32 dim 1 : vector<4x1024xf32>, i32 -> vector<4x1024xf32>
    %c23 = arith.constant 23 : index
    %c0_65 = arith.constant 0 : index
    %148 = vector.load %arg1[%c23, %c0_65] : memref<27x1024xf32, #tpu.memory_space<vmem>>, vector<1x1024xf32>
    %149 = vector.broadcast %148 : vector<1x1024xf32> to vector<4x1024xf32>
    %150 = arith.mulf %147, %149 : vector<4x1024xf32>
    %151 = arith.truncf %150 : vector<4x1024xf32> to vector<4x1024xbf16>
    %c92 = arith.constant 92 : index
    %c0_66 = arith.constant 0 : index
    %152 = vector.load %arg9[%c92, %c0_66] : memref<108x1024xbf16, #tpu.memory_space<vmem>>, vector<4x1024xbf16>
    tpu.vector_store %arg9[%c92, %c0_66], %151 {strides = array<i32>} : memref<108x1024xbf16, #tpu.memory_space<vmem>>, vector<4x1024xbf16>,
    %c953_i32 = arith.constant 953 : i32
    %153 = tpu.dynamic_rotate %9 by %c953_i32 dim 1 : vector<4x1024xf32>, i32 -> vector<4x1024xf32>
    %c24_67 = arith.constant 24 : index
    %c0_68 = arith.constant 0 : index
    %154 = vector.load %arg1[%c24_67, %c0_68] : memref<27x1024xf32, #tpu.memory_space<vmem>>, vector<1x1024xf32>
    %155 = vector.broadcast %154 : vector<1x1024xf32> to vector<4x1024xf32>
    %156 = arith.mulf %153, %155 : vector<4x1024xf32>
    %157 = arith.truncf %156 : vector<4x1024xf32> to vector<4x1024xbf16>
    %c96 = arith.constant 96 : index
    %c0_69 = arith.constant 0 : index
    %158 = vector.load %arg9[%c96, %c0_69] : memref<108x1024xbf16, #tpu.memory_space<vmem>>, vector<4x1024xbf16>
    tpu.vector_store %arg9[%c96, %c0_69], %157 {strides = array<i32>} : memref<108x1024xbf16, #tpu.memory_space<vmem>>, vector<4x1024xbf16>,
    %c952_i32 = arith.constant 952 : i32
    %159 = tpu.dynamic_rotate %9 by %c952_i32 dim 1 : vector<4x1024xf32>, i32 -> vector<4x1024xf32>
    %c25 = arith.constant 25 : index
    %c0_70 = arith.constant 0 : index
    %160 = vector.load %arg1[%c25, %c0_70] : memref<27x1024xf32, #tpu.memory_space<vmem>>, vector<1x1024xf32>
    %161 = vector.broadcast %160 : vector<1x1024xf32> to vector<4x1024xf32>
    %162 = arith.mulf %159, %161 : vector<4x1024xf32>
    %163 = arith.truncf %162 : vector<4x1024xf32> to vector<4x1024xbf16>
    %c100 = arith.constant 100 : index
    %c0_71 = arith.constant 0 : index
    %164 = vector.load %arg9[%c100, %c0_71] : memref<108x1024xbf16, #tpu.memory_space<vmem>>, vector<4x1024xbf16>
    tpu.vector_store %arg9[%c100, %c0_71], %163 {strides = array<i32>} : memref<108x1024xbf16, #tpu.memory_space<vmem>>, vector<4x1024xbf16>,
    %c951_i32 = arith.constant 951 : i32
    %165 = tpu.dynamic_rotate %9 by %c951_i32 dim 1 : vector<4x1024xf32>, i32 -> vector<4x1024xf32>
    %c26 = arith.constant 26 : index
    %c0_72 = arith.constant 0 : index
    %166 = vector.load %arg1[%c26, %c0_72] : memref<27x1024xf32, #tpu.memory_space<vmem>>, vector<1x1024xf32>
    %167 = vector.broadcast %166 : vector<1x1024xf32> to vector<4x1024xf32>
    %168 = arith.mulf %165, %167 : vector<4x1024xf32>
    %169 = arith.truncf %168 : vector<4x1024xf32> to vector<4x1024xbf16>
    %c104 = arith.constant 104 : index
    %c0_73 = arith.constant 0 : index
    %170 = vector.load %arg9[%c104, %c0_73] : memref<108x1024xbf16, #tpu.memory_space<vmem>>, vector<4x1024xbf16>
    tpu.vector_store %arg9[%c104, %c0_73], %169 {strides = array<i32>} : memref<108x1024xbf16, #tpu.memory_space<vmem>>, vector<4x1024xbf16>,
    %c0_74 = arith.constant 0 : index
    %c0_75 = arith.constant 0 : index
    %171 = vector.load %arg9[%c0_74, %c0_75] : memref<108x1024xbf16, #tpu.memory_space<vmem>>, vector<108x1024xbf16>
    %cst = arith.constant dense<0.000000e+00> : vector<4x1024xf32>
    %172 = tpu.matmul %8, %171, %cst {dimension_numbers = #tpu.dot_dimension_numbers<[1], [0], [0], [1], [0, 0, 1, 1], [], []>} : vector<4x108xbf16>, vector<108x1024xbf16>, vector<4x1024xf32> -> vector<4x1024xf32>
    %c0_76 = arith.constant 0 : index
    %c0_77 = arith.constant 0 : index
    %173 = vector.load %arg4[%c0_76, %c0_77] : memref<4x1xf32, #tpu.memory_space<vmem>>, vector<4x1xf32>
    %174 = vector.broadcast %173 : vector<4x1xf32> to vector<4x1024xf32>
    %175 = arith.addf %172, %174 : vector<4x1024xf32>
    %cst_78 = arith.constant 0.000000e+00 : f32
    %176 = vector.broadcast %cst_78 : f32 to vector<4x1024xf32>
    %177 = arith.maximumf %175, %176 : vector<4x1024xf32>
    %c0_79 = arith.constant 0 : index
    %c0_80 = arith.constant 0 : index
    %178 = vector.load %arg5[%c0_79, %c0_80] : memref<4x108xbf16, #tpu.memory_space<vmem>>, vector<4x108xbf16>
    %c73_i32_81 = arith.constant 73 : i32
    %179 = tpu.dynamic_rotate %177 by %c73_i32_81 dim 1 : vector<4x1024xf32>, i32 -> vector<4x1024xf32>
    %c0_82 = arith.constant 0 : index
    %c0_83 = arith.constant 0 : index
    %180 = vector.load %arg1[%c0_82, %c0_83] : memref<27x1024xf32, #tpu.memory_space<vmem>>, vector<1x1024xf32>
    %181 = vector.broadcast %180 : vector<1x1024xf32> to vector<4x1024xf32>
    %182 = arith.mulf %179, %181 : vector<4x1024xf32>
    %183 = arith.truncf %182 : vector<4x1024xf32> to vector<4x1024xbf16>
    %c0_84 = arith.constant 0 : index
    %c0_85 = arith.constant 0 : index
    %184 = vector.load %arg9[%c0_84, %c0_85] : memref<108x1024xbf16, #tpu.memory_space<vmem>>, vector<4x1024xbf16>
    tpu.vector_store %arg9[%c0_84, %c0_85], %183 {strides = array<i32>} : memref<108x1024xbf16, #tpu.memory_space<vmem>>, vector<4x1024xbf16>,
    %c72_i32_86 = arith.constant 72 : i32
    %185 = tpu.dynamic_rotate %177 by %c72_i32_86 dim 1 : vector<4x1024xf32>, i32 -> vector<4x1024xf32>
    %c1_87 = arith.constant 1 : index
    %c0_88 = arith.constant 0 : index
    %186 = vector.load %arg1[%c1_87, %c0_88] : memref<27x1024xf32, #tpu.memory_space<vmem>>, vector<1x1024xf32>
    %187 = vector.broadcast %186 : vector<1x1024xf32> to vector<4x1024xf32>
    %188 = arith.mulf %185, %187 : vector<4x1024xf32>
    %189 = arith.truncf %188 : vector<4x1024xf32> to vector<4x1024xbf16>
    %c4_89 = arith.constant 4 : index
    %c0_90 = arith.constant 0 : index
    %190 = vector.load %arg9[%c4_89, %c0_90] : memref<108x1024xbf16, #tpu.memory_space<vmem>>, vector<4x1024xbf16>
    tpu.vector_store %arg9[%c4_89, %c0_90], %189 {strides = array<i32>} : memref<108x1024xbf16, #tpu.memory_space<vmem>>, vector<4x1024xbf16>,
    %c71_i32_91 = arith.constant 71 : i32
    %191 = tpu.dynamic_rotate %177 by %c71_i32_91 dim 1 : vector<4x1024xf32>, i32 -> vector<4x1024xf32>
    %c2_92 = arith.constant 2 : index
    %c0_93 = arith.constant 0 : index
    %192 = vector.load %arg1[%c2_92, %c0_93] : memref<27x1024xf32, #tpu.memory_space<vmem>>, vector<1x1024xf32>
    %193 = vector.broadcast %192 : vector<1x1024xf32> to vector<4x1024xf32>
    %194 = arith.mulf %191, %193 : vector<4x1024xf32>
    %195 = arith.truncf %194 : vector<4x1024xf32> to vector<4x1024xbf16>
    %c8_94 = arith.constant 8 : index
    %c0_95 = arith.constant 0 : index
    %196 = vector.load %arg9[%c8_94, %c0_95] : memref<108x1024xbf16, #tpu.memory_space<vmem>>, vector<4x1024xbf16>
    tpu.vector_store %arg9[%c8_94, %c0_95], %195 {strides = array<i32>} : memref<108x1024xbf16, #tpu.memory_space<vmem>>, vector<4x1024xbf16>,
    %c65_i32_96 = arith.constant 65 : i32
    %197 = tpu.dynamic_rotate %177 by %c65_i32_96 dim 1 : vector<4x1024xf32>, i32 -> vector<4x1024xf32>
    %c3_97 = arith.constant 3 : index
    %c0_98 = arith.constant 0 : index
    %198 = vector.load %arg1[%c3_97, %c0_98] : memref<27x1024xf32, #tpu.memory_space<vmem>>, vector<1x1024xf32>
    %199 = vector.broadcast %198 : vector<1x1024xf32> to vector<4x1024xf32>
    %200 = arith.mulf %197, %199 : vector<4x1024xf32>
    %201 = arith.truncf %200 : vector<4x1024xf32> to vector<4x1024xbf16>
    %c12_99 = arith.constant 12 : index
    %c0_100 = arith.constant 0 : index
    %202 = vector.load %arg9[%c12_99, %c0_100] : memref<108x1024xbf16, #tpu.memory_space<vmem>>, vector<4x1024xbf16>
    tpu.vector_store %arg9[%c12_99, %c0_100], %201 {strides = array<i32>} : memref<108x1024xbf16, #tpu.memory_space<vmem>>, vector<4x1024xbf16>,
    %c64_i32_101 = arith.constant 64 : i32
    %203 = tpu.dynamic_rotate %177 by %c64_i32_101 dim 1 : vector<4x1024xf32>, i32 -> vector<4x1024xf32>
    %c4_102 = arith.constant 4 : index
    %c0_103 = arith.constant 0 : index
    %204 = vector.load %arg1[%c4_102, %c0_103] : memref<27x1024xf32, #tpu.memory_space<vmem>>, vector<1x1024xf32>
    %205 = vector.broadcast %204 : vector<1x1024xf32> to vector<4x1024xf32>
    %206 = arith.mulf %203, %205 : vector<4x1024xf32>
    %207 = arith.truncf %206 : vector<4x1024xf32> to vector<4x1024xbf16>
    %c16_104 = arith.constant 16 : index
    %c0_105 = arith.constant 0 : index
    %208 = vector.load %arg9[%c16_104, %c0_105] : memref<108x1024xbf16, #tpu.memory_space<vmem>>, vector<4x1024xbf16>
    tpu.vector_store %arg9[%c16_104, %c0_105], %207 {strides = array<i32>} : memref<108x1024xbf16, #tpu.memory_space<vmem>>, vector<4x1024xbf16>,
    %c63_i32_106 = arith.constant 63 : i32
    %209 = tpu.dynamic_rotate %177 by %c63_i32_106 dim 1 : vector<4x1024xf32>, i32 -> vector<4x1024xf32>
    %c5_107 = arith.constant 5 : index
    %c0_108 = arith.constant 0 : index
    %210 = vector.load %arg1[%c5_107, %c0_108] : memref<27x1024xf32, #tpu.memory_space<vmem>>, vector<1x1024xf32>
    %211 = vector.broadcast %210 : vector<1x1024xf32> to vector<4x1024xf32>
    %212 = arith.mulf %209, %211 : vector<4x1024xf32>
    %213 = arith.truncf %212 : vector<4x1024xf32> to vector<4x1024xbf16>
    %c20_109 = arith.constant 20 : index
    %c0_110 = arith.constant 0 : index
    %214 = vector.load %arg9[%c20_109, %c0_110] : memref<108x1024xbf16, #tpu.memory_space<vmem>>, vector<4x1024xbf16>
    tpu.vector_store %arg9[%c20_109, %c0_110], %213 {strides = array<i32>} : memref<108x1024xbf16, #tpu.memory_space<vmem>>, vector<4x1024xbf16>,
    %c57_i32_111 = arith.constant 57 : i32
    %215 = tpu.dynamic_rotate %177 by %c57_i32_111 dim 1 : vector<4x1024xf32>, i32 -> vector<4x1024xf32>
    %c6_112 = arith.constant 6 : index
    %c0_113 = arith.constant 0 : index
    %216 = vector.load %arg1[%c6_112, %c0_113] : memref<27x1024xf32, #tpu.memory_space<vmem>>, vector<1x1024xf32>
    %217 = vector.broadcast %216 : vector<1x1024xf32> to vector<4x1024xf32>
    %218 = arith.mulf %215, %217 : vector<4x1024xf32>
    %219 = arith.truncf %218 : vector<4x1024xf32> to vector<4x1024xbf16>
    %c24_114 = arith.constant 24 : index
    %c0_115 = arith.constant 0 : index
    %220 = vector.load %arg9[%c24_114, %c0_115] : memref<108x1024xbf16, #tpu.memory_space<vmem>>, vector<4x1024xbf16>
    tpu.vector_store %arg9[%c24_114, %c0_115], %219 {strides = array<i32>} : memref<108x1024xbf16, #tpu.memory_space<vmem>>, vector<4x1024xbf16>,
    %c56_i32_116 = arith.constant 56 : i32
    %221 = tpu.dynamic_rotate %177 by %c56_i32_116 dim 1 : vector<4x1024xf32>, i32 -> vector<4x1024xf32>
    %c7_117 = arith.constant 7 : index
    %c0_118 = arith.constant 0 : index
    %222 = vector.load %arg1[%c7_117, %c0_118] : memref<27x1024xf32, #tpu.memory_space<vmem>>, vector<1x1024xf32>
    %223 = vector.broadcast %222 : vector<1x1024xf32> to vector<4x1024xf32>
    %224 = arith.mulf %221, %223 : vector<4x1024xf32>
    %225 = arith.truncf %224 : vector<4x1024xf32> to vector<4x1024xbf16>
    %c28_119 = arith.constant 28 : index
    %c0_120 = arith.constant 0 : index
    %226 = vector.load %arg9[%c28_119, %c0_120] : memref<108x1024xbf16, #tpu.memory_space<vmem>>, vector<4x1024xbf16>
    tpu.vector_store %arg9[%c28_119, %c0_120], %225 {strides = array<i32>} : memref<108x1024xbf16, #tpu.memory_space<vmem>>, vector<4x1024xbf16>,
    %c55_i32_121 = arith.constant 55 : i32
    %227 = tpu.dynamic_rotate %177 by %c55_i32_121 dim 1 : vector<4x1024xf32>, i32 -> vector<4x1024xf32>
    %c8_122 = arith.constant 8 : index
    %c0_123 = arith.constant 0 : index
    %228 = vector.load %arg1[%c8_122, %c0_123] : memref<27x1024xf32, #tpu.memory_space<vmem>>, vector<1x1024xf32>
    %229 = vector.broadcast %228 : vector<1x1024xf32> to vector<4x1024xf32>
    %230 = arith.mulf %227, %229 : vector<4x1024xf32>
    %231 = arith.truncf %230 : vector<4x1024xf32> to vector<4x1024xbf16>
    %c32_124 = arith.constant 32 : index
    %c0_125 = arith.constant 0 : index
    %232 = vector.load %arg9[%c32_124, %c0_125] : memref<108x1024xbf16, #tpu.memory_space<vmem>>, vector<4x1024xbf16>
    tpu.vector_store %arg9[%c32_124, %c0_125], %231 {strides = array<i32>} : memref<108x1024xbf16, #tpu.memory_space<vmem>>, vector<4x1024xbf16>,
    %c9_i32_126 = arith.constant 9 : i32
    %233 = tpu.dynamic_rotate %177 by %c9_i32_126 dim 1 : vector<4x1024xf32>, i32 -> vector<4x1024xf32>
    %c9_127 = arith.constant 9 : index
    %c0_128 = arith.constant 0 : index
    %234 = vector.load %arg1[%c9_127, %c0_128] : memref<27x1024xf32, #tpu.memory_space<vmem>>, vector<1x1024xf32>
    %235 = vector.broadcast %234 : vector<1x1024xf32> to vector<4x1024xf32>
    %236 = arith.mulf %233, %235 : vector<4x1024xf32>
    %237 = arith.truncf %236 : vector<4x1024xf32> to vector<4x1024xbf16>
    %c36_129 = arith.constant 36 : index
    %c0_130 = arith.constant 0 : index
    %238 = vector.load %arg9[%c36_129, %c0_130] : memref<108x1024xbf16, #tpu.memory_space<vmem>>, vector<4x1024xbf16>
    tpu.vector_store %arg9[%c36_129, %c0_130], %237 {strides = array<i32>} : memref<108x1024xbf16, #tpu.memory_space<vmem>>, vector<4x1024xbf16>,
    %c8_i32_131 = arith.constant 8 : i32
    %239 = tpu.dynamic_rotate %177 by %c8_i32_131 dim 1 : vector<4x1024xf32>, i32 -> vector<4x1024xf32>
    %c10_132 = arith.constant 10 : index
    %c0_133 = arith.constant 0 : index
    %240 = vector.load %arg1[%c10_132, %c0_133] : memref<27x1024xf32, #tpu.memory_space<vmem>>, vector<1x1024xf32>
    %241 = vector.broadcast %240 : vector<1x1024xf32> to vector<4x1024xf32>
    %242 = arith.mulf %239, %241 : vector<4x1024xf32>
    %243 = arith.truncf %242 : vector<4x1024xf32> to vector<4x1024xbf16>
    %c40_134 = arith.constant 40 : index
    %c0_135 = arith.constant 0 : index
    %244 = vector.load %arg9[%c40_134, %c0_135] : memref<108x1024xbf16, #tpu.memory_space<vmem>>, vector<4x1024xbf16>
    tpu.vector_store %arg9[%c40_134, %c0_135], %243 {strides = array<i32>} : memref<108x1024xbf16, #tpu.memory_space<vmem>>, vector<4x1024xbf16>,
    %c7_i32_136 = arith.constant 7 : i32
    %245 = tpu.dynamic_rotate %177 by %c7_i32_136 dim 1 : vector<4x1024xf32>, i32 -> vector<4x1024xf32>
    %c11_137 = arith.constant 11 : index
    %c0_138 = arith.constant 0 : index
    %246 = vector.load %arg1[%c11_137, %c0_138] : memref<27x1024xf32, #tpu.memory_space<vmem>>, vector<1x1024xf32>
    %247 = vector.broadcast %246 : vector<1x1024xf32> to vector<4x1024xf32>
    %248 = arith.mulf %245, %247 : vector<4x1024xf32>
    %249 = arith.truncf %248 : vector<4x1024xf32> to vector<4x1024xbf16>
    %c44_139 = arith.constant 44 : index
    %c0_140 = arith.constant 0 : index
    %250 = vector.load %arg9[%c44_139, %c0_140] : memref<108x1024xbf16, #tpu.memory_space<vmem>>, vector<4x1024xbf16>
    tpu.vector_store %arg9[%c44_139, %c0_140], %249 {strides = array<i32>} : memref<108x1024xbf16, #tpu.memory_space<vmem>>, vector<4x1024xbf16>,
    %c1_i32_141 = arith.constant 1 : i32
    %251 = tpu.dynamic_rotate %177 by %c1_i32_141 dim 1 : vector<4x1024xf32>, i32 -> vector<4x1024xf32>
    %c12_142 = arith.constant 12 : index
    %c0_143 = arith.constant 0 : index
    %252 = vector.load %arg1[%c12_142, %c0_143] : memref<27x1024xf32, #tpu.memory_space<vmem>>, vector<1x1024xf32>
    %253 = vector.broadcast %252 : vector<1x1024xf32> to vector<4x1024xf32>
    %254 = arith.mulf %251, %253 : vector<4x1024xf32>
    %255 = arith.truncf %254 : vector<4x1024xf32> to vector<4x1024xbf16>
    %c48_144 = arith.constant 48 : index
    %c0_145 = arith.constant 0 : index
    %256 = vector.load %arg9[%c48_144, %c0_145] : memref<108x1024xbf16, #tpu.memory_space<vmem>>, vector<4x1024xbf16>
    tpu.vector_store %arg9[%c48_144, %c0_145], %255 {strides = array<i32>} : memref<108x1024xbf16, #tpu.memory_space<vmem>>, vector<4x1024xbf16>,
    %c13_146 = arith.constant 13 : index
    %c0_147 = arith.constant 0 : index
    %257 = vector.load %arg1[%c13_146, %c0_147] : memref<27x1024xf32, #tpu.memory_space<vmem>>, vector<1x1024xf32>
    %258 = vector.broadcast %257 : vector<1x1024xf32> to vector<4x1024xf32>
    %259 = arith.mulf %177, %258 : vector<4x1024xf32>
    %260 = arith.truncf %259 : vector<4x1024xf32> to vector<4x1024xbf16>
    %c52_148 = arith.constant 52 : index
    %c0_149 = arith.constant 0 : index
    %261 = vector.load %arg9[%c52_148, %c0_149] : memref<108x1024xbf16, #tpu.memory_space<vmem>>, vector<4x1024xbf16>
    tpu.vector_store %arg9[%c52_148, %c0_149], %260 {strides = array<i32>} : memref<108x1024xbf16, #tpu.memory_space<vmem>>, vector<4x1024xbf16>,
    %c1023_i32_150 = arith.constant 1023 : i32
    %262 = tpu.dynamic_rotate %177 by %c1023_i32_150 dim 1 : vector<4x1024xf32>, i32 -> vector<4x1024xf32>
    %c14_151 = arith.constant 14 : index
    %c0_152 = arith.constant 0 : index
    %263 = vector.load %arg1[%c14_151, %c0_152] : memref<27x1024xf32, #tpu.memory_space<vmem>>, vector<1x1024xf32>
    %264 = vector.broadcast %263 : vector<1x1024xf32> to vector<4x1024xf32>
    %265 = arith.mulf %262, %264 : vector<4x1024xf32>
    %266 = arith.truncf %265 : vector<4x1024xf32> to vector<4x1024xbf16>
    %c56_153 = arith.constant 56 : index
    %c0_154 = arith.constant 0 : index
    %267 = vector.load %arg9[%c56_153, %c0_154] : memref<108x1024xbf16, #tpu.memory_space<vmem>>, vector<4x1024xbf16>
    tpu.vector_store %arg9[%c56_153, %c0_154], %266 {strides = array<i32>} : memref<108x1024xbf16, #tpu.memory_space<vmem>>, vector<4x1024xbf16>,
    %c1017_i32_155 = arith.constant 1017 : i32
    %268 = tpu.dynamic_rotate %177 by %c1017_i32_155 dim 1 : vector<4x1024xf32>, i32 -> vector<4x1024xf32>
    %c15_156 = arith.constant 15 : index
    %c0_157 = arith.constant 0 : index
    %269 = vector.load %arg1[%c15_156, %c0_157] : memref<27x1024xf32, #tpu.memory_space<vmem>>, vector<1x1024xf32>
    %270 = vector.broadcast %269 : vector<1x1024xf32> to vector<4x1024xf32>
    %271 = arith.mulf %268, %270 : vector<4x1024xf32>
    %272 = arith.truncf %271 : vector<4x1024xf32> to vector<4x1024xbf16>
    %c60_158 = arith.constant 60 : index
    %c0_159 = arith.constant 0 : index
    %273 = vector.load %arg9[%c60_158, %c0_159] : memref<108x1024xbf16, #tpu.memory_space<vmem>>, vector<4x1024xbf16>
    tpu.vector_store %arg9[%c60_158, %c0_159], %272 {strides = array<i32>} : memref<108x1024xbf16, #tpu.memory_space<vmem>>, vector<4x1024xbf16>,
    %c1016_i32_160 = arith.constant 1016 : i32
    %274 = tpu.dynamic_rotate %177 by %c1016_i32_160 dim 1 : vector<4x1024xf32>, i32 -> vector<4x1024xf32>
    %c16_161 = arith.constant 16 : index
    %c0_162 = arith.constant 0 : index
    %275 = vector.load %arg1[%c16_161, %c0_162] : memref<27x1024xf32, #tpu.memory_space<vmem>>, vector<1x1024xf32>
    %276 = vector.broadcast %275 : vector<1x1024xf32> to vector<4x1024xf32>
    %277 = arith.mulf %274, %276 : vector<4x1024xf32>
    %278 = arith.truncf %277 : vector<4x1024xf32> to vector<4x1024xbf16>
    %c64_163 = arith.constant 64 : index
    %c0_164 = arith.constant 0 : index
    %279 = vector.load %arg9[%c64_163, %c0_164] : memref<108x1024xbf16, #tpu.memory_space<vmem>>, vector<4x1024xbf16>
    tpu.vector_store %arg9[%c64_163, %c0_164], %278 {strides = array<i32>} : memref<108x1024xbf16, #tpu.memory_space<vmem>>, vector<4x1024xbf16>,
    %c1015_i32_165 = arith.constant 1015 : i32
    %280 = tpu.dynamic_rotate %177 by %c1015_i32_165 dim 1 : vector<4x1024xf32>, i32 -> vector<4x1024xf32>
    %c17_166 = arith.constant 17 : index
    %c0_167 = arith.constant 0 : index
    %281 = vector.load %arg1[%c17_166, %c0_167] : memref<27x1024xf32, #tpu.memory_space<vmem>>, vector<1x1024xf32>
    %282 = vector.broadcast %281 : vector<1x1024xf32> to vector<4x1024xf32>
    %283 = arith.mulf %280, %282 : vector<4x1024xf32>
    %284 = arith.truncf %283 : vector<4x1024xf32> to vector<4x1024xbf16>
    %c68_168 = arith.constant 68 : index
    %c0_169 = arith.constant 0 : index
    %285 = vector.load %arg9[%c68_168, %c0_169] : memref<108x1024xbf16, #tpu.memory_space<vmem>>, vector<4x1024xbf16>
    tpu.vector_store %arg9[%c68_168, %c0_169], %284 {strides = array<i32>} : memref<108x1024xbf16, #tpu.memory_space<vmem>>, vector<4x1024xbf16>,
    %c969_i32_170 = arith.constant 969 : i32
    %286 = tpu.dynamic_rotate %177 by %c969_i32_170 dim 1 : vector<4x1024xf32>, i32 -> vector<4x1024xf32>
    %c18_171 = arith.constant 18 : index
    %c0_172 = arith.constant 0 : index
    %287 = vector.load %arg1[%c18_171, %c0_172] : memref<27x1024xf32, #tpu.memory_space<vmem>>, vector<1x1024xf32>
    %288 = vector.broadcast %287 : vector<1x1024xf32> to vector<4x1024xf32>
    %289 = arith.mulf %286, %288 : vector<4x1024xf32>
    %290 = arith.truncf %289 : vector<4x1024xf32> to vector<4x1024xbf16>
    %c72_173 = arith.constant 72 : index
    %c0_174 = arith.constant 0 : index
    %291 = vector.load %arg9[%c72_173, %c0_174] : memref<108x1024xbf16, #tpu.memory_space<vmem>>, vector<4x1024xbf16>
    tpu.vector_store %arg9[%c72_173, %c0_174], %290 {strides = array<i32>} : memref<108x1024xbf16, #tpu.memory_space<vmem>>, vector<4x1024xbf16>,
    %c968_i32_175 = arith.constant 968 : i32
    %292 = tpu.dynamic_rotate %177 by %c968_i32_175 dim 1 : vector<4x1024xf32>, i32 -> vector<4x1024xf32>
    %c19_176 = arith.constant 19 : index
    %c0_177 = arith.constant 0 : index
    %293 = vector.load %arg1[%c19_176, %c0_177] : memref<27x1024xf32, #tpu.memory_space<vmem>>, vector<1x1024xf32>
    %294 = vector.broadcast %293 : vector<1x1024xf32> to vector<4x1024xf32>
    %295 = arith.mulf %292, %294 : vector<4x1024xf32>
    %296 = arith.truncf %295 : vector<4x1024xf32> to vector<4x1024xbf16>
    %c76_178 = arith.constant 76 : index
    %c0_179 = arith.constant 0 : index
    %297 = vector.load %arg9[%c76_178, %c0_179] : memref<108x1024xbf16, #tpu.memory_space<vmem>>, vector<4x1024xbf16>
    tpu.vector_store %arg9[%c76_178, %c0_179], %296 {strides = array<i32>} : memref<108x1024xbf16, #tpu.memory_space<vmem>>, vector<4x1024xbf16>,
    %c967_i32_180 = arith.constant 967 : i32
    %298 = tpu.dynamic_rotate %177 by %c967_i32_180 dim 1 : vector<4x1024xf32>, i32 -> vector<4x1024xf32>
    %c20_181 = arith.constant 20 : index
    %c0_182 = arith.constant 0 : index
    %299 = vector.load %arg1[%c20_181, %c0_182] : memref<27x1024xf32, #tpu.memory_space<vmem>>, vector<1x1024xf32>
    %300 = vector.broadcast %299 : vector<1x1024xf32> to vector<4x1024xf32>
    %301 = arith.mulf %298, %300 : vector<4x1024xf32>
    %302 = arith.truncf %301 : vector<4x1024xf32> to vector<4x1024xbf16>
    %c80_183 = arith.constant 80 : index
    %c0_184 = arith.constant 0 : index
    %303 = vector.load %arg9[%c80_183, %c0_184] : memref<108x1024xbf16, #tpu.memory_space<vmem>>, vector<4x1024xbf16>
    tpu.vector_store %arg9[%c80_183, %c0_184], %302 {strides = array<i32>} : memref<108x1024xbf16, #tpu.memory_space<vmem>>, vector<4x1024xbf16>,
    %c961_i32_185 = arith.constant 961 : i32
    %304 = tpu.dynamic_rotate %177 by %c961_i32_185 dim 1 : vector<4x1024xf32>, i32 -> vector<4x1024xf32>
    %c21_186 = arith.constant 21 : index
    %c0_187 = arith.constant 0 : index
    %305 = vector.load %arg1[%c21_186, %c0_187] : memref<27x1024xf32, #tpu.memory_space<vmem>>, vector<1x1024xf32>
    %306 = vector.broadcast %305 : vector<1x1024xf32> to vector<4x1024xf32>
    %307 = arith.mulf %304, %306 : vector<4x1024xf32>
    %308 = arith.truncf %307 : vector<4x1024xf32> to vector<4x1024xbf16>
    %c84_188 = arith.constant 84 : index
    %c0_189 = arith.constant 0 : index
    %309 = vector.load %arg9[%c84_188, %c0_189] : memref<108x1024xbf16, #tpu.memory_space<vmem>>, vector<4x1024xbf16>
    tpu.vector_store %arg9[%c84_188, %c0_189], %308 {strides = array<i32>} : memref<108x1024xbf16, #tpu.memory_space<vmem>>, vector<4x1024xbf16>,
    %c960_i32_190 = arith.constant 960 : i32
    %310 = tpu.dynamic_rotate %177 by %c960_i32_190 dim 1 : vector<4x1024xf32>, i32 -> vector<4x1024xf32>
    %c22_191 = arith.constant 22 : index
    %c0_192 = arith.constant 0 : index
    %311 = vector.load %arg1[%c22_191, %c0_192] : memref<27x1024xf32, #tpu.memory_space<vmem>>, vector<1x1024xf32>
    %312 = vector.broadcast %311 : vector<1x1024xf32> to vector<4x1024xf32>
    %313 = arith.mulf %310, %312 : vector<4x1024xf32>
    %314 = arith.truncf %313 : vector<4x1024xf32> to vector<4x1024xbf16>
    %c88_193 = arith.constant 88 : index
    %c0_194 = arith.constant 0 : index
    %315 = vector.load %arg9[%c88_193, %c0_194] : memref<108x1024xbf16, #tpu.memory_space<vmem>>, vector<4x1024xbf16>
    tpu.vector_store %arg9[%c88_193, %c0_194], %314 {strides = array<i32>} : memref<108x1024xbf16, #tpu.memory_space<vmem>>, vector<4x1024xbf16>,
    %c959_i32_195 = arith.constant 959 : i32
    %316 = tpu.dynamic_rotate %177 by %c959_i32_195 dim 1 : vector<4x1024xf32>, i32 -> vector<4x1024xf32>
    %c23_196 = arith.constant 23 : index
    %c0_197 = arith.constant 0 : index
    %317 = vector.load %arg1[%c23_196, %c0_197] : memref<27x1024xf32, #tpu.memory_space<vmem>>, vector<1x1024xf32>
    %318 = vector.broadcast %317 : vector<1x1024xf32> to vector<4x1024xf32>
    %319 = arith.mulf %316, %318 : vector<4x1024xf32>
    %320 = arith.truncf %319 : vector<4x1024xf32> to vector<4x1024xbf16>
    %c92_198 = arith.constant 92 : index
    %c0_199 = arith.constant 0 : index
    %321 = vector.load %arg9[%c92_198, %c0_199] : memref<108x1024xbf16, #tpu.memory_space<vmem>>, vector<4x1024xbf16>
    tpu.vector_store %arg9[%c92_198, %c0_199], %320 {strides = array<i32>} : memref<108x1024xbf16, #tpu.memory_space<vmem>>, vector<4x1024xbf16>,
    %c953_i32_200 = arith.constant 953 : i32
    %322 = tpu.dynamic_rotate %177 by %c953_i32_200 dim 1 : vector<4x1024xf32>, i32 -> vector<4x1024xf32>
    %c24_201 = arith.constant 24 : index
    %c0_202 = arith.constant 0 : index
    %323 = vector.load %arg1[%c24_201, %c0_202] : memref<27x1024xf32, #tpu.memory_space<vmem>>, vector<1x1024xf32>
    %324 = vector.broadcast %323 : vector<1x1024xf32> to vector<4x1024xf32>
    %325 = arith.mulf %322, %324 : vector<4x1024xf32>
    %326 = arith.truncf %325 : vector<4x1024xf32> to vector<4x1024xbf16>
    %c96_203 = arith.constant 96 : index
    %c0_204 = arith.constant 0 : index
    %327 = vector.load %arg9[%c96_203, %c0_204] : memref<108x1024xbf16, #tpu.memory_space<vmem>>, vector<4x1024xbf16>
    tpu.vector_store %arg9[%c96_203, %c0_204], %326 {strides = array<i32>} : memref<108x1024xbf16, #tpu.memory_space<vmem>>, vector<4x1024xbf16>,
    %c952_i32_205 = arith.constant 952 : i32
    %328 = tpu.dynamic_rotate %177 by %c952_i32_205 dim 1 : vector<4x1024xf32>, i32 -> vector<4x1024xf32>
    %c25_206 = arith.constant 25 : index
    %c0_207 = arith.constant 0 : index
    %329 = vector.load %arg1[%c25_206, %c0_207] : memref<27x1024xf32, #tpu.memory_space<vmem>>, vector<1x1024xf32>
    %330 = vector.broadcast %329 : vector<1x1024xf32> to vector<4x1024xf32>
    %331 = arith.mulf %328, %330 : vector<4x1024xf32>
    %332 = arith.truncf %331 : vector<4x1024xf32> to vector<4x1024xbf16>
    %c100_208 = arith.constant 100 : index
    %c0_209 = arith.constant 0 : index
    %333 = vector.load %arg9[%c100_208, %c0_209] : memref<108x1024xbf16, #tpu.memory_space<vmem>>, vector<4x1024xbf16>
    tpu.vector_store %arg9[%c100_208, %c0_209], %332 {strides = array<i32>} : memref<108x1024xbf16, #tpu.memory_space<vmem>>, vector<4x1024xbf16>,
    %c951_i32_210 = arith.constant 951 : i32
    %334 = tpu.dynamic_rotate %177 by %c951_i32_210 dim 1 : vector<4x1024xf32>, i32 -> vector<4x1024xf32>
    %c26_211 = arith.constant 26 : index
    %c0_212 = arith.constant 0 : index
    %335 = vector.load %arg1[%c26_211, %c0_212] : memref<27x1024xf32, #tpu.memory_space<vmem>>, vector<1x1024xf32>
    %336 = vector.broadcast %335 : vector<1x1024xf32> to vector<4x1024xf32>
    %337 = arith.mulf %334, %336 : vector<4x1024xf32>
    %338 = arith.truncf %337 : vector<4x1024xf32> to vector<4x1024xbf16>
    %c104_213 = arith.constant 104 : index
    %c0_214 = arith.constant 0 : index
    %339 = vector.load %arg9[%c104_213, %c0_214] : memref<108x1024xbf16, #tpu.memory_space<vmem>>, vector<4x1024xbf16>
    tpu.vector_store %arg9[%c104_213, %c0_214], %338 {strides = array<i32>} : memref<108x1024xbf16, #tpu.memory_space<vmem>>, vector<4x1024xbf16>,
    %c0_215 = arith.constant 0 : index
    %c0_216 = arith.constant 0 : index
    %340 = vector.load %arg9[%c0_215, %c0_216] : memref<108x1024xbf16, #tpu.memory_space<vmem>>, vector<108x1024xbf16>
    %cst_217 = arith.constant dense<0.000000e+00> : vector<4x1024xf32>
    %341 = tpu.matmul %178, %340, %cst_217 {dimension_numbers = #tpu.dot_dimension_numbers<[1], [0], [0], [1], [0, 0, 1, 1], [], []>} : vector<4x108xbf16>, vector<108x1024xbf16>, vector<4x1024xf32> -> vector<4x1024xf32>
    %c0_218 = arith.constant 0 : index
    %c0_219 = arith.constant 0 : index
    %342 = vector.load %arg6[%c0_218, %c0_219] : memref<4x1xf32, #tpu.memory_space<vmem>>, vector<4x1xf32>
    %343 = vector.broadcast %342 : vector<4x1xf32> to vector<4x1024xf32>
    %344 = arith.addf %341, %343 : vector<4x1024xf32>
    %c0_220 = arith.constant 0 : index
    %c0_221 = arith.constant 0 : index
    %345 = vector.load %arg8[%c0_220, %c0_221] : memref<4x1024xf32, #tpu.memory_space<vmem>>, vector<4x1024xf32>
    %346 = arith.addf %344, %345 : vector<4x1024xf32>
    %cst_222 = arith.constant 0.000000e+00 : f32
    %347 = vector.broadcast %cst_222 : f32 to vector<4x1024xf32>
    %348 = arith.maximumf %346, %347 : vector<4x1024xf32>
    %349 = vector.extract_strided_slice %348 {offsets = [0, 0], sizes = [4, 512], strides = [1, 1]} : vector<4x1024xf32> to vector<4x512xf32>
    %350 = arith.truncf %349 : vector<4x512xf32> to vector<4x512xbf16>
    %c0_223 = arith.constant 0 : index
    %c0_224 = arith.constant 0 : index
    %c0_225 = arith.constant 0 : index
    %351 = vector.load %arg7[%c0_223, %c0_224, %c0_225] : memref<2x4x512xbf16, #tpu.memory_space<vmem>>, vector<1x4x512xbf16>
    %352 = vector.shape_cast %351 : vector<1x4x512xbf16> to vector<4x512xbf16>
    %353 = vector.shape_cast %350 : vector<4x512xbf16> to vector<1x4x512xbf16>
    tpu.vector_store %arg7[%c0_223, %c0_224, %c0_225], %353 {strides = array<i32>} : memref<2x4x512xbf16, #tpu.memory_space<vmem>>, vector<1x4x512xbf16>,
    %354 = vector.extract_strided_slice %348 {offsets = [0, 512], sizes = [4, 512], strides = [1, 1]} : vector<4x1024xf32> to vector<4x512xf32>
    %355 = arith.truncf %354 : vector<4x512xf32> to vector<4x512xbf16>
    %c1_226 = arith.constant 1 : index
    %c0_227 = arith.constant 0 : index
    %c0_228 = arith.constant 0 : index
    %356 = vector.load %arg7[%c1_226, %c0_227, %c0_228] : memref<2x4x512xbf16, #tpu.memory_space<vmem>>, vector<1x4x512xbf16>
    %357 = vector.shape_cast %356 : vector<1x4x512xbf16> to vector<4x512xbf16>
    %358 = vector.shape_cast %355 : vector<4x512xbf16> to vector<1x4x512xbf16>
    tpu.vector_store %arg7[%c1_226, %c0_227, %c0_228], %358 {strides = array<i32>} : memref<2x4x512xbf16, #tpu.memory_space<vmem>>, vector<1x4x512xbf16>,
    return
  }
  func.func @transform_0(%arg0: i32) -> (i32, i32) {
    %c0_i32 = arith.constant 0 : i32
    %c0_i32_0 = arith.constant 0 : i32
    %c0_i32_1 = arith.constant 0 : i32
    return %c0_i32, %c0_i32_0 : i32, i32
  }
  func.func @transform_1(%arg0: i32) -> (i32, i32, i32) {
    %c0_i32 = arith.constant 0 : i32
    %c0_i32_0 = arith.constant 0 : i32
    %c0_i32_1 = arith.constant 0 : i32
    return %arg0, %c0_i32, %c0_i32_0 : i32, i32, i32
  }
  func.func @transform_2(%arg0: i32) -> (i32, i32) {
    %c0_i32 = arith.constant 0 : i32
    %c0_i32_0 = arith.constant 0 : i32
    %c0_i32_1 = arith.constant 0 : i32
    return %c0_i32, %c0_i32_0 : i32, i32
  }
  func.func @transform_3(%arg0: i32) -> (i32, i32) {
    %c0_i32 = arith.constant 0 : i32
    %c0_i32_0 = arith.constant 0 : i32
    %c0_i32_1 = arith.constant 0 : i32
    return %c0_i32, %c0_i32_0 : i32, i32
  }
  func.func @transform_4(%arg0: i32) -> (i32, i32) {
    %c0_i32 = arith.constant 0 : i32
    %c0_i32_0 = arith.constant 0 : i32
    %c0_i32_1 = arith.constant 0 : i32
    return %c0_i32, %c0_i32_0 : i32, i32
  }
  func.func @transform_5(%arg0: i32) -> (i32, i32) {
    %c0_i32 = arith.constant 0 : i32
    %c0_i32_0 = arith.constant 0 : i32
    %c0_i32_1 = arith.constant 0 : i32
    return %c0_i32, %c0_i32_0 : i32, i32
  }
  func.func @transform_6(%arg0: i32) -> (i32, i32, i32) {
    %c0_i32 = arith.constant 0 : i32
    %c0_i32_0 = arith.constant 0 : i32
    %c0_i32_1 = arith.constant 0 : i32
    return %arg0, %c0_i32, %c0_i32_0 : i32, i32, i32
  }
}

</mosaic_0001>

<bundles_post_ra>
// kernel: basic_block_forward.1
= control target key start
LH: loop header
LB: loop body
LE: loop exit
PB: predicated region body
PF: predicated region fallthrough
CT: control target
= control target key end

     0   :  { %s8403_s21 = smov 0   ;;  %s12974_s0 = inlined_call_operand.vmem [shape: f32[27,1024], index: 0, kind: input, shape index: {}]   ;;  %s12975_s1 = inlined_call_operand.vmem [shape: bf16[4,4,512], index: 1, kind: input, shape index: {}]   ;;  %s12976_s2 = inlined_call_operand.vmem [shape: bf16[4,108], index: 2, kind: input, shape index: {}]   ;;  %s12977_s3 = inlined_call_operand.vmem [shape: f32[4,1], index: 3, kind: input, shape index: {}]   ;;  %s12978_s4 = inlined_call_operand.vmem [shape: bf16[4,108], index: 4, kind: input, shape index: {}]   ;;  %s12979_s5 = inlined_call_operand.vmem [shape: f32[4,1], index: 5, kind: input, shape index: {}]   ;;  %s12980_s6 = inlined_call_operand.vmem [shape: bf16[4,4,512], index: 6, kind: output, shape index: {}]  }
   0x1 LB: > { %s7220_s22 = sadd.s32 4294967295, %s8347_s21   ;;  %p7224_p0 = scmp.ge.s32.totalorder %s8347_s21, 1  ;;  %s8347_s21 = sphi %s8403_s21, %s16_s21  }
   0x2   : > { %p214_p1 = scmp.lt.s32.totalorder %s8347_s21, 3 }
   0x4   : > { %p215_p2 = pnand %p7224_p0, %p214_p1 }
   0x6   : > { %218 = sbr.rel (%p215_p2) target bundleno = 1189 (0x4a5), region = 44 }
   0xb   : > { %s7225_s23 = sshll.u32 %s7220_s22, 1  ;;  %s8349_s28 = smov 57   ;;  %v305_v9 = vlaneseq  ;;  %v7308_v14 = vld [vmem:[%s12974_s0 + $0x45] ss:$8 sm:$0xf]  ;;  %vm3516_vm7 = vcmask 1045504  }
   0xc   : > { %p247_p3 = scmp.lt.s32.totalorder %s7225_s23, 3  ;;  %s8350_s29 = smov 56   ;;  %v7309_v15 = vld [vmem:[%s12974_s0 + $0x45] ss:$8 sm:$0xf0] }
   0xd   : > { %s8351_s30 = smov 55   ;;  %s12982_s7 = smov 65   ;;  %v8492_v12 = vshrl.u32 %v305_v9, 7  ;;  %v8518_v18 = vor.u32 %v7309_v15, %v7308_v14  ;;  %v7266_v23 = vld [vmem:[%s12974_s0 + $0x6] ss:$8 sm:$0xf] }
   0xe   : > { %s14067_s23 = smov (!%p247_p3, %s7225_s23), 3  ;;  %s8353_s8 = smov 63   ;;  %v7267_v24 = vld [vmem:[%s12974_s0 + $0x6] ss:$8 sm:$0xf0]  ;;  %v9063_v49 = vand.u32 127, %v305_v9 }
   0xf   : > { %s12981_s24 = sshll.u32 %s14067_s23, 3  ;;  %s12984_s9 = smov 71   ;;  %13252 = vst [vmem:[#allocation11_spill] sm:$0xff] %v8492_v12  ;;  %v8509_v16 = vsub.s32 0, %v8492_v12  ;;  %v8516_v17 = vsub.s32 1, %v8492_v12  ;;  %13255 = vst [vmem:[#allocation14_spill] sm:$0xff] %v8518_v18  ;;  %v8549_v29 = vor.u32 %v7267_v24, %v7266_v23 }
  0x10   : > { %s8419_s27 = scalar_lea.vmem %s12975_s1, %s12981_s24  ;;  %s12986_s10 = smov 64   ;;  %v7374_v26 = vld [vmem:[%s12974_s0 + $0xc0] ss:$8 sm:$0xf]  ;;  %v8560_v34 = vsub.s32 2, %v8492_v12  ;;  %v8563_v35 = vsub.s32 3, %v8492_v12 }
  0x11   : > { %v261_v0 = vld [vmem:[%s8419_s27] sm:$0xff]  ;;  %s8356_s11 = smov 72   ;;  %v7231_v7 = vld [vmem:[%s8419_s27 + $0x8] sm:$0xff]  ;;  %s8357_s12 = smov 119   ;;  %13253 = vst [vmem:[#allocation12_spill] sm:$0xff] %v8509_v16  ;;  %13254 = vst [vmem:[#allocation13_spill] sm:$0xff] %v8516_v17  ;;  %v1804_v19 = vrot.slane %v8518_v18, %v8509_v16  ;;  %v1808_v20 = vrot.slane %v8518_v18, %v8516_v17  ;;  %v1023_v38 = vrot.slane %v8549_v29, %v8516_v17 }
  0x12   : > { %v8422_v1 = vunpack.c.l.bf16 %v261_v0  ;;  %v8424_v2 = vunpack.c.h.bf16 %v261_v0  ;;  %v8475_v8 = vunpack.c.h.bf16 %v7231_v7  ;;  %s8358_s13 = smov 73   ;;  %v8485_v10 = vunpack.c.l.bf16 %v7231_v7  ;;  %s13122_s14 = smov 120   ;;  %v7375_v27 = vld [vmem:[%s12974_s0 + $0xc0] ss:$8 sm:$0xf0]  ;;  %13256 = vst [vmem:[#allocation15_spill] sm:$0xff] %v8549_v29 }
  0x13   : > { %s8360_s19 = smov 121   ;;  %v1833_v21 = vcombine.low %v1804_v19, %v1808_v20  ;;  %s8361_s27 = smov 1   ;;  %v7272_v30 = vld [vmem:[%s12974_s0 + $0x7] ss:$8 sm:$0xf]  ;;  %v8557_v33 = vor.u32 %v7375_v27, %v7374_v26  ;;  %vm13115_vm0 = vcmp.lt.s32.totalorder %v9063_v49, 57 }
  0x14   : > { %13245 = vst [vmem:[#allocation4_spill] sm:$0xff] %v8422_v1  ;;  %13246 = vst [vmem:[#allocation5_spill] sm:$0xff] %v8424_v2  ;;  %v8428_v3 = vcombine.high %v8422_v1, %v8422_v1  ;;  %v8432_v4 = vcombine.high %v8424_v2, %v8424_v2  ;;  %v8489_v11 = vcombine.high %v8475_v8, %v8475_v8  ;;  %v7273_v31 = vld [vmem:[%s12974_s0 + $0x7] ss:$8 sm:$0xf0]  ;;  %s13118_s15 = smov 127  }
  0x15   : > { %13249 = vst [vmem:[#allocation8_spill] sm:$0xff] %v8475_v8  ;;  %13250 = vst [vmem:[#allocation9_spill] sm:$0xff] %v8485_v10  ;;  %v1841_v22 = vmul.f32 %v1833_v21, %v8422_v1  ;;  %v8569_v36 = vor.u32 %v7273_v31, %v7272_v30  ;;  %v7380_v39 = vld [vmem:[%s12974_s0 + $0xc1] ss:$8 sm:$0xf]  ;;  %v2915_v41 = vrot.slane %v8557_v33, %v8509_v16  ;;  %s13126_s22 = smov 7  }
  0x16   : > { %13247 = vst [vmem:[#allocation6_spill] sm:$0xff] %v8428_v3  ;;  %13248 = vst [vmem:[#allocation7_spill] sm:$0xff] %v8432_v4  ;;  %v8436_v5 = vpack.i.bf16 %v8428_v3, %v8422_v1  ;;  %v8444_v6 = vpack.i.bf16 %v8432_v4, %v8424_v2  ;;  %v8500_v13 = vpack.i.bf16 %v8489_v11, %v8485_v10  ;;  %v7381_v40 = vld [vmem:[%s12974_s0 + $0xc1] ss:$8 sm:$0xf0]  ;;  %s13124_s24 = smov 8  }
  0x17   : > { %13251 = vst [vmem:[#allocation10_spill] sm:$0xff] %v8489_v11  ;;  %v8541_v25 = vpack.i.bf16 %v8424_v2, %v8489_v11  ;;  %v1849_v28 = vcombine.high %v1841_v22, %v1841_v22  ;;  %13257 = vst [vmem:[#allocation16_spill] sm:$0xff] %v8557_v33  ;;  %v8593_v45 = vcombine.high %v8485_v10, %v8485_v10  ;;  %v7278_v50 = vld [vmem:[%s12974_s0 + $0x40] ss:$8 sm:$0xf]  ;;  %s13279_s17 = smov 65  }
  0x18   : > { %7943 = vrot.lane.b32.xlu1 %v8436_v5, %s8349_s28  ;;  %7933 = vrot.lane.b32.xlu0 %v8436_v5, %s8350_s29  ;;  %v1137_v46 = vrot.slane %v8569_v36, %v8516_v17  ;;  %v8597_v47 = vor.u32 %v7381_v40, %v7380_v39  ;;  %v7279_v51 = vld [vmem:[%s12974_s0 + $0x40] ss:$8 sm:$0xf0]  ;;  %v7386_v52 = vld [vmem:[%s12974_s0 + $0xc2] ss:$8 sm:$0xf]  ;;  %v8162_v57 = vpack.i.bf16 %v8485_v10, %v8432_v4 }
  0x19   : > { %v7741_v32 = vpack.c.bf16 %v1849_v28, %v1841_v22  ;;  %13258 = vst [vmem:[#allocation17_spill] sm:$0xff] %v8593_v45  ;;  %v7387_v53 = vld [vmem:[%s12974_s0 + $0xc2] ss:$8 sm:$0xf0]  ;;  %v8621_v54 = vpack.i.bf16 %v8593_v45, %v8485_v10  ;;  %v8633_v58 = vpack.i.bf16 %v8475_v8, %v8593_v45  ;;  %v8649_v0 = vor.u32 %v7279_v51, %v7278_v50  ;;  %s13280_s18 = smov 64   ;;  %s13281_s20 = smov 71  }
  0x1a   : > { %v7248_v55 = vld [vmem:[%s12974_s0 + $0x3] ss:$8 sm:$0xf]  ;;  %v7356_v59 = vld [vmem:[%s12974_s0 + $0x85] ss:$8 sm:$0xf] }
  0x1b   : > { %v1885_v37 = vrot.slane %v7741_v32, 6  ;;  %v7249_v56 = vld [vmem:[%s12974_s0 + $0x3] ss:$8 sm:$0xf0]  ;;  %13259 = vst [vmem:[#allocation18_spill] sm:$0xff] %v8649_v0  ;;  %vm13114_vm1 = vcmp.lt.s32.totalorder %v9063_v49, 56 }
  0x1c   : > { %7948 = vrot.lane.b32.xlu1 %v8444_v6, %s8349_s28  ;;  %7938 = vrot.lane.b32.xlu0 %v8444_v6, %s8350_s29  ;;  %v7357_v60 = vld [vmem:[%s12974_s0 + $0x85] ss:$8 sm:$0xf0]  ;;  %v7368_v7 = vld [vmem:[%s12974_s0 + $0x87] ss:$8 sm:$0xf]  ;;  %v8665_v19 = vor.u32 %v7249_v56, %v7248_v55 }
  0x1d   : > { %1893 = vst [vmem:[#allocation3 + $0xe8] sm:$0xcc] %v1885_v37  ;;  %v7260_v61 = vld [vmem:[%s12974_s0 + $0x5] ss:$8 sm:$0xf]  ;;  %v8671_v22 = vor.u32 %v7357_v60, %v7356_v59  ;;  %vm13059_vm2 = vcmp.lt.s32.totalorder %v9063_v49, 55 }
  0x1e   : > { %v7261_v62 = vld [vmem:[%s12974_s0 + $0x5] ss:$8 sm:$0xf0]  ;;  %v7369_v14 = vld [vmem:[%s12974_s0 + $0x87] ss:$8 sm:$0xf0] }
  0x1f   : > { %13261 = vst [vmem:[#allocation20_spill] sm:$0xff] %v8665_v19  ;;  %13262 = vst [vmem:[#allocation21_spill] sm:$0xff] %v8671_v22  ;;  %v8673_v23 = vor.u32 %v7261_v62, %v7260_v61  ;;  %v8675_v24 = vor.u32 %v7369_v14, %v7368_v7  ;;  %v7242_v26 = vld [vmem:[%s12974_s0 + $0x2] ss:$8 sm:$0xf]  ;;  %vm13074_vm3 = vcmp.lt.s32.totalorder %v9063_v49, 65 }
  0x20   : > { %7958 = vrot.lane.b32.xlu1 %v8444_v6, %s8351_s30  ;;  %7953 = vrot.lane.b32.xlu0 %v8436_v5, %s8351_s30  ;;  %v7243_v27 = vld [vmem:[%s12974_s0 + $0x2] ss:$8 sm:$0xf0]  ;;  %v7350_v37 = vld [vmem:[%s12974_s0 + $0x84] ss:$8 sm:$0xf] }
  0x21   : > { %13263 = vst [vmem:[#allocation22_spill] sm:$0xff] %v8673_v23  ;;  %13264 = vst [vmem:[#allocation23_spill] sm:$0xff] %v8675_v24  ;;  %v7351_v39 = vld [vmem:[%s12974_s0 + $0x84] ss:$8 sm:$0xf0]  ;;  %v8719_v60 = vor.u32 %v7243_v27, %v7242_v26  ;;  %vm884_vm4 = vcmp.lt.s32.totalorder %v9063_v49, 63 }
  0x22   : > { %v7362_v61 = vld [vmem:[%s12974_s0 + $0x86] ss:$8 sm:$0xf]  ;;  %v8733_v59 = vor.u32 %v7351_v39, %v7350_v37  ;;  %v7236_v26 = vld [vmem:[%s12974_s0 + $0x1] ss:$8 sm:$0xf] }
  0x23   : > { %13265 = vst [vmem:[#allocation24_spill] sm:$0xff] %v8719_v60  ;;  %v7363_v62 = vld [vmem:[%s12974_s0 + $0x86] ss:$8 sm:$0xf0]  ;;  %vm538_vm5 = vcmp.lt.s32.totalorder %v9063_v49, 71  ;;  %vm770_vm6 = vcmp.lt.s32.totalorder %v9063_v49, 64 }
  0x24   : > { %7968 = vrot.lane.b32.xlu1 %v8444_v6, %s12982_s7  ;;  %7963 = vrot.lane.b32.xlu0 %v8436_v5, %s12982_s7  ;;  %13266 = vst [vmem:[#allocation25_spill] sm:$0xff] %v8733_v59  ;;  %v7237_v27 = vld [vmem:[%s12974_s0 + $0x1] ss:$8 sm:$0xf0]  ;;  %vm420_vm8 = vcmp.lt.s32.totalorder %v9063_v49, 72  ;;  %vm2259_vm9 = vcmp.lt.s32.totalorder %v9063_v49, 119 }
  0x25   : > { %v7344_v37 = vld [vmem:[%s12974_s0 + $0x83] ss:$8 sm:$0xf]  ;;  %v7332_v55 = vld [vmem:[%s12974_s0 + $0x81] ss:$8 sm:$0xf]  ;;  %v8773_v51 = vor.u32 %v7237_v27, %v7236_v26 }
  0x26   : > { %v7345_v39 = vld [vmem:[%s12974_s0 + $0x83] ss:$8 sm:$0xf0]  ;;  %v7333_v14 = vld [vmem:[%s12974_s0 + $0x81] ss:$8 sm:$0xf0] }
  0x27   : > { %13267 = vst [vmem:[#allocation26_spill] sm:$0xff] %v8773_v51  ;;  %v316_v7 = vld [vmem:[%s12974_s0] ss:$8 sm:$0xf]  ;;  %v8799_v40 = vor.u32 %v7345_v39, %v7344_v37  ;;  %v8801_v31 = vor.u32 %v7333_v14, %v7332_v55  ;;  %v8818_v14 = vsub.s32 4, %v8492_v12  ;;  %v8863_v37 = vsub.s32 7, %v8492_v12 }
  0x28   : > { %7978 = vrot.lane.b32.xlu1 %v8444_v6, %s8353_s8  ;;  %7973 = vrot.lane.b32.xlu0 %v8436_v5, %s8353_s8  ;;  %v7338_v27 = vld [vmem:[%s12974_s0 + $0x82] ss:$8 sm:$0xf]  ;;  %v7326_v26 = vld [vmem:[%s12974_s0 + $0x80] ss:$8 sm:$0xf] }
  0x29   : > { %13268 = vst [vmem:[#allocation27_spill] sm:$0xff] %v8799_v40  ;;  %13269 = vst [vmem:[#allocation28_spill] sm:$0xff] %v8801_v31  ;;  %v7327_v50 = vld [vmem:[%s12974_s0 + $0x80] ss:$8 sm:$0xf0]  ;;  %vm307_vm10 = vcmp.lt.s32.totalorder %v9063_v49, 73 }
  0x2a   : > { %13270 = vst [vmem:[#allocation29_spill] sm:$0xff] %v8818_v14  ;;  %13271 = vst [vmem:[#allocation30_spill] sm:$0xff] %v8863_v37  ;;  %v7297_v28 = vld [vmem:[%s12974_s0 + $0x43] ss:$8 sm:$0xf0]  ;;  %vm2145_vm11 = vcmp.lt.s32.totalorder %v9063_v49, 120 }
  0x2b   : > { %v7291_v55 = vld [vmem:[%s12974_s0 + $0x42] ss:$8 sm:$0xf0]  ;;  %vm2027_vm12 = vcmp.lt.s32.totalorder %v9063_v49, 121  ;;  %vm1698_vm13 = vcmp.lt.s32.totalorder %v9063_v49, 1  ;;  %vm1913_vm14 = vcmp.lt.s32.totalorder %v9063_v49, 127 }
  0x2c   : > { %7988 = vrot.lane.b32.xlu1 %v8444_v6, %s12984_s9  ;;  %7983 = vrot.lane.b32.xlu0 %v8436_v5, %s12984_s9  ;;  %vm1348_vm15 = vcmp.lt.s32.totalorder %v9063_v49, 9  ;;  %s13729_s25 = smov 7  }
  0x30   : > { %7998 = vrot.lane.b32.xlu1 %v8444_v6, %s12986_s10  ;;  %7993 = vrot.lane.b32.xlu0 %v8436_v5, %s12986_s10 }
  0x34   : > { %8008 = vrot.lane.b32.xlu1 %v8444_v6, %s8356_s11  ;;  %8003 = vrot.lane.b32.xlu0 %v8436_v5, %s8356_s11 }
  0x38   : > { %8018 = vrot.lane.b32.xlu1 %v8444_v6, %s8357_s12  ;;  %8013 = vrot.lane.b32.xlu0 %v8436_v5, %s8357_s12 }
  0x3c   : > { %8028 = vrot.lane.b32.xlu1 %v8444_v6, %s8358_s13  ;;  %8023 = vrot.lane.b32.xlu0 %v8436_v5, %s8358_s13 }
  0x40   : > { %8038 = vrot.lane.b32.xlu1 %v8444_v6, %s13122_s14  ;;  %8033 = vrot.lane.b32.xlu0 %v8436_v5, %s13122_s14 }
  0x44   : > { %8048 = vrot.lane.b32.xlu1 %v8436_v5, %s8360_s19  ;;  %8043 = vrot.lane.b32.xlu0 %v8500_v13, %s8350_s29 }
  0x48   : > { %8058 = vrot.lane.b32.xlu1 %v8500_v13, %s8349_s28  ;;  %8053 = vrot.lane.b32.xlu0 %v8444_v6, %s8360_s19 }
  0x4c   : > { %8068 = vrot.lane.b32.xlu1 %v8436_v5, %s8361_s27  ;;  %8063 = vrot.lane.b32.xlu0 %v8500_v13, %s8351_s30 }
  0x50   : > { %8078 = vrot.lane.b32.xlu1 %v8436_v5, %s13118_s15  ;;  %8073 = vrot.lane.b32.xlu0 %v8541_v25, %s8361_s27 }
  0x54   : > { %8088 = vrot.lane.b32.xlu1 %v8500_v13, %s12982_s7  ;;  %8083 = vrot.lane.b32.xlu0 %v8444_v6, %s13118_s15  ;;  %s13120_s7 = smov 9   ;;  %v8651_v6 = vor.u32 %v7387_v53, %v7386_v52  ;;  %v7254_v52 = vld [vmem:[%s12974_s0 + $0x4] ss:$8 sm:$0xf] }
  0x55   : > { %v7255_v53 = vld [vmem:[%s12974_s0 + $0x4] ss:$8 sm:$0xf0] }
  0x56   : > { %13260 = vst [vmem:[#allocation19_spill] sm:$0xff] %v8651_v6  ;;  %v8747_v56 = vor.u32 %v7255_v53, %v7254_v52  ;;  %v8763_v53 = vor.u32 %v7363_v62, %v7362_v61  ;;  %v317_v61 = vld [vmem:[%s12974_s0] ss:$8 sm:$0xf0] }
  0x57   : > { %v8820_v39 = vor.u32 %v317_v61, %v316_v7  ;;  %v8836_v61 = vor.u32 %v7327_v50, %v7326_v26  ;;  %v7320_v62 = vld [vmem:[%s12974_s0 + $0x47] ss:$8 sm:$0xf]  ;;  %v7302_v26 = vld [vmem:[%s12974_s0 + $0x44] ss:$8 sm:$0xf] }
  0x58   : > { %8098 = vrot.lane.b32.xlu1 %v8436_v5, %s13120_s7  ;;  %8093 = vrot.lane.b32.xlu0 %v8500_v13, %s8353_s8  ;;  %v7303_v7 = vld [vmem:[%s12974_s0 + $0x44] ss:$8 sm:$0xf0]  ;;  %v7314_v50 = vld [vmem:[%s12974_s0 + $0x46] ss:$8 sm:$0xf] }
  0x59   : > { %v8891_v52 = vor.u32 %v7303_v7, %v7302_v26  ;;  %v7284_v7 = vld [vmem:[%s12974_s0 + $0x41] ss:$8 sm:$0xf]  ;;  %v7296_v26 = vld [vmem:[%s12974_s0 + $0x43] ss:$8 sm:$0xf] }
  0x5a   : > { %v8965_v20 = vor.u32 %v7297_v28, %v7296_v26  ;;  %v1816_v28 = vrot.slane %v8518_v18, %v8563_v35 }
  0x5c   : > { %8108 = vrot.lane.b32.xlu1 %v8436_v5, %s13126_s22  ;;  %8103 = vrot.lane.b32.xlu0 %v8541_v25, %s13120_s7  ;;  %13275 = vst [vmem:[#allocation34_spill] sm:$0xff] %v8965_v20 }
  0x60   : > { %8118 = vrot.lane.b32.xlu1 %v8500_v13, %s12984_s9  ;;  %8113 = vrot.lane.b32.xlu0 %v8541_v25, %s13126_s22 }
  0x64   : > { %8128 = vrot.lane.b32.xlu1 %v8436_v5, %s13124_s24  ;;  %8123 = vrot.lane.b32.xlu0 %v8500_v13, %s12986_s10  ;;  %v7339_v5 = vld [vmem:[%s12974_s0 + $0x82] ss:$8 sm:$0xf0] }
  0x65   : > { %v8828_v32 = vor.u32 %v7339_v5, %v7338_v27  ;;  %v7321_v5 = vld [vmem:[%s12974_s0 + $0x47] ss:$8 sm:$0xf0]  ;;  %v7315_v27 = vld [vmem:[%s12974_s0 + $0x46] ss:$8 sm:$0xf0] }
  0x66   : > { %v8877_v30 = vor.u32 %v7321_v5, %v7320_v62  ;;  %v8994_v5 = vsub.s32 5, %v8492_v12 }
  0x68   : > { %8138 = vrot.lane.b32.xlu1 %v8500_v13, %s8356_s11  ;;  %8133 = vrot.lane.b32.xlu0 %v8541_v25, %s13124_s24  ;;  %13272 = vst [vmem:[#allocation31_spill] sm:$0xff] %v8877_v30  ;;  %13276 = vst [vmem:[#allocation35_spill] sm:$0xff] %v8994_v5 }
  0x6c   : > { %8148 = vrot.lane.b32.xlu1 %v8500_v13, %s8358_s13  ;;  %8143 = vrot.lane.b32.xlu0 %v8621_v54, %s8357_s12  ;;  %v8909_v13 = vor.u32 %v7315_v27, %v7314_v50  ;;  %v7285_v27 = vld [vmem:[%s12974_s0 + $0x41] ss:$8 sm:$0xf0] }
  0x6d   : > { %v8963_v21 = vor.u32 %v7285_v27, %v7284_v7  ;;  %v1812_v7 = vrot.slane %v8518_v18, %v8560_v34  ;;  %v13289_v18 = vrot.slane %v8569_v36, %v8563_v35 }
  0x6e   : > { %13273 = vst [vmem:[#allocation32_spill] sm:$0xff] %v8909_v13  ;;  %v13303_v13 = vrot.slane %v8665_v19, %v8563_v35 }
  0x6f   : > { %13274 = vst [vmem:[#allocation33_spill] sm:$0xff] %v8963_v21  ;;  %v1834_v27 = vcombine.low %v1812_v7, %v1816_v28  ;;  %v13284_v28 = vrot.slane %v8549_v29, %v8560_v34 }
  0x70   : > { %8158 = vrot.lane.b32.xlu1 %v8621_v54, %s8360_s19  ;;  %8153 = vrot.lane.b32.xlu0 %v8621_v54, %s13122_s14 }
  0x71   : > { %v1842_v7 = vmul.f32 %v1834_v27, %v8424_v2  ;;  %v9028_v27 = vsub.s32 6, %v8492_v12 }
  0x73   : > { %13278 = vst [vmem:[#allocation37_spill] sm:$0xff] %v9028_v27  ;;  %v1850_v26 = vcombine.high %v1842_v7, %v1842_v7 }
  0x74   : > { %1905 = vrot.lane.b32.xlu1 %v8485_v10, %s13118_s15  ;;  %8163 = vrot.lane.b32.xlu0 %v8162_v57, %s8361_s27  ;;  %v7290_v57 = vld [vmem:[%s12974_s0 + $0x42] ss:$8 sm:$0xf] }
  0x75   : > { %v8998_v50 = vor.u32 %v7291_v55, %v7290_v57  ;;  %v7742_v9 = vpack.c.bf16 %v1850_v26, %v1842_v7 }
  0x77   : > { %13277 = vst [vmem:[#allocation36_spill] sm:$0xff] %v8998_v50  ;;  %v1886_v7 = vrot.slane %v7742_v9, 6 }
  0x78   : > { %1338 = vrot.lane.b32.xlu1 %v8432_v4, %s13120_s7  ;;  %8168 = vrot.lane.b32.xlu0 %v8633_v58, %s8350_s29 }
  0x79   : > { %1894 = vst [vmem:[#allocation3 + $0xf8] sm:$0xcc] %v1886_v7 }
  0x7c   : > { %8173 = vrot.lane.b32.xlu1 %v8633_v58, %s8349_s28  ;;  %1570 = vrot.lane.b32.xlu0 %v8432_v4, %s13126_s22 }
  0x80   : > { %1456 = vrot.lane.b32.xlu1 %v8432_v4, %s13124_s24  ;;  %8178 = vrot.lane.b32.xlu0 %v8633_v58, %s8351_s30  ;;  %v13285_v4 = vrot.slane %v8549_v29, %v8563_v35 }
  0x84   : > { %8188 = vrot.lane.b32.xlu1 %v8633_v58, %s8353_s8  ;;  %8183 = vrot.lane.b32.xlu0 %v8633_v58, %s13279_s17 }
  0x88   : > { %8198 = vrot.lane.b32.xlu1 %v8633_v58, %s13280_s18  ;;  %8193 = vrot.lane.b32.xlu0 %v8633_v58, %s13281_s20 }
  0x8a   : > { %v9145_v55 = vpop.permute.xlu1 %7943  ;;  %v9147_v9 = vpop.permute.xlu0 %7933 }
  0x8b   : > { %v7946_v48 = vunpack.i.h.bf16 %v9145_v55  ;;  %v12988_v62 = vunpack.i.l.bf16 %v9145_v55  ;;  %v7936_v25 = vunpack.i.h.bf16 %v9147_v9  ;;  %v12989_v57 = vunpack.i.l.bf16 %v9147_v9 }
  0x8c   : > { %2255 = vrot.lane.b32.xlu1 %v8475_v8, %s8357_s12  ;;  %8203 = vrot.lane.b32.xlu0 %v8633_v58, %s8356_s11 }
  0x8d   : > { %v1009_v7 = vsel %vm13115_vm0, %v12988_v62, %v7946_v48  ;;  %v1123_v44 = vsel %vm13114_vm1, %v12989_v57, %v7936_v25 }
  0x8e   : > { %v9187_v26 = vmul.f32 %v1023_v38, %v1009_v7  ;;  %v2952_v15 = vmul.f32 %v2915_v41, %v1009_v7  ;;  %v9195_v62 = vmul.f32 %v1137_v46, %v1123_v44  ;;  %v9197_v57 = vpop.permute.xlu1 %7948  ;;  %v9199_v43 = vpop.permute.xlu0 %7938  ;;  %v13282_v7 = vrot.slane %v8597_v47, %v8509_v16 }
  0x8f   : > { %v12995_v42 = vunpack.i.h.bf16 %v9197_v57  ;;  %v7950_v38 = vunpack.i.l.bf16 %v9197_v57  ;;  %v7940_v41 = vunpack.i.l.bf16 %v9199_v43 }
  0x90   : > { %v3041_v46 = vmul.f32 %v13282_v7, %v1123_v44  ;;  %2141 = vrot.lane.b32.xlu1 %v8475_v8, %s13122_s14  ;;  %8208 = vrot.lane.b32.xlu0 %v8633_v58, %s8358_s13  ;;  %v13283_v7 = vunpack.i.h.bf16 %v9199_v43 }
  0x91   : > { %v1007_v12 = vsel %vm13115_vm0, %v7950_v38, %v12995_v42  ;;  %v1008_v44 = vsel %vm13115_vm0, %v7946_v48, %v7950_v38  ;;  %v1122_v1 = vsel %vm13114_vm1, %v7936_v25, %v7940_v41  ;;  %v13286_v42 = vrot.slane %v8557_v33, %v8516_v17 }
  0x92   : > { %v1121_v3 = vsel %vm13114_vm1, %v7940_v41, %v13283_v7  ;;  %v1058_v63 = vmul.f32 %v13284_v28, %v1008_v44  ;;  %v1059_v2 = vmul.f32 %v13285_v4, %v1007_v12  ;;  %v9240_v38 = vpop.permute.xlu1 %7958  ;;  %v9242_v10 = vpop.permute.xlu0 %7953  ;;  %v13287_v25 = vrot.slane %v8557_v33, %v8560_v34 }
  0x93   : > { %v2953_v48 = vmul.f32 %v13286_v42, %v1008_v44  ;;  %v13288_v28 = vrot.slane %v8569_v36, %v8560_v34  ;;  %v1173_v42 = vmul.f32 %v13289_v18, %v1121_v3  ;;  %v13290_v44 = vrot.slane %v8597_v47, %v8516_v17 }
  0x94   : > { %v9249_v41 = vmul.f32 %v13287_v25, %v1007_v12  ;;  %v7714_v7 = vpack.c.bf16 %v1059_v2, %v1058_v63  ;;  %v13007_v21 = vunpack.i.h.bf16 %v9240_v38  ;;  %v7960_v12 = vunpack.i.l.bf16 %v9240_v38  ;;  %1692 = vrot.lane.b32.xlu1 %v8593_v45, %s8361_s27  ;;  %2023 = vrot.lane.b32.xlu0 %v8475_v8, %s8360_s19 }
  0x95   : > { %v1172_v4 = vmul.f32 %v13288_v28, %v1122_v1  ;;  %v3042_v50 = vmul.f32 %v13290_v44, %v1122_v1  ;;  %v7785_v20 = vpack.c.bf16 %v2953_v48, %v2952_v15  ;;  %v7956_v28 = vunpack.i.h.bf16 %v9242_v10 }
  0x96   : > { %v13006_v1 = vunpack.i.l.bf16 %v9242_v10  ;;  %1097 = vst [vmem:[#allocation3 + $0x150] sm:$0x33] %v7714_v7  ;;  %v13291_v2 = vrot.slane %v8597_v47, %v8560_v34  ;;  %v1239_v15 = vsel %vm13059_vm2, %v7960_v12, %v13007_v21  ;;  %v9278_v48 = vpop.permute.xlu1 %7968  ;;  %v13298_v21 = vrot.slane %v8651_v6, %v8509_v16 }
  0x97   : > { %v7718_v25 = vpack.c.bf16 %v1173_v42, %v1172_v4  ;;  %v7789_v18 = vpack.c.bf16 %v3042_v50, %v3041_v46  ;;  %2992 = vst [vmem:[#allocation3 + $0x128] sm:$0x33] %v7785_v20  ;;  %13292 = vst [vmem:[#allocation38_spill] sm:$0xff] %v9278_v48  ;;  %v9280_v4 = vpop.permute.xlu0 %7963  ;;  %v13297_v20 = vrot.slane %v8651_v6, %v8516_v17 }
  0x98   : > { %v9272_v63 = vmul.f32 %v13291_v2, %v1121_v3  ;;  %13293 = vst [vmem:[#allocation39_spill] sm:$0xff] %v9280_v4  ;;  %v13294_v3 = vrot.slane %v8649_v0, %v8563_v35  ;;  %v1240_v2 = vsel %vm13059_vm2, %v7956_v28, %v7960_v12  ;;  %v1241_v50 = vsel %vm13059_vm2, %v13006_v1, %v7956_v28 }
  0x99   : > { %v1207_v46 = vrot.slane %v7718_v25, 6  ;;  %v3077_v7 = vrot.slane %v7789_v18, 6  ;;  %v7970_v18 = vunpack.i.l.bf16 %v9278_v48  ;;  %8218 = vrot.lane.b32.xlu1 %v8621_v54, %s13120_s7  ;;  %8213 = vrot.lane.b32.xlu0 %v8633_v58, %s13118_s15  ;;  %v13295_v12 = vrot.slane %v8651_v6, %v8560_v34 }
  0x9a   : > { %v1291_v42 = vmul.f32 %v13294_v3, %v1239_v15  ;;  %v13296_v28 = vrot.slane %v8649_v0, %v8560_v34  ;;  %v3135_v1 = vmul.f32 %v13297_v20, %v1240_v2  ;;  %v3134_v25 = vmul.f32 %v13298_v21, %v1241_v50  ;;  %v9329_v45 = vpop.permute.xlu1 %7978 }
  0x9b   : > { %1215 = vst [vmem:[#allocation3 + $0x150] sm:$0xcc] %v1207_v46  ;;  %3085 = vst [vmem:[#allocation3 + $0x128] sm:$0xcc] %v3077_v7  ;;  %v9307_v3 = vmul.f32 %v13295_v12, %v1239_v15  ;;  %v13299_v58 = vrot.slane %v8649_v0, %v8516_v17  ;;  %v13300_v15 = vunpack.i.h.bf16 %v9278_v48  ;;  %v7966_v12 = vunpack.i.h.bf16 %v9280_v4  ;;  %v9331_v20 = vpop.permute.xlu0 %7973 }
  0x9c   : > { %v1290_v44 = vmul.f32 %v13296_v28, %v1240_v2  ;;  %v13012_v28 = vunpack.i.l.bf16 %v9280_v4  ;;  %13301 = vst [vmem:[#allocation40_spill] sm:$0xff] %v9329_v45  ;;  %13302 = vst [vmem:[#allocation41_spill] sm:$0xff] %v9331_v20  ;;  %v7793_v21 = vpack.c.bf16 %v3135_v1, %v3134_v25  ;;  %v13306_v25 = vrot.slane %v8665_v19, %v8560_v34 }
  0x9d   : > { %v9321_v46 = vmul.f32 %v13299_v58, %v1241_v50  ;;  %v657_v7 = vsel %vm13074_vm3, %v7970_v18, %v13300_v15  ;;  %v658_v15 = vsel %vm13074_vm3, %v7966_v12, %v7970_v18  ;;  %8228 = vrot.lane.b32.xlu1 %v8621_v54, %s13124_s24  ;;  %8223 = vrot.lane.b32.xlu0 %v8621_v54, %s13126_s22 }
  0x9e   : > { %v7722_v2 = vpack.c.bf16 %v1291_v42, %v1290_v44  ;;  %v709_v50 = vmul.f32 %v13303_v13, %v657_v7  ;;  %v659_v48 = vsel %vm13074_vm3, %v13012_v28, %v7966_v12  ;;  %v7980_v42 = vunpack.i.l.bf16 %v9329_v45  ;;  %3174 = vst [vmem:[#allocation3 + $0x58] sm:$0x33] %v7793_v21 }
  0x9f   : > { %v13304_v13 = vrot.slane %v8671_v22, %v8560_v34  ;;  %v708_v18 = vmul.f32 %v13306_v25, %v658_v15  ;;  %v13307_v12 = vrot.slane %v8671_v22, %v8516_v17  ;;  %v13308_v28 = vrot.slane %v8671_v22, %v8509_v16 }
  0xa0   : > { %1329 = vst [vmem:[#allocation3 + $0x188] sm:$0x33] %v7722_v2  ;;  %v13309_v54 = vrot.slane %v8665_v19, %v8516_v17  ;;  %v13016_v25 = vunpack.i.l.bf16 %v9331_v20  ;;  %v13313_v22 = vrot.slane %v8673_v23, %v8563_v35 }
  0xa1   : > { %v9354_v44 = vmul.f32 %v13304_v13, %v657_v7  ;;  %v2678_v58 = vmul.f32 %v13307_v12, %v658_v15  ;;  %v2677_v1 = vmul.f32 %v13308_v28, %v659_v48  ;;  %v13311_v7 = vunpack.i.h.bf16 %v9329_v45  ;;  %v9378_v15 = vpop.permute.xlu0 %7983  ;;  %2143 = vrot.lane.b32.xlu1 %v8489_v11, %s13122_s14  ;;  %2257 = vrot.lane.b32.xlu0 %v8489_v11, %s8357_s12 }
  0xa2   : > { %v9368_v2 = vmul.f32 %v13309_v54, %v659_v48  ;;  %v7976_v13 = vunpack.i.h.bf16 %v9331_v20  ;;  %v7702_v12 = vpack.c.bf16 %v709_v50, %v708_v18  ;;  %v13315_v18 = vrot.slane %v8675_v24, %v8516_v17 }
  0xa3   : > { %13305 = vst [vmem:[#allocation42_spill] sm:$0xff] %v9354_v44  ;;  %v889_v21 = vsel %vm884_vm4, %v7980_v42, %v13311_v7  ;;  %v9376_v44 = vpop.permute.xlu1 %7988  ;;  %v7773_v28 = vpack.c.bf16 %v2678_v58, %v2677_v1  ;;  %v13314_v1 = vrot.slane %v8673_v23, %v8560_v34  ;;  %v13316_v54 = vrot.slane %v8675_v24, %v8560_v34 }
  0xa4   : > { %13310 = vst [vmem:[#allocation43_spill] sm:$0xff] %v9368_v2  ;;  %13312 = vst [vmem:[#allocation44_spill] sm:$0xff] %v9376_v44  ;;  %v941_v48 = vmul.f32 %v13313_v22, %v889_v21  ;;  %v890_v7 = vsel %vm884_vm4, %v7976_v13, %v7980_v42  ;;  %v891_v45 = vsel %vm884_vm4, %v13016_v25, %v7976_v13  ;;  %v7990_v50 = vunpack.i.l.bf16 %v9376_v44 }
  0xa5   : > { %v743_v22 = vrot.slane %v7702_v12, 6  ;;  %v2713_v58 = vrot.slane %v7773_v28, 6  ;;  %v940_v42 = vmul.f32 %v13314_v1, %v890_v7  ;;  %v2860_v13 = vmul.f32 %v13315_v18, %v890_v7  ;;  %v9419_v4 = vpop.permute.xlu0 %7993  ;;  %1694 = vrot.lane.b32.xlu1 %v8475_v8, %s8361_s27  ;;  %2025 = vrot.lane.b32.xlu0 %v8489_v11, %s8360_s19 }
  0xa6   : > { %v9407_v25 = vmul.f32 %v13316_v54, %v889_v21  ;;  %v13318_v2 = vrot.slane %v8675_v24, %v8509_v16  ;;  %v13319_v12 = vunpack.i.h.bf16 %v9376_v44  ;;  %v7986_v1 = vunpack.i.h.bf16 %v9378_v15 }
  0xa7   : > { %v9417_v19 = vpop.permute.xlu1 %7998  ;;  %751 = vst [vmem:[#allocation3 + $0x168] sm:$0xcc] %v743_v22  ;;  %2721 = vst [vmem:[#allocation3 + $0x10] sm:$0xcc] %v2713_v58  ;;  %v7710_v7 = vpack.c.bf16 %v941_v48, %v940_v42  ;;  %v13321_v21 = vrot.slane %v8673_v23, %v8516_v17  ;;  %v13324_v58 = vrot.slane %v8719_v60, %v8560_v34 }
  0xa8   : > { %13317 = vst [vmem:[#allocation45_spill] sm:$0xff] %v9407_v25  ;;  %v2859_v20 = vmul.f32 %v13318_v2, %v891_v45  ;;  %v543_v28 = vsel %vm538_vm5, %v7990_v50, %v13319_v12  ;;  %13320 = vst [vmem:[#allocation46_spill] sm:$0xff] %v9417_v19  ;;  %v13323_v2 = vrot.slane %v8719_v60, %v8563_v35  ;;  %v13024_v12 = vunpack.i.l.bf16 %v9378_v15 }
  0xa9   : > { %v9424_v54 = vmul.f32 %v13321_v21, %v891_v45  ;;  %v544_v25 = vsel %vm538_vm5, %v7986_v1, %v7990_v50  ;;  %v8000_v22 = vunpack.i.l.bf16 %v9417_v19  ;;  %v8233_v45 = vld [vmem:[#allocation3 + $0x12c] ss:$-208 sps:$4 sm:$0x3f]   ;;  %v975_v48 = vrot.slane %v7710_v7, 6  ;;  %1344 = vrot.lane.b32.xlu1 %v8475_v8, %s13120_s7  ;;  %1911 = vrot.lane.b32.xlu0 %v8489_v11, %s13118_s15 }
  0xaa   : > { %v595_v18 = vmul.f32 %v13323_v2, %v543_v28  ;;  %v7781_v44 = vpack.c.bf16 %v2860_v13, %v2859_v20  ;;  %v594_v42 = vmul.f32 %v13324_v58, %v544_v25  ;;  %v13325_v20 = vrot.slane %v8733_v59, %v8516_v17  ;;  %v8235_v21 = vld [vmem:[#allocation3 + $0x128] ss:$-208 sps:$4 sm:$0x3f]   ;;  %7448 = vmatprep.subr.msk.bf16.mxu0 %vm3516_vm7, %v8233_v45 }
  0xab   : > { %13322 = vst [vmem:[#allocation47_spill] sm:$0xff] %v9424_v54  ;;  %v545_v13 = vsel %vm538_vm5, %v13024_v12, %v7986_v1  ;;  %v13326_v7 = vrot.slane %v8733_v59, %v8560_v34  ;;  %v13328_v58 = vrot.slane %v8733_v59, %v8509_v16  ;;  %v9462_v1 = vpop.permute.xlu1 %8008  ;;  %v9464_v12 = vpop.permute.xlu0 %8003  ;;  %983 = vst [vmem:[#allocation3 + $0x110] sm:$0xcc] %v975_v48  ;;  %v3518_v59 = vsel %vm3516_vm7, %v8235_v21, 0 }
  0xac   : > { %v2589_v50 = vmul.f32 %v13325_v20, %v544_v25  ;;  %v2895_v2 = vrot.slane %v7781_v44, 6  ;;  %v13329_v25 = vunpack.i.h.bf16 %v9417_v19  ;;  %13330 = vst [vmem:[#allocation49_spill] sm:$0xff] %v9462_v1  ;;  %13331 = vst [vmem:[#allocation50_spill] sm:$0xff] %v9464_v12  ;;  %v7698_v44 = vpack.c.bf16 %v595_v18, %v594_v42  ;;  %3544 = vmatpush1.bf16.msra.mxu0 %v3518_v59 }
  0xad   : > { %v9452_v24 = vmul.f32 %v13326_v7, %v543_v28  ;;  %v2588_v54 = vmul.f32 %v13328_v58, %v545_v13  ;;  %v13332_v28 = vrot.slane %v8719_v60, %v8516_v17  ;;  %v13333_v58 = vrot.slane %v8747_v56, %v8563_v35  ;;  %1462 = vrot.lane.b32.xlu1 %v8475_v8, %s13124_s24 }
  0xae   : > { %v775_v20 = vsel %vm770_vm6, %v8000_v22, %v13329_v25  ;;  %v7996_v25 = vunpack.i.h.bf16 %v9419_v4  ;;  %2903 = vst [vmem:[#allocation3 + $0x70] sm:$0xcc] %v2895_v2  ;;  %v13030_v48 = vunpack.i.h.bf16 %v9462_v1  ;;  %633 = vst [vmem:[#allocation3 + $0x168] sm:$0x33] %v7698_v44  ;;  %v8010_v42 = vunpack.i.l.bf16 %v9462_v1  ;;  %1576 = vrot.lane.b32.xlu0 %v8475_v8, %s13126_s22 }
  0xaf   : > { %13327 = vst [vmem:[#allocation48_spill] sm:$0xff] %v9452_v24  ;;  %v9470_v7 = vmul.f32 %v13332_v28, %v545_v13  ;;  %v827_v19 = vmul.f32 %v13333_v58, %v775_v20  ;;  %v7769_v45 = vpack.c.bf16 %v2589_v50, %v2588_v54  ;;  %v13028_v24 = vunpack.i.l.bf16 %v9419_v4  ;;  %v9503_v58 = vpop.permute.xlu1 %8018 }
  0xb0   : > { %v776_v18 = vsel %vm770_vm6, %v7996_v25, %v8000_v22  ;;  %v8006_v54 = vunpack.i.h.bf16 %v9464_v12  ;;  %v13334_v13 = vrot.slane %v8763_v53, %v8560_v34  ;;  %v13336_v2 = vrot.slane %v8747_v56, %v8560_v34  ;;  %13338 = vst [vmem:[#allocation52_spill] sm:$0xff] %v9503_v58 }
  0xb1   : > { %2628 = vst [vmem:[#allocation3 + $0x10] sm:$0x33] %v7769_v45  ;;  %v13337_v22 = vrot.slane %v8763_v53, %v8516_v17  ;;  %v777_v28 = vsel %vm770_vm6, %v13028_v24, %v7996_v25  ;;  %v9505_v45 = vpop.permute.xlu0 %8013  ;;  %v13341_v24 = vrot.slane %v8747_v56, %v8516_v17 }
  0xb2   : > { %v9491_v21 = vmul.f32 %v13334_v13, %v775_v20  ;;  %v826_v44 = vmul.f32 %v13336_v2, %v776_v18  ;;  %13339 = vst [vmem:[#allocation53_spill] sm:$0xff] %v9505_v45  ;;  %v13340_v20 = vrot.slane %v8763_v53, %v8509_v16  ;;  %v425_v2 = vsel %vm420_vm8, %v8010_v42, %v13030_v48 }
  0xb3   : > { %v2771_v59 = vmul.f32 %v13337_v22, %v776_v18  ;;  %v426_v18 = vsel %vm420_vm8, %v8006_v54, %v8010_v42  ;;  %v9521_v50 = vmul.f32 %v13341_v24, %v777_v28  ;;  %v13346_v24 = vunpack.i.l.bf16 %v9464_v12 }
  0xb4   : > { %13335 = vst [vmem:[#allocation51_spill] sm:$0xff] %v9491_v21  ;;  %v2770_v13 = vmul.f32 %v13340_v20, %v777_v28  ;;  %v7706_v25 = vpack.c.bf16 %v827_v19, %v826_v44  ;;  %v13343_v20 = vrot.slane %v8773_v51, %v8563_v35  ;;  %v13344_v21 = vrot.slane %v8773_v51, %v8560_v34 }
  0xb5   : > { %13342 = vst [vmem:[#allocation54_spill] sm:$0xff] %v9521_v50  ;;  %v13345_v19 = vrot.slane %v8799_v40, %v8516_v17  ;;  %v427_v28 = vsel %vm420_vm8, %v13346_v24, %v8006_v54  ;;  %v9551_v50 = vpop.permute.xlu1 %8028  ;;  %v9553_v54 = vpop.permute.xlu0 %8023  ;;  %v8016_v24 = vunpack.i.h.bf16 %v9505_v45 }
  0xb6   : > { %v477_v11 = vmul.f32 %v13343_v20, %v425_v2  ;;  %v476_v48 = vmul.f32 %v13344_v21, %v426_v18  ;;  %v7777_v42 = vpack.c.bf16 %v2771_v59, %v2770_v13  ;;  %865 = vst [vmem:[#allocation3 + $0x110] sm:$0x33] %v7706_v25  ;;  %v13347_v21 = vrot.slane %v8799_v40, %v8560_v34 }
  0xb7   : > { %v2496_v44 = vmul.f32 %v13345_v19, %v426_v18  ;;  %v13349_v13 = vrot.slane %v8799_v40, %v8509_v16  ;;  %v8020_v19 = vunpack.i.l.bf16 %v9503_v58  ;;  %13350 = vst [vmem:[#allocation56_spill] sm:$0xff] %v9551_v50  ;;  %v13035_v25 = vunpack.i.l.bf16 %v9505_v45 }
  0xb8   : > { %v9545_v22 = vmul.f32 %v13347_v21, %v425_v2  ;;  %v7694_v59 = vpack.c.bf16 %v477_v11, %v476_v48  ;;  %2810 = vst [vmem:[#allocation3 + $0x70] sm:$0x33] %v7777_v42  ;;  %v8030_v2 = vunpack.i.l.bf16 %v9551_v50  ;;  %v13351_v21 = vunpack.i.h.bf16 %v9503_v58 }
  0xb9   : > { %v2495_v18 = vmul.f32 %v13349_v13, %v427_v28  ;;  %v8026_v8 = vunpack.i.h.bf16 %v9553_v54  ;;  %v13352_v42 = vrot.slane %v8773_v51, %v8516_v17  ;;  %v2265_v20 = vsel %vm2259_vm9, %v8016_v24, %v8020_v19 }
  0xba   : > { %13348 = vst [vmem:[#allocation55_spill] sm:$0xff] %v9545_v22  ;;  %v511_v11 = vrot.slane %v7694_v59, 6  ;;  %v2264_v13 = vsel %vm2259_vm9, %v8020_v19, %v13351_v21  ;;  %v13354_v59 = vunpack.i.h.bf16 %v9551_v50  ;;  %v13355_v58 = vrot.slane %v8801_v31, %v8516_v17 }
  0xbb   : > { %v7765_v48 = vpack.c.bf16 %v2496_v44, %v2495_v18  ;;  %v9568_v22 = vmul.f32 %v13352_v42, %v427_v28  ;;  %v2266_v44 = vsel %vm2259_vm9, %v13035_v25, %v8016_v24  ;;  %v13356_v42 = vrot.slane %v8801_v31, %v8509_v16  ;;  %v9589_v24 = vpop.permute.xlu1 %8038  ;;  %v9591_v25 = vpop.permute.xlu0 %8033 }
  0xbc   : > { %v312_v18 = vsel %vm307_vm10, %v8030_v2, %v13354_v59  ;;  %519 = vst [vmem:[#allocation3 + $0x1b0] sm:$0xcc] %v511_v11  ;;  %v2314_v28 = vmul.f32 %v13355_v58, %v2265_v20  ;;  %v13357_v45 = vrot.slane %v8820_v39, %v8563_v35  ;;  %13358 = vst [vmem:[#allocation58_spill] sm:$0xff] %v9589_v24  ;;  %v13041_v20 = vunpack.i.l.bf16 %v9553_v54 }
  0xbd   : > { %13353 = vst [vmem:[#allocation57_spill] sm:$0xff] %v9568_v22  ;;  %v2531_v21 = vrot.slane %v7765_v48, 6  ;;  %v2313_v19 = vmul.f32 %v13356_v42, %v2266_v44  ;;  %13359 = vst [vmem:[#allocation59_spill] sm:$0xff] %v9591_v25  ;;  %v13360_v11 = vrot.slane %v8801_v31, %v8560_v34  ;;  %v313_v58 = vsel %vm307_vm10, %v8026_v8, %v8030_v2 }
  0xbe   : > { %v363_v22 = vmul.f32 %v13357_v45, %v312_v18  ;;  %v13362_v45 = vrot.slane %v8820_v39, %v8560_v34  ;;  %v13363_v50 = vrot.slane %v8828_v32, %v8516_v17 }
  0xbf   : > { %v9596_v48 = vmul.f32 %v13360_v11, %v2264_v13  ;;  %2539 = vst [vmem:[#allocation3 + $0x40] sm:$0xcc] %v2531_v21  ;;  %v7757_v59 = vpack.c.bf16 %v2314_v28, %v2313_v19  ;;  %v8040_v13 = vunpack.i.l.bf16 %v9589_v24  ;;  %v13364_v11 = vrot.slane %v8828_v32, %v8560_v34  ;;  %v3222_v31 = vld [vmem:[#allocation3 + $0x70] sm:$0xff]  ;;  %v9623_v1 = vpop.permute.xlu1 %8048 }
  0xc0   : > { %v362_v42 = vmul.f32 %v13362_v45, %v313_v58  ;;  %v2407_v12 = vmul.f32 %v13363_v50, %v313_v58  ;;  %v314_v21 = vsel %vm307_vm10, %v13041_v20, %v8026_v8  ;;  %v8036_v28 = vunpack.i.h.bf16 %v9591_v25  ;;  %13367 = vst [vmem:[#allocation62_spill] sm:$0xff] %v9623_v1 }
  0xc1   : > { %13361 = vst [vmem:[#allocation60_spill] sm:$0xff] %v9596_v48  ;;  %v9612_v2 = vmul.f32 %v13364_v11, %v312_v18  ;;  %v13045_v19 = vunpack.i.l.bf16 %v9591_v25  ;;  %v2349_v45 = vrot.slane %v7757_v59, 6  ;;  %v13366_v50 = vrot.slane %v8828_v32, %v8509_v16  ;;  %v3218_v48 = vld [vmem:[#allocation3 + $0x10] sm:$0xff]  ;;  %v9625_v18 = vpop.permute.xlu0 %8043 }
  0xc2   : > { %v7690_v44 = vpack.c.bf16 %v363_v22, %v362_v42  ;;  %v13368_v8 = vunpack.i.h.bf16 %v9589_v24  ;;  %v2151_v22 = vsel %vm2145_vm11, %v8036_v28, %v8040_v13  ;;  %v7433_v42 = vcombine.high %v3218_v48, %v3222_v31 }
  0xc3   : > { %13365 = vst [vmem:[#allocation61_spill] sm:$0xff] %v9612_v2  ;;  %v2406_v58 = vmul.f32 %v13366_v50, %v314_v21  ;;  %v2152_v59 = vsel %vm2145_vm11, %v13045_v19, %v8036_v28  ;;  %2357 = vst [vmem:[#allocation3] sm:$0xcc] %v2349_v45  ;;  %v13369_v50 = vrot.slane %v8820_v39, %v8516_v17  ;;  %v13044_v45 = vunpack.i.l.bf16 %v9623_v1 }
  0xc4   : > { %v2150_v20 = vsel %vm2145_vm11, %v8040_v13, %v13368_v8  ;;  %401 = vst [vmem:[#allocation3 + $0x1b0] sm:$0x33] %v7690_v44  ;;  %v13370_v8 = vrot.slane %v8836_v61, %v8516_v17  ;;  %v13371_v13 = vrot.slane %v8836_v61, %v8509_v16  ;;  %3545 = vmatprep.subr.bf16.mxu0 %v7433_v42  ;;  %v8051_v44 = vunpack.i.h.bf16 %v9623_v1 }
  0xc5   : > { %v9642_v11 = vmul.f32 %v13369_v50, %v314_v21  ;;  %v7761_v24 = vpack.c.bf16 %v2407_v12, %v2406_v58  ;;  %v7432_v28 = vcombine.low %v3218_v48, %v3222_v31  ;;  %v13049_v21 = vunpack.i.h.bf16 %v9625_v18 }
  0xc6   : > { %v2200_v2 = vmul.f32 %v13370_v8, %v2151_v22  ;;  %v2199_v25 = vmul.f32 %v13371_v13, %v2152_v59  ;;  %v13372_v12 = vrot.slane %v8836_v61, %v8560_v34  ;;  %v13047_v50 = vunpack.i.l.bf16 %v9625_v18  ;;  %v9660_v59 = vpop.permute.xlu1 %8058  ;;  %v9662_v8 = vpop.permute.xlu0 %8053 }
  0xc7   : > { %2446 = vst [vmem:[#allocation3 + $0x40] sm:$0x33] %v7761_v24  ;;  %3546 = vmatpush1.bf16.msra.mxu0 %v7432_v28  ;;  %v2034_v24 = vsel %vm2027_vm12, %v13044_v45, %v8051_v44  ;;  %v13373_v48 = vunpack.i.l.bf16 %v9147_v9  ;;  %v13374_v42 = vrot.slane %v8877_v30, %v8509_v16  ;;  %v13375_v9 = vunpack.i.h.bf16 %v9199_v43 }
  0xc8   : > { %v9657_v58 = vmul.f32 %v13372_v12, %v2150_v20  ;;  %v7753_v22 = vpack.c.bf16 %v2200_v2, %v2199_v25  ;;  %v13048_v20 = vunpack.i.h.bf16 %v9660_v59  ;;  %v13046_v2 = vunpack.i.l.bf16 %v9660_v59 }
  0xc9   : > { %v1124_v25 = vsel %vm13114_vm1, %v13049_v21, %v13373_v48  ;;  %v2081_v13 = vmul.f32 %v13374_v42, %v2034_v24  ;;  %v1120_v28 = vsel %vm13114_vm1, %v13375_v9, %v13047_v50  ;;  %v13376_v12 = vrot.slane %v8569_v36, %v8509_v16 }
  0xca   : > { %2239 = vst [vmem:[#allocation3] sm:$0x33] %v7753_v22  ;;  %v13377_v22 = vrot.slane %v8597_v47, %v8563_v35  ;;  %v13378_v24 = vrot.slane %v8597_v47, %v8863_v37  ;;  %v13379_v43 = vunpack.i.h.bf16 %v9197_v57  ;;  %v13382_v57 = vrot.slane %v8549_v29, %v8509_v16  ;;  %v9725_v50 = vpop.permute.xlu0 %8063 }
  0xcb   : > { %v1170_v48 = vmul.f32 %v13376_v12, %v1124_v25  ;;  %v13380_v12 = vunpack.i.l.bf16 %v9145_v55  ;;  %13384 = vst [vmem:[#allocation63_spill] sm:$0xff] %v9725_v50 }
  0xcc   : > { %v3044_v19 = vmul.f32 %v13377_v22, %v1120_v28  ;;  %v9699_v42 = vmul.f32 %v13378_v24, %v1124_v25  ;;  %v1006_v9 = vsel %vm13115_vm0, %v13379_v43, %v13046_v2  ;;  %v13381_v22 = vrot.slane %v8569_v36, %v8818_v14  ;;  %v8069_v2 = vpop.permute.xlu1 %8068 }
  0xcd   : > { %v1010_v45 = vsel %vm13115_vm0, %v13048_v20, %v13380_v12  ;;  %v7717_v25 = vpack.c.bf16 %v9195_v62, %v1170_v48  ;;  %v13383_v43 = vrot.slane %v8557_v33, %v8563_v35  ;;  %v13385_v20 = vrot.slane %v8549_v29, %v8818_v14 }
  0xce   : > { %v9716_v31 = vmul.f32 %v13381_v22, %v1120_v28  ;;  %v1056_v24 = vmul.f32 %v13382_v57, %v1010_v45  ;;  %v7790_v12 = vpack.c.bf16 %v3044_v19, %v9272_v63  ;;  %v13051_v62 = vunpack.i.h.bf16 %v9662_v8 }
  0xcf   : > { %v2955_v55 = vmul.f32 %v13383_v43, %v1006_v9  ;;  %v9731_v28 = vmul.f32 %v13385_v20, %v1006_v9  ;;  %v8055_v48 = vunpack.i.l.bf16 %v9662_v8  ;;  %v1206_v22 = vrot.slane %v7717_v25, 6 }
  0xd0   : > { %v7713_v57 = vpack.c.bf16 %v9187_v26, %v1056_v24  ;;  %v8071_v43 = vunpack.i.h.bf16 %v8069_v2  ;;  %v3078_v1 = vrot.slane %v7790_v12, 6  ;;  %v8070_v20 = vunpack.i.l.bf16 %v8069_v2  ;;  %v9753_v12 = vpop.permute.xlu1 %8078 }
  0xd1   : > { %13386 = vst [vmem:[#allocation64_spill] sm:$0xff] %v9731_v28  ;;  %v7786_v21 = vpack.c.bf16 %v2955_v55, %v9249_v41  ;;  %v2032_v63 = vsel %vm2027_vm12, %v8055_v48, %v13051_v62  ;;  %v2033_v19 = vsel %vm2027_vm12, %v8051_v44, %v8055_v48  ;;  %1214 = vst [vmem:[#allocation3 + $0x120] sm:$0xcc] %v1206_v22  ;;  %v13053_v24 = vunpack.i.h.bf16 %v9725_v50  ;;  %v9755_v44 = vpop.permute.xlu0 %8073 }
  0xd2   : > { %1096 = vst [vmem:[#allocation3 + $0x120] sm:$0x33] %v7713_v57  ;;  %v13387_v9 = vrot.slane %v8557_v33, %v8863_v37  ;;  %v13389_v26 = vrot.slane %v8877_v30, %v8516_v17  ;;  %v13052_v55 = vunpack.i.l.bf16 %v9725_v50  ;;  %13390 = vst [vmem:[#allocation66_spill] sm:$0xff] %v9753_v12  ;;  %v1705_v2 = vsel %vm1698_vm13, %v8070_v20, %v8071_v43 }
  0xd3   : > { %2993 = vst [vmem:[#allocation3 + $0x38] sm:$0x33] %v7786_v21  ;;  %13391 = vst [vmem:[#allocation67_spill] sm:$0xff] %v9755_v44  ;;  %v13392_v22 = vrot.slane %v8877_v30, %v8560_v34  ;;  %v13400_v48 = vrot.slane %v8651_v6, %v8863_v37 }
  0xd4   : > { %v9746_v25 = vmul.f32 %v13387_v9, %v1010_v45  ;;  %v2082_v41 = vmul.f32 %v13389_v26, %v2033_v19  ;;  %3086 = vst [vmem:[#allocation3 + $0x38] sm:$0xcc] %v3078_v1  ;;  %v8081_v45 = vunpack.i.h.bf16 %v9753_v12  ;;  %v13393_v9 = vunpack.i.h.bf16 %v9240_v38 }
  0xd5   : > { %v9765_v57 = vmul.f32 %v13392_v22, %v2032_v63  ;;  %v13394_v26 = vunpack.i.l.bf16 %v9242_v10  ;;  %v13395_v63 = vrot.slane %v8891_v52, %v8516_v17  ;;  %v13397_v22 = vrot.slane %v8649_v0, %v8818_v14 }
  0xd6   : > { %13388 = vst [vmem:[#allocation65_spill] sm:$0xff] %v9746_v25  ;;  %v7749_v19 = vpack.c.bf16 %v2082_v41, %v2081_v13  ;;  %v1238_v1 = vsel %vm13059_vm2, %v13393_v9, %v13052_v55  ;;  %v13396_v41 = vrot.slane %v8649_v0, %v8509_v16  ;;  %v13399_v10 = vrot.slane %v8651_v6, %v8563_v35 }
  0xd7   : > { %v1242_v62 = vsel %vm13059_vm2, %v13053_v24, %v13394_v26  ;;  %v1753_v13 = vmul.f32 %v13395_v63, %v1705_v2  ;;  %v9789_v9 = vmul.f32 %v13397_v22, %v1238_v1  ;;  %v3210_v26 = vld [vmem:[#allocation3] sm:$0xff]  ;;  %v13402_v2 = vunpack.i.l.bf16 %v9753_v12  ;;  %v9804_v22 = vpop.permute.xlu1 %8088 }
  0xd8   : > { %v1288_v38 = vmul.f32 %v13396_v41, %v1242_v62  ;;  %v3137_v55 = vmul.f32 %v13399_v10, %v1238_v1  ;;  %v2117_v24 = vrot.slane %v7749_v19, 6  ;;  %v9797_v21 = vmul.f32 %v13400_v48, %v1242_v62  ;;  %13403 = vst [vmem:[#allocation70_spill] sm:$0xff] %v9804_v22  ;;  %v13404_v10 = vld [vmem:[#allocation32_spill] sm:$0xff] }
  0xd9   : > { %13398 = vst [vmem:[#allocation68_spill] sm:$0xff] %v9789_v9  ;;  %v1920_v63 = vsel %vm1913_vm14, %v13402_v2, %v8081_v45  ;;  %v13060_v41 = vunpack.i.l.bf16 %v9755_v44  ;;  %v9806_v9 = vpop.permute.xlu0 %8083  ;;  %v13405_v6 = vrot.slane %v13404_v10, %v8509_v16  ;;  %v13406_v48 = vunpack.i.h.bf16 %v9755_v44  ;;  %v3214_v2 = vld [vmem:[#allocation3 + $0x40] sm:$0xff] }
  0xda   : > { %13401 = vst [vmem:[#allocation69_spill] sm:$0xff] %v9797_v21  ;;  %v7721_v1 = vpack.c.bf16 %v9321_v46, %v1288_v38  ;;  %v7794_v19 = vpack.c.bf16 %v3137_v55, %v9307_v3  ;;  %2125 = vst [vmem:[#allocation3 + $0x90] sm:$0xcc] %v2117_v24  ;;  %v7425_v0 = vcombine.high %v3210_v26, %v3214_v2  ;;  %v13061_v3 = vunpack.i.h.bf16 %v9804_v22 }
  0xdb   : > { %v1967_v62 = vmul.f32 %v13405_v6, %v1920_v63  ;;  %v1704_v12 = vsel %vm1698_vm13, %v8071_v43, %v13406_v48  ;;  %v1706_v21 = vsel %vm1698_vm13, %v13060_v41, %v8070_v20  ;;  %v7424_v46 = vcombine.low %v3210_v26, %v3214_v2  ;;  %v13409_v63 = vld [vmem:[#allocation39_spill] sm:$0xff] }
  0xdc   : > { %1328 = vst [vmem:[#allocation3 + $0xe0] sm:$0x33] %v7721_v1  ;;  %3175 = vst [vmem:[#allocation3 + $0xf0] sm:$0x33] %v7794_v19  ;;  %v13407_v6 = vrot.slane %v8891_v52, %v8509_v16  ;;  %v13064_v38 = vunpack.i.l.bf16 %v9804_v22  ;;  %v8085_v24 = vunpack.i.l.bf16 %v9806_v9  ;;  %vm13116_vm2 = vcmp.lt.s32.totalorder %v9063_v49, 7  ;;  %3547 = vmatprep.subr.bf16.mxu0 %v7425_v0  ;;  %v8099_v19 = vpop.permute.xlu1 %8098 }
  0xdd   : > { %v13408_v20 = vrot.slane %v8891_v52, %v8560_v34  ;;  %v13410_v1 = vunpack.i.l.bf16 %v13409_v63  ;;  %v9840_v48 = vpop.permute.xlu0 %8093  ;;  %3548 = vmatpush1.bf16.msra.mxu0 %v7424_v46  ;;  %v13414_v63 = vld [vmem:[#allocation20_spill] sm:$0xff] }
  0xde   : > { %v1752_v55 = vmul.f32 %v13407_v6, %v1706_v21  ;;  %13411 = vst [vmem:[#allocation39_spill] sm:$0xff] %v9840_v48  ;;  %v13415_v41 = vrot.slane %v13414_v63, %v8509_v16 }
  0xdf   : > { %v9832_v26 = vmul.f32 %v13408_v20, %v1704_v12  ;;  %v660_v21 = vsel %vm13074_vm3, %v13061_v3, %v13410_v1  ;;  %v13412_v12 = vld [vmem:[#allocation38_spill] sm:$0xff]  ;;  %v13416_v3 = vld [vmem:[#allocation21_spill] sm:$0xff]  ;;  %v13421_v1 = vld [vmem:[#allocation43_spill] sm:$0xff] }
  0xe0   : > { %v7737_v6 = vpack.c.bf16 %v1753_v13, %v1752_v55  ;;  %v13413_v20 = vunpack.i.h.bf16 %v13412_v12  ;;  %v706_v43 = vmul.f32 %v13415_v41, %v660_v21  ;;  %v13417_v50 = vrot.slane %v13416_v3, %v8563_v35 }
  0xe1   : > { %v13418_v13 = vrot.slane %v13416_v3, %v8863_v37  ;;  %v13420_v55 = vunpack.i.h.bf16 %v9806_v9  ;;  %v1919_v41 = vsel %vm1913_vm14, %v8081_v45, %v8085_v24  ;;  %v9884_v22 = vpop.permute.xlu0 %8103 }
  0xe2   : > { %v656_v0 = vsel %vm13074_vm3, %v13413_v20, %v13064_v38  ;;  %v13068_v20 = vmov 0   ;;  %1792 = vst [vmem:[#allocation3 + $0xe8] sm:$0x33] %v7737_v6  ;;  %v7701_v38 = vpack.c.bf16 %v13421_v1, %v706_v43  ;;  %v13071_v43 = vunpack.i.l.bf16 %v9840_v48  ;;  %v8109_v1 = vpop.permute.xlu1 %8108  ;;  %v13430_v6 = vld [vmem:[#allocation41_spill] sm:$0xff] }
  0xe3   : > { %v2680_v2 = vmul.f32 %v13417_v50, %v656_v0  ;;  %v9861_v46 = vmul.f32 %v13418_v13, %v660_v21  ;;  %v1918_v12 = vsel %vm1913_vm14, %v8085_v24, %v13420_v55  ;;  %3573 = vmatprep.mubr.bf16.mxu0 %v13068_v20  ;;  %v13422_v50 = vrot.slane %v13404_v10, %v8516_v17  ;;  %v13425_v24 = vld [vmem:[#allocation42_spill] sm:$0xff] }
  0xe4   : > { %v8101_v21 = vunpack.i.h.bf16 %v8099_v19  ;;  %v8100_v13 = vunpack.i.l.bf16 %v8099_v19  ;;  %3614 = vmatprep.mubr.bf16.mxu1 %v13068_v20  ;;  %8232 = vset.pattern.permute.xlu0 %v13068_v20  ;;  %v13423_v55 = vrot.slane %v13414_v63, %v8818_v14  ;;  %13426 = vst [vmem:[#allocation42_spill] sm:$0xff] %v9884_v22  ;;  %v13427_v20 = vrot.slane %v13404_v10, %v8560_v34  ;;  %v8236_v25 = vld [vmem:[#allocation3 + $0x3c] ss:$184 sps:$4 sm:$0x3f]  }
  0xe5   : > { %13419 = vst [vmem:[#allocation38_spill] sm:$0xff] %v9861_v46  ;;  %v1968_v3 = vmul.f32 %v13422_v50, %v1919_v41  ;;  %v7774_v46 = vpack.c.bf16 %v2680_v2, %v13425_v24  ;;  %v742_v41 = vrot.slane %v7701_v38, 6  ;;  %v13428_v2 = vld [vmem:[#allocation40_spill] sm:$0xff]  ;;  %v8111_v38 = vunpack.i.h.bf16 %v8109_v1  ;;  %7450 = vmatprep.subr.msk.bf16.mxu1 %vm3516_vm7, %v8236_v25 }
  0xe6   : > { %v9879_v45 = vmul.f32 %v13423_v55, %v656_v0  ;;  %v1355_v50 = vsel %vm1348_vm15, %v8100_v13, %v8101_v21  ;;  %v9891_v63 = vmul.f32 %v13427_v20, %v1918_v12  ;;  %v13429_v55 = vunpack.i.h.bf16 %v13428_v2  ;;  %v13433_v12 = vld [vmem:[#allocation33_spill] sm:$0xff] }
  0xe7   : > { %v7745_v19 = vpack.c.bf16 %v1968_v3, %v1967_v62  ;;  %v2714_v0 = vrot.slane %v7774_v46, 6  ;;  %v13432_v62 = vunpack.i.h.bf16 %v9840_v48  ;;  %750 = vst [vmem:[#allocation3 + $0x50] sm:$0xcc] %v742_v41  ;;  %v13434_v46 = vrot.slane %v13433_v12, %v8516_v17  ;;  %v8238_v48 = vld [vmem:[#allocation3 + $0x38] ss:$184 sps:$4 sm:$0x3f]  }
  0xe8   : > { %13424 = vst [vmem:[#allocation43_spill] sm:$0xff] %v9879_v45  ;;  %v888_v24 = vsel %vm884_vm4, %v13429_v55, %v13071_v43  ;;  %v13431_v45 = vunpack.i.l.bf16 %v13430_v6  ;;  %v13435_v2 = vrot.slane %v8673_v23, %v8509_v16  ;;  %v13436_v6 = vrot.slane %v8673_v23, %v8818_v14  ;;  %v13438_v43 = vld [vmem:[#allocation23_spill] sm:$0xff]  ;;  %v13444_v23 = vld [vmem:[#allocation45_spill] sm:$0xff] }
  0xe9   : > { %2007 = vst [vmem:[#allocation3 + $0x90] sm:$0x33] %v7745_v19  ;;  %v1403_v20 = vmul.f32 %v13434_v46, %v1355_v50  ;;  %vm13117_vm3 = vcmp.lt.s32.totalorder %v9063_v49, 8  ;;  %2722 = vst [vmem:[#allocation3 + $0x100] sm:$0xcc] %v2714_v0  ;;  %v13440_v41 = vrot.slane %v13438_v43, %v8863_v37  ;;  %v8110_v50 = vunpack.i.l.bf16 %v8109_v1 }
  0xea   : > { %v892_v3 = vsel %vm884_vm4, %v13432_v62, %v13431_v45  ;;  %v9914_v55 = vmul.f32 %v13436_v6, %v888_v24  ;;  %v13439_v45 = vrot.slane %v13438_v43, %v8563_v35  ;;  %v13080_v46 = vunpack.i.h.bf16 %v9884_v22  ;;  %v9928_v6 = vpop.permute.xlu1 %8118 }
  0xeb   : > { %v938_v28 = vmul.f32 %v13435_v2, %v892_v3  ;;  %v9923_v19 = vmul.f32 %v13440_v41, %v892_v3  ;;  %v13081_v2 = vunpack.i.l.bf16 %v9884_v22  ;;  %13442 = vst [vmem:[#allocation33_spill] sm:$0xff] %v9928_v6  ;;  %v3524_v33 = vsel %vm3516_vm7, %v8238_v48, 0 }
  0xec   : > { %13437 = vst [vmem:[#allocation40_spill] sm:$0xff] %v9914_v55  ;;  %v2862_v62 = vmul.f32 %v13439_v45, %v888_v24  ;;  %v9930_v55 = vpop.permute.xlu0 %8113  ;;  %v13443_v24 = vld [vmem:[#allocation47_spill] sm:$0xff]  ;;  %v1587_v1 = vsel %vm13116_vm2, %v8110_v50, %v8111_v38  ;;  %v1354_v25 = vsel %vm1348_vm15, %v8101_v21, %v13080_v46  ;;  %3585 = vmatpush1.bf16.msra.mxu1 %v3524_v33  ;;  %v13448_v21 = vld [vmem:[#allocation44_spill] sm:$0xff]  ;;  %v13450_v33 = vunpack.i.l.bf16 %v9378_v15 }
  0xed   : > { %13441 = vst [vmem:[#allocation41_spill] sm:$0xff] %v9923_v19  ;;  %v7709_v45 = vpack.c.bf16 %v13443_v24, %v938_v28  ;;  %v1356_v41 = vsel %vm1348_vm15, %v13081_v2, %v8100_v13  ;;  %v13447_v19 = vrot.slane %v13433_v12, %v8509_v16  ;;  %v13449_v46 = vunpack.i.h.bf16 %v13448_v21 }
  0xee   : > { %v7782_v0 = vpack.c.bf16 %v2862_v62, %v13444_v23  ;;  %v13082_v23 = vunpack.i.l.bf16 %v9928_v6  ;;  %v13445_v62 = vld [vmem:[#allocation34_spill] sm:$0xff]  ;;  %v8129_v2 = vpop.permute.xlu1 %8128  ;;  %v13453_v15 = vrot.slane %v8719_v60, %v8818_v14 }
  0xef   : > { %v974_v28 = vrot.slane %v7709_v45, 6  ;;  %v13446_v24 = vrot.slane %v13445_v62, %v8516_v17  ;;  %v1402_v43 = vmul.f32 %v13447_v19, %v1356_v41  ;;  %v13451_v45 = vunpack.i.h.bf16 %v9928_v6 }
  0xf0   : > { %v2896_v48 = vrot.slane %v7782_v0, 6  ;;  %v542_v13 = vsel %vm538_vm5, %v13449_v46, %v13082_v23  ;;  %v9967_v19 = vpop.permute.xlu0 %8123  ;;  %v13452_v46 = vrot.slane %v8719_v60, %v8509_v16 }
  0xf1   : > { %v1635_v3 = vmul.f32 %v13446_v24, %v1587_v1  ;;  %v546_v0 = vsel %vm538_vm5, %v13451_v45, %v13450_v33  ;;  %982 = vst [vmem:[#allocation3 + $0x180] sm:$0xcc] %v974_v28  ;;  %v7725_v41 = vpack.c.bf16 %v1403_v20, %v1402_v43  ;;  %v9975_v23 = vmul.f32 %v13453_v15, %v542_v13  ;;  %v13455_v33 = vld [vmem:[#allocation25_spill] sm:$0xff] }
  0xf2   : > { %2904 = vst [vmem:[#allocation3 + $0x78] sm:$0xcc] %v2896_v48  ;;  %v592_v21 = vmul.f32 %v13452_v46, %v546_v0  ;;  %v13456_v45 = vrot.slane %v13455_v33, %v8563_v35  ;;  %v13457_v24 = vrot.slane %v13455_v33, %v8863_v37  ;;  %v13459_v43 = vunpack.i.h.bf16 %v9930_v55  ;;  %v8239_v15 = vld [vmem:[#allocation3 + $0xec] ss:$-88 sps:$4 sm:$0xff]   ;;  %v10000_v29 = vpop.permute.xlu1 %8138 }
  0xf3   : > { %13454 = vst [vmem:[#allocation47_spill] sm:$0xff] %v9975_v23  ;;  %v13460_v28 = vunpack.i.l.bf16 %v9930_v55  ;;  %v8131_v46 = vunpack.i.h.bf16 %v8129_v2  ;;  %v8241_v23 = vld [vmem:[#allocation3 + $0xe8] ss:$-88 sps:$4 sm:$0xff]   ;;  %v1438_v60 = vrot.slane %v7725_v41, 6  ;;  %3549 = vmatprep.subr.bf16.mxu0 %v8239_v15  ;;  %13463 = vst [vmem:[#allocation34_spill] sm:$0xff] %v10000_v29  ;;  %v13464_v41 = vrot.slane %v13433_v12, %v8560_v34 }
  0xf4   : > { %v2591_v1 = vmul.f32 %v13456_v45, %v542_v13  ;;  %v9983_v6 = vmul.f32 %v13457_v24, %v546_v0  ;;  %v1586_v20 = vsel %vm13116_vm2, %v8111_v38, %v13459_v43  ;;  %v7697_v13 = vpack.c.bf16 %v9470_v7, %v592_v21  ;;  %v13461_v45 = vld [vmem:[#allocation48_spill] sm:$0xff]  ;;  %3550 = vmatpush1.bf16.msra.mxu0 %v8241_v23  ;;  %v13465_v15 = vld [vmem:[#allocation46_spill] sm:$0xff] }
  0xf5   : > { %v1588_v48 = vsel %vm13116_vm2, %v13460_v28, %v8110_v50  ;;  %v13462_v0 = vrot.slane %v13445_v62, %v8509_v16  ;;  %v13091_v38 = vunpack.i.h.bf16 %v9967_v19  ;;  %v13090_v43 = vunpack.i.l.bf16 %v9967_v19  ;;  %v10002_v50 = vpop.permute.xlu0 %8133  ;;  %1446 = vst [vmem:[#allocation3 + $0xe0] sm:$0xcc] %v1438_v60  ;;  %v13476_v23 = vld [vmem:[#allocation50_spill] sm:$0xff] }
  0xf6   : > { %13458 = vst [vmem:[#allocation45_spill] sm:$0xff] %v9983_v6  ;;  %v7770_v33 = vpack.c.bf16 %v2591_v1, %v13461_v45  ;;  %v8130_v6 = vunpack.i.l.bf16 %v8129_v2  ;;  %v10007_v7 = vmul.f32 %v13464_v41, %v1354_v25  ;;  %632 = vst [vmem:[#allocation3 + $0x50] sm:$0x33] %v7697_v13  ;;  %v13095_v2 = vunpack.i.h.bf16 %v10000_v29  ;;  %v13468_v13 = vld [vmem:[#allocation36_spill] sm:$0xff] }
  0xf7   : > { %v1634_v24 = vmul.f32 %v13462_v0, %v1588_v48  ;;  %v13094_v21 = vunpack.i.l.bf16 %v10000_v29  ;;  %v13466_v45 = vunpack.i.h.bf16 %v13465_v15  ;;  %v13467_v25 = vunpack.i.l.bf16 %v9419_v4 }
  0xf8   : > { %2629 = vst [vmem:[#allocation3 + $0x100] sm:$0x33] %v7770_v33  ;;  %v1473_v48 = vsel %vm13117_vm3, %v8130_v6, %v8131_v46  ;;  %v13469_v0 = vrot.slane %v13468_v13, %v8516_v17  ;;  %v13470_v41 = vrot.slane %v8747_v56, %v8509_v16  ;;  %v13477_v28 = vunpack.i.l.bf16 %v13476_v23 }
  0xf9   : > { %v7733_v1 = vpack.c.bf16 %v1635_v3, %v1634_v24  ;;  %v774_v60 = vsel %vm770_vm6, %v13466_v45, %v13090_v43  ;;  %v778_v3 = vsel %vm770_vm6, %v13091_v38, %v13467_v25  ;;  %v13471_v45 = vrot.slane %v8747_v56, %v8818_v14 }
  0xfa   : > { %v1521_v24 = vmul.f32 %v13469_v0, %v1473_v48  ;;  %v824_v15 = vmul.f32 %v13470_v41, %v778_v3  ;;  %v13472_v43 = vrot.slane %v8763_v53, %v8563_v35  ;;  %v13474_v48 = vld [vmem:[#allocation49_spill] sm:$0xff] }
  0xfb   : > { %v1670_v33 = vrot.slane %v7733_v1, 6  ;;  %v10036_v4 = vmul.f32 %v13471_v45, %v774_v60  ;;  %v13473_v1 = vrot.slane %v8763_v53, %v8863_v37  ;;  %v13475_v0 = vunpack.i.h.bf16 %v13474_v48 }
  0xfc   : > { %v2773_v25 = vmul.f32 %v13472_v43, %v774_v60  ;;  %v428_v45 = vsel %vm420_vm8, %v13095_v2, %v13477_v28  ;;  %v10058_v43 = vpop.permute.xlu1 %8148  ;;  %v10060_v60 = vpop.permute.xlu0 %8143  ;;  %v13479_v48 = vrot.slane %v8773_v51, %v8509_v16  ;;  %v3234_v2 = vld [vmem:[%s12977_s3] sm:$0xf] }
  0xfd   : > { %v10044_v38 = vmul.f32 %v13473_v1, %v778_v3  ;;  %v424_v41 = vsel %vm420_vm8, %v13475_v0, %v13094_v21  ;;  %1678 = vst [vmem:[#allocation3 + $0x80] sm:$0xcc] %v1670_v33  ;;  %v13478_v3 = vld [vmem:[#allocation54_spill] sm:$0xff]  ;;  %v13480_v0 = vrot.slane %v8773_v51, %v8818_v14  ;;  %v13482_v21 = vrot.slane %v8799_v40, %v8563_v35  ;;  %v13483_v33 = vld [vmem:[#allocation51_spill] sm:$0xff] }
  0xfe   : > { %v7705_v1 = vpack.c.bf16 %v13478_v3, %v824_v15  ;;  %v474_v17 = vmul.f32 %v13479_v48, %v428_v45  ;;  %v7778_v29 = vpack.c.bf16 %v2773_v25, %v13483_v33  ;;  %v13484_v15 = vrot.slane %v8799_v40, %v8863_v37  ;;  %3237 = vperm.xlu0 %8232, %v3234_v2   ;;  %v13489_v33 = vld [vmem:[#allocation55_spill] sm:$0xff] }
  0xff   : > { %v10069_v23 = vmul.f32 %v13480_v0, %v424_v41  ;;  %v2498_v28 = vmul.f32 %v13482_v21, %v424_v41  ;;  %v13486_v48 = vunpack.i.h.bf16 %v10002_v50  ;;  %v13488_v41 = vld [vmem:[#allocation57_spill] sm:$0xff]  ;;  %v8145_v40 = vunpack.i.l.bf16 %v10060_v60 }
 0x100   : > { %v10081_v3 = vmul.f32 %v13484_v15, %v428_v45  ;;  %864 = vst [vmem:[#allocation3 + $0x180] sm:$0x33] %v7705_v1  ;;  %v7693_v25 = vpack.c.bf16 %v13488_v41, %v474_v17  ;;  %v13490_v45 = vrot.slane %v13468_v13, %v8509_v16  ;;  %2811 = vst [vmem:[#allocation3 + $0x78] sm:$0x33] %v7778_v29  ;;  %v10104_v2 = vpop.permute.xlu0 %8153  ;;  %v13493_v29 = vunpack.i.l.bf16 %v9553_v54 }
 0x101   : > { %13481 = vst [vmem:[#allocation44_spill] sm:$0xff] %v10069_v23  ;;  %v10087_v0 = vsel %vm13117_vm3, %v8131_v46, %v13486_v48  ;;  %v13487_v23 = vunpack.i.l.bf16 %v10002_v50  ;;  %v7766_v51 = vpack.c.bf16 %v2498_v28, %v13489_v33  ;;  %v13102_v46 = vunpack.i.l.bf16 %v10058_v43  ;;  %v13494_v33 = vld [vmem:[#allocation56_spill] sm:$0xff] }
 0x102   : > { %13485 = vst [vmem:[#allocation48_spill] sm:$0xff] %v10081_v3  ;;  %v13103_v3 = vunpack.i.h.bf16 %v10058_v43  ;;  %v13492_v17 = vrot.slane %v13445_v62, %v8560_v34 }
 0x103   : > { %v1474_v21 = vsel %vm13117_vm3, %v13487_v23, %v8130_v6  ;;  %v10102_v6 = vpop.permute.xlu1 %8158  ;;  %v510_v23 = vrot.slane %v7693_v25, 6  ;;  %v2532_v28 = vrot.slane %v7766_v51, 6  ;;  %v13497_v51 = vrot.slane %v8828_v32, %v8863_v37 }
 0x104   : > { %v1520_v15 = vmul.f32 %v13490_v45, %v1474_v21  ;;  %13491 = vst [vmem:[#allocation46_spill] sm:$0xff] %v10102_v6  ;;  %v10109_v1 = vmul.f32 %v13492_v17, %v1586_v20  ;;  %v315_v41 = vsel %vm307_vm10, %v13103_v3, %v13493_v29  ;;  %v13495_v45 = vunpack.i.h.bf16 %v13494_v33 }
 0x105   : > { %v13496_v20 = vrot.slane %v8820_v39, %v8509_v16  ;;  %v10129_v54 = vmul.f32 %v13497_v51, %v315_v41  ;;  %518 = vst [vmem:[#allocation3 + $0xb0] sm:$0xcc] %v510_v23  ;;  %2540 = vst [vmem:[#allocation3 + $0xa8] sm:$0xcc] %v2532_v28  ;;  %v13499_v17 = vrot.slane %v8820_v39, %v8818_v14  ;;  %v13504_v28 = vld [vmem:[#allocation28_spill] sm:$0xff] }
 0x106   : > { %v7729_v21 = vpack.c.bf16 %v1521_v24, %v1520_v15  ;;  %v311_v48 = vsel %vm307_vm10, %v13495_v45, %v13102_v46  ;;  %v13498_v24 = vunpack.i.h.bf16 %v10060_v60  ;;  %v13501_v33 = vrot.slane %v8828_v32, %v8563_v35 }
 0x107   : > { %v360_v25 = vmul.f32 %v13496_v20, %v315_v41  ;;  %v10140_v29 = vmul.f32 %v13499_v17, %v311_v48  ;;  %v13502_v41 = vld [vmem:[#allocation52_spill] sm:$0xff]  ;;  %v8160_v17 = vunpack.i.l.bf16 %v10102_v6  ;;  %v10156_v16 = vpop.permute.xlu1 %1905 }
 0x108   : > { %v10135_v15 = vsel %vm2259_vm9, %v8145_v40, %v13498_v24  ;;  %1560 = vst [vmem:[#allocation3 + $0x80] sm:$0x33] %v7729_v21  ;;  %v2409_v45 = vmul.f32 %v13501_v33, %v311_v48  ;;  %v13503_v20 = vunpack.i.h.bf16 %v13502_v41  ;;  %v13107_v24 = vunpack.i.h.bf16 %v10102_v6  ;;  %13506 = vst [vmem:[#allocation49_spill] sm:$0xff] %v10156_v16  ;;  %v10158_v48 = vpop.permute.xlu0 %8163  ;;  %v13507_v33 = vld [vmem:[#allocation61_spill] sm:$0xff] }
 0x109   : > { %13500 = vst [vmem:[#allocation36_spill] sm:$0xff] %v10140_v29  ;;  %v7689_v23 = vpack.c.bf16 %v9642_v11, %v360_v25  ;;  %v13505_v21 = vrot.slane %v13504_v28, %v8563_v35  ;;  %v8242_v25 = vld [vmem:[#allocation3 + $0x104] ss:$-136 sps:$4 sm:$0xff]  }
 0x10a   : > { %v2263_v51 = vsel %vm2259_vm9, %v13503_v20, %v8145_v40  ;;  %v7762_v41 = vpack.c.bf16 %v2409_v45, %v13507_v33  ;;  %v8155_v40 = vunpack.i.l.bf16 %v10104_v2  ;;  %v13508_v20 = vunpack.i.h.bf16 %v9806_v9  ;;  %3586 = vmatprep.subr.bf16.mxu1 %v8242_v25 }
 0x10b   : > { %v2316_v46 = vmul.f32 %v13505_v21, %v2263_v51  ;;  %400 = vst [vmem:[#allocation3 + $0xb0] sm:$0x33] %v7689_v23  ;;  %v13509_v51 = vld [vmem:[#allocation60_spill] sm:$0xff]  ;;  %v10173_v3 = vsel %vm2027_vm12, %v8160_v17, %v13107_v24  ;;  %v13511_v45 = vunpack.i.h.bf16 %v9662_v8  ;;  %v13512_v9 = vrot.slane %v13404_v10, %v8563_v35  ;;  %v10204_v6 = vpop.permute.xlu1 %1338 }
 0x10c   : > { %v1917_v11 = vsel %vm1913_vm14, %v13508_v20, %v10156_v16  ;;  %13510 = vst [vmem:[#allocation50_spill] sm:$0xff] %v10173_v3  ;;  %v10182_v16 = vld [vmem:[#allocation3 + $0x180] sm:$0xff]  ;;  %2447 = vst [vmem:[#allocation3 + $0xa8] sm:$0x33] %v7762_v41  ;;  %v13514_v24 = vunpack.i.h.bf16 %v10104_v2  ;;  %v13517_v3 = vrot.slane %v8836_v61, %v8563_v35 }
 0x10d   : > { %v7758_v21 = vpack.c.bf16 %v2316_v46, %v13509_v51  ;;  %v2031_v33 = vsel %vm2027_vm12, %v13511_v45, %v8160_v17  ;;  %v1970_v20 = vmul.f32 %v13512_v9, %v1917_v11  ;;  %v10184_v23 = vld [vmem:[#allocation3 + $0x120] sm:$0xff]  ;;  %v13513_v46 = vrot.slane %v8877_v30, %v8563_v35  ;;  %v13515_v17 = vld [vmem:[#allocation58_spill] sm:$0xff] }
 0x10e   : > { %v10193_v8 = vsel %vm2145_vm11, %v8155_v40, %v13514_v24  ;;  %v13516_v45 = vunpack.i.h.bf16 %v13515_v17  ;;  %v8165_v9 = vunpack.i.l.bf16 %v10158_v48  ;;  %v8244_v10 = vld [vmem:[#allocation3 + $0x100] ss:$-136 sps:$4 sm:$0xff]   ;;  %v8169_v24 = vpop.permute.xlu0 %8168  ;;  %v7401_v17 = vcombine.high %v10182_v16, %v10184_v23 }
 0x10f   : > { %v2084_v51 = vmul.f32 %v13513_v46, %v2031_v33  ;;  %v2350_v41 = vrot.slane %v7758_v21, 6  ;;  %v7746_v46 = vpack.c.bf16 %v1970_v20, %v9891_v63  ;;  %v13520_v21 = vunpack.i.h.bf16 %v9755_v44  ;;  %3587 = vmatpush1.bf16.msra.mxu1 %v8244_v10  ;;  %v3198_v44 = vld [vmem:[#allocation3 + $0x80] sm:$0xff] }
 0x110   : > { %v2149_v11 = vsel %vm2145_vm11, %v13516_v45, %v8155_v40  ;;  %v13518_v40 = vunpack.i.h.bf16 %v10158_v48  ;;  %v13521_v63 = vunpack.i.h.bf16 %v9884_v22  ;;  %v8171_v25 = vunpack.i.h.bf16 %v8169_v24 }
 0x111   : > { %v2202_v33 = vmul.f32 %v13517_v3, %v2149_v11  ;;  %v7750_v30 = vpack.c.bf16 %v2084_v51, %v9765_v57  ;;  %v1703_v3 = vsel %vm1698_vm13, %v13520_v21, %v8165_v9  ;;  %2358 = vst [vmem:[#allocation3 + $0x68] sm:$0xcc] %v2350_v41  ;;  %2008 = vst [vmem:[#allocation3 + $0xc0] sm:$0x33] %v7746_v46  ;;  %v3194_v21 = vld [vmem:[#allocation3 + $0xe0] sm:$0xff]  ;;  %v8170_v29 = vunpack.i.l.bf16 %v8169_v24  ;;  %v8174_v46 = vpop.permute.xlu1 %8173 }
 0x112   : > { %v10213_v45 = vsel %vm1698_vm13, %v8165_v9, %v13518_v40  ;;  %v1353_v20 = vsel %vm1348_vm15, %v13521_v63, %v10204_v6  ;;  %v13522_v51 = vrot.slane %v8891_v52, %v8563_v35  ;;  %v13523_v40 = vrot.slane %v13433_v12, %v8563_v35 }
 0x113   : > { %13519 = vst [vmem:[#allocation54_spill] sm:$0xff] %v10213_v45  ;;  %v7754_v57 = vpack.c.bf16 %v2202_v33, %v9657_v58  ;;  %v2118_v22 = vrot.slane %v7750_v30, 6  ;;  %v7409_v45 = vcombine.high %v3194_v21, %v3198_v44  ;;  %v7408_v63 = vcombine.low %v3194_v21, %v3198_v44 }
 0x114   : > { %v1755_v11 = vmul.f32 %v13522_v51, %v1703_v3  ;;  %v1405_v9 = vmul.f32 %v13523_v40, %v1353_v20  ;;  %v13524_v33 = vunpack.i.h.bf16 %v9625_v18  ;;  %v10237_v3 = vpop.permute.xlu0 %1570  ;;  %v7400_v20 = vcombine.low %v10182_v16, %v10184_v23 }
 0x115   : > { %2240 = vst [vmem:[#allocation3 + $0x68] sm:$0x33] %v7754_v57  ;;  %2126 = vst [vmem:[#allocation3 + $0xc0] sm:$0xcc] %v2118_v22  ;;  %v1118_v30 = vsel %vm13114_vm1, %v8170_v29, %v8171_v25  ;;  %v13525_v44 = vunpack.i.l.bf16 %v9625_v18  ;;  %v13527_v57 = vrot.slane %v8597_v47, %v9028_v27  ;;  %3551 = vmatprep.subr.bf16.mxu0 %v7409_v45  ;;  %v8176_v21 = vunpack.i.h.bf16 %v8174_v46 }
 0x116   : > { %v7738_v58 = vpack.c.bf16 %v1755_v11, %v9832_v26  ;;  %v7726_v41 = vpack.c.bf16 %v1405_v9, %v10007_v7  ;;  %v1117_v10 = vsel %vm13114_vm1, %v8171_v25, %v13524_v33  ;;  %v13526_v7 = vrot.slane %v8569_v36, %v8863_v37  ;;  %3552 = vmatpush1.bf16.msra.mxu0 %v7408_v63  ;;  %v10272_v63 = vpop.permute.xlu1 %1456 }
 0x117   : > { %v1119_v26 = vsel %vm13114_vm1, %v13525_v44, %v8170_v29  ;;  %v3047_v51 = vmul.f32 %v13527_v57, %v1117_v10  ;;  %v13528_v22 = vrot.slane %v8569_v36, %v8994_v5  ;;  %v13529_v18 = vrot.slane %v8569_v36, %v9028_v27  ;;  %3553 = vmatprep.subr.bf16.mxu0 %v7401_v17 }
 0x118   : > { %v1177_v24 = vmul.f32 %v13526_v7, %v1117_v10  ;;  %1793 = vst [vmem:[#allocation3 + $0xf8] sm:$0x33] %v7738_v58  ;;  %v1439_v16 = vrot.slane %v7726_v41, 6  ;;  %v13530_v29 = vrot.slane %v8597_v47, %v8818_v14  ;;  %v13531_v9 = vrot.slane %v8597_v47, %v8994_v5 }
 0x119   : > { %v1175_v23 = vmul.f32 %v13528_v22, %v1119_v26  ;;  %v1176_v11 = vmul.f32 %v13529_v18, %v1118_v30  ;;  %v7792_v45 = vpack.c.bf16 %v9699_v42, %v3047_v51  ;;  %v8175_v58 = vunpack.i.l.bf16 %v8174_v46 }
 0x11a   : > { %v3045_v40 = vmul.f32 %v13530_v29, %v1119_v26  ;;  %v3046_v25 = vmul.f32 %v13531_v9, %v1118_v30  ;;  %1447 = vst [vmem:[#allocation3 + $0x188] sm:$0xcc] %v1439_v16  ;;  %v13532_v36 = vunpack.i.h.bf16 %v9930_v55  ;;  %v13533_v47 = vrot.slane %v13468_v13, %v8560_v34  ;;  %v8179_v26 = vpop.permute.xlu0 %8178  ;;  %v13536_v16 = vld [vmem:[#allocation15_spill] sm:$0xff]  ;;  %3554 = vmatpush1.bf16.msra.mxu0 %v7400_v20  ;;  %v13540_v9 = vld [vmem:[#allocation16_spill] sm:$0xff] }
 0x11b   : > { %v7719_v41 = vpack.c.bf16 %v1175_v23, %v9716_v31  ;;  %v7720_v33 = vpack.c.bf16 %v1177_v24, %v1176_v11  ;;  %v3080_v46 = vrot.slane %v7792_v45, 6  ;;  %v13534_v17 = vunpack.i.h.bf16 %v9660_v59 }
 0x11c   : > { %v1585_v10 = vsel %vm13116_vm2, %v13532_v36, %v10237_v3  ;;  %v1522_v42 = vmul.f32 %v13533_v47, %v10087_v0  ;;  %v7791_v30 = vpack.c.bf16 %v3046_v25, %v3045_v40  ;;  %v1004_v44 = vsel %vm13115_vm0, %v8175_v58, %v8176_v21 }
 0x11d   : > { %v1003_v31 = vsel %vm13115_vm0, %v8176_v21, %v13534_v17  ;;  %v1208_v7 = vrot.slane %v7719_v41, 6  ;;  %v1209_v24 = vrot.slane %v7720_v33, 6  ;;  %v13535_v57 = vunpack.i.l.bf16 %v9660_v59  ;;  %3088 = vst [vmem:[#allocation3 + $0x170] sm:$0xcc] %v3080_v46  ;;  %v3211_v46 = vld [vmem:[#allocation3 + $0x68] sm:$0xff]  ;;  %v13546_v17 = vld [vmem:[#allocation64_spill] sm:$0xff] }
 0x11e   : > { %v13537_v0 = vrot.slane %v13536_v16, %v9028_v27  ;;  %v3079_v23 = vrot.slane %v7791_v30, 6  ;;  %v13538_v18 = vrot.slane %v13536_v16, %v8994_v5  ;;  %v13539_v29 = vrot.slane %v13536_v16, %v8863_v37  ;;  %v3178_v30 = vld [vmem:[#allocation3 + $0xb0] sm:$0xff]  ;;  %v13548_v16 = vld [vmem:[#allocation65_spill] sm:$0xff] }
 0x11f   : > { %v1005_v51 = vsel %vm13115_vm0, %v13535_v57, %v8175_v58  ;;  %v13541_v59 = vrot.slane %v13540_v9, %v8818_v14  ;;  %1216 = vst [vmem:[#allocation3 + $0x108] sm:$0xcc] %v1208_v7  ;;  %1217 = vst [vmem:[#allocation3 + $0x60] sm:$0xcc] %v1209_v24  ;;  %v13542_v45 = vrot.slane %v13540_v9, %v8994_v5  ;;  %v13545_v36 = vunpack.i.h.bf16 %v10002_v50 }
 0x120   : > { %v1062_v22 = vmul.f32 %v13537_v0, %v1004_v44  ;;  %v1061_v11 = vmul.f32 %v13538_v18, %v1005_v51  ;;  %v1063_v40 = vmul.f32 %v13539_v29, %v1003_v31  ;;  %v13543_v21 = vrot.slane %v13540_v9, %v9028_v27  ;;  %3087 = vst [vmem:[#allocation3 + $0x88] sm:$0xcc] %v3079_v23  ;;  %v3182_v9 = vld [vmem:[#allocation3 + $0x50] sm:$0xff] }
 0x121   : > { %v2956_v25 = vmul.f32 %v13541_v59, %v1005_v51  ;;  %v2957_v20 = vmul.f32 %v13542_v45, %v1004_v44  ;;  %v13544_v41 = vrot.slane %v13445_v62, %v8563_v35  ;;  %v1471_v47 = vsel %vm13117_vm3, %v13545_v36, %v10272_v63  ;;  %v8189_v51 = vpop.permute.xlu1 %8188  ;;  %v3215_v59 = vld [vmem:[#allocation3 + $0xa8] sm:$0xff]  ;;  %v13549_v45 = vld [vmem:[#allocation63_spill] sm:$0xff] }
 0x122   : > { %v2958_v58 = vmul.f32 %v13543_v21, %v1003_v31  ;;  %vm13143_vm1 = vcmask 883712   ;;  %v7715_v44 = vpack.c.bf16 %v1061_v11, %v13546_v17  ;;  %v7716_v7 = vpack.c.bf16 %v1063_v40, %v1062_v22 }
 0x123   : > { %v1637_v33 = vmul.f32 %v13544_v41, %v1585_v10  ;;  %v13547_v31 = vrot.slane %v13468_v13, %v8563_v35  ;;  %v8181_v57 = vunpack.i.h.bf16 %v8179_v26  ;;  %v7787_v10 = vpack.c.bf16 %v2957_v20, %v2956_v25  ;;  %v8184_v41 = vpop.permute.xlu0 %8183 }
 0x124   : > { %v7788_v0 = vpack.c.bf16 %v13548_v16, %v2958_v58  ;;  %v8180_v29 = vunpack.i.l.bf16 %v8179_v26  ;;  %1098 = vst [vmem:[#allocation3 + $0x108] sm:$0x33] %v7715_v44  ;;  %1099 = vst [vmem:[#allocation3 + $0x60] sm:$0x33] %v7716_v7  ;;  %v13550_v11 = vunpack.i.h.bf16 %v13549_v45  ;;  %vm13551_vm0 = vcmp.lt.s32.totalorder %v9063_v49, 55  ;;  %v13559_v7 = vld [vmem:[#allocation19_spill] sm:$0xff] }
 0x125   : > { %v1523_v24 = vmul.f32 %v13547_v31, %v1471_v47  ;;  %v7734_v18 = vpack.c.bf16 %v1637_v33, %v10109_v1  ;;  %v7393_v40 = vcombine.high %v3178_v30, %v3182_v9  ;;  %v7427_v21 = vcombine.high %v3211_v46, %v3215_v59  ;;  %2994 = vst [vmem:[#allocation3 + $0x88] sm:$0x33] %v7787_v10  ;;  %vm13552_vm2 = vmmov %vm13551_vm0  ;;  %v8245_v16 = vld [vmem:[#allocation3 + $0xfc] ss:$-56 sps:$4 sm:$0xff]  }
 0x126   : > { %v1235_v22 = vsel %vm13551_vm0, %v8181_v57, %v13550_v11  ;;  %2995 = vst [vmem:[#allocation3 + $0x170] sm:$0x33] %v7788_v0  ;;  %v1236_v1 = vsel %vm13552_vm2, %v8180_v29, %v8181_v57  ;;  %v13553_v26 = vunpack.i.l.bf16 %v13549_v45  ;;  %vm13554_vm3 = vmmov %vm13551_vm0  ;;  %v13560_v31 = vrot.slane %v13559_v7, %v8818_v14  ;;  %v13563_v11 = vld [vmem:[#allocation68_spill] sm:$0xff] }
 0x127   : > { %v7730_v23 = vpack.c.bf16 %v1523_v24, %v1522_v42  ;;  %v1671_v25 = vrot.slane %v7734_v18, 6  ;;  %v13555_v42 = vld [vmem:[#allocation18_spill] sm:$0xff]  ;;  %v13561_v57 = vrot.slane %v13559_v7, %v8994_v5  ;;  %3555 = vmatprep.subr.bf16.mxu0 %v7393_v40  ;;  %v13562_v0 = vrot.slane %v13559_v7, %v9028_v27  ;;  %3588 = vmatprep.subr.bf16.mxu1 %v7427_v21  ;;  %v13565_v40 = vld [vmem:[#allocation39_spill] sm:$0xff] }
 0x128   : > { %v1237_v20 = vsel %vm13554_vm3, %v13553_v26, %v8180_v29  ;;  %v13556_v58 = vrot.slane %v13555_v42, %v8863_v37  ;;  %v13557_v36 = vrot.slane %v13555_v42, %v8994_v5  ;;  %v13558_v17 = vrot.slane %v13555_v42, %v9028_v27 }
 0x129   : > { %1561 = vst [vmem:[#allocation3 + $0x1a8] sm:$0x33] %v7730_v23  ;;  %v3138_v24 = vmul.f32 %v13560_v31, %v1237_v20  ;;  %v3139_v10 = vmul.f32 %v13561_v57, %v1236_v1  ;;  %1679 = vst [vmem:[#allocation3 + $0x1a8] sm:$0xcc] %v1671_v25  ;;  %v3140_v18 = vmul.f32 %v13562_v0, %v1235_v22  ;;  %v8191_v45 = vunpack.i.h.bf16 %v8189_v51 }
 0x12a   : > { %v1295_v33 = vmul.f32 %v13556_v58, %v1235_v22  ;;  %v1293_v47 = vmul.f32 %v13557_v36, %v1237_v20  ;;  %v1294_v44 = vmul.f32 %v13558_v17, %v1236_v1  ;;  %v7392_v29 = vcombine.low %v3178_v30, %v3182_v9  ;;  %v10349_v36 = vpop.permute.xlu1 %8198  ;;  %v13564_v17 = vld [vmem:[#allocation69_spill] sm:$0xff] }
 0x12b   : > { %v7426_v23 = vcombine.low %v3211_v46, %v3215_v59  ;;  %v7795_v58 = vpack.c.bf16 %v3139_v10, %v3138_v24  ;;  %v8190_v20 = vunpack.i.l.bf16 %v8189_v51  ;;  %v7796_v1 = vpack.c.bf16 %v13564_v17, %v3140_v18  ;;  %v10359_v46 = vld [vmem:[%s12976_s2] sm:$0x3]  ;;  %v10373_v24 = vpop.permute.xlu0 %8193 }
 0x12c   : > { %v7723_v26 = vpack.c.bf16 %v1293_v47, %v13563_v11  ;;  %v7724_v42 = vpack.c.bf16 %v1295_v33, %v1294_v44  ;;  %3556 = vmatpush1.bf16.msra.mxu0 %v7392_v29  ;;  %v13566_v25 = vunpack.i.h.bf16 %v13565_v40  ;;  %v8186_v21 = vunpack.i.h.bf16 %v8184_v41  ;;  %v13568_v33 = vld [vmem:[#allocation22_spill] sm:$0xff]  ;;  %v13570_v44 = vld [vmem:[#allocation23_spill] sm:$0xff] }
 0x12d   : > { %3589 = vmatpush1.bf16.msra.mxu1 %v7426_v23  ;;  %v8185_v30 = vunpack.i.l.bf16 %v8184_v41  ;;  %3176 = vst [vmem:[#allocation3 + $0x30] sm:$0x33] %v7795_v58  ;;  %v886_v51 = vsel %vm884_vm4, %v8190_v20, %v8191_v45  ;;  %v13567_v9 = vunpack.i.l.bf16 %v13565_v40  ;;  %v13569_v47 = vrot.slane %v13568_v33, %v8863_v37  ;;  %3177 = vst [vmem:[#allocation3 + $0x198] sm:$0x33] %v7796_v1  ;;  %v13577_v58 = vld [vmem:[#allocation70_spill] sm:$0xff] }
 0x12e   : > { %v885_v22 = vsel %vm884_vm4, %v8191_v45, %v13566_v25  ;;  %1330 = vst [vmem:[#allocation3 + $0x138] sm:$0x33] %v7723_v26  ;;  %1331 = vst [vmem:[#allocation3 + $0x140] sm:$0x33] %v7724_v42  ;;  %v13571_v7 = vrot.slane %v13570_v44, %v9028_v27  ;;  %3590 = vmatprep.subr.bf16.mxu1 %v8245_v16  ;;  %v13572_v57 = vrot.slane %v13568_v33, %v8994_v5  ;;  %v8247_v16 = vld [vmem:[#allocation3 + $0xf8] ss:$-56 sps:$4 sm:$0xff]  }
 0x12f   : > { %v887_v59 = vsel %vm884_vm4, %v13567_v9, %v8190_v20  ;;  %v945_v41 = vmul.f32 %v13569_v47, %v885_v22  ;;  %v13573_v0 = vrot.slane %v13568_v33, %v9028_v27  ;;  %v13574_v29 = vrot.slane %v13570_v44, %v8818_v14  ;;  %v13576_v26 = vld [vmem:[#allocation41_spill] sm:$0xff]  ;;  %7449 = vmatmul.mubr.msk.bf16.vlgmr.msra.gmra.mxu0 %vm13143_vm1, %v10359_v46  ;;  %v13584_v33 = vld [vmem:[#allocation20_spill] sm:$0xff] }
 0x130   : > { %v2865_v31 = vmul.f32 %v13571_v7, %v885_v22  ;;  %v943_v10 = vmul.f32 %v13572_v57, %v887_v59  ;;  %v13575_v45 = vrot.slane %v13570_v44, %v8994_v5  ;;  %v13578_v20 = vunpack.i.h.bf16 %v13577_v58  ;;  %v13583_v22 = vld [vmem:[#allocation40_spill] sm:$0xff] }
 0x131   : > { %v944_v18 = vmul.f32 %v13573_v0, %v886_v51  ;;  %v2863_v23 = vmul.f32 %v13574_v29, %v887_v59  ;;  %vm13579_vm0 = vcmp.lt.s32.totalorder %v9063_v49, 65  ;;  %v13581_v40 = vunpack.i.l.bf16 %v13577_v58  ;;  %3591 = vmatpush1.bf16.msra.mxu1 %v8247_v16 }
 0x132   : > { %v2864_v11 = vmul.f32 %v13575_v45, %v886_v51  ;;  %v7784_v42 = vpack.c.bf16 %v13576_v26, %v2865_v31  ;;  %v653_v17 = vsel %vm13579_vm0, %v8186_v21, %v13578_v20  ;;  %vm13580_vm2 = vmmov %vm13579_vm0  ;;  %v7711_v51 = vpack.c.bf16 %v943_v10, %v13583_v22  ;;  %v13586_v31 = vld [vmem:[#allocation21_spill] sm:$0xff]  ;;  %v13594_v22 = vld [vmem:[#allocation38_spill] sm:$0xff] }
 0x133   : > { %v654_v1 = vsel %vm13580_vm2, %v8185_v30, %v8186_v21  ;;  %vm13582_vm3 = vmmov %vm13579_vm0  ;;  %v7712_v9 = vpack.c.bf16 %v945_v41, %v944_v18  ;;  %v13585_v47 = vrot.slane %v13584_v33, %v8863_v37  ;;  %v13587_v21 = vrot.slane %v13586_v31, %v9028_v27  ;;  %v10413_v41 = vpop.permute.xlu1 %2255 }
 0x134   : > { %v655_v25 = vsel %vm13582_vm3, %v13581_v40, %v8185_v30  ;;  %v7783_v59 = vpack.c.bf16 %v2864_v11, %v2863_v23  ;;  %v2898_v7 = vrot.slane %v7784_v42, 6  ;;  %v13588_v30 = vrot.slane %v13584_v33, %v8994_v5  ;;  %v13592_v42 = vld [vmem:[#allocation43_spill] sm:$0xff] }
 0x135   : > { %v713_v44 = vmul.f32 %v13585_v47, %v653_v17  ;;  %v2683_v57 = vmul.f32 %v13587_v21, %v653_v17  ;;  %v13589_v29 = vrot.slane %v13584_v33, %v9028_v27  ;;  %v13590_v18 = vmov 0   ;;  %v10424_v47 = vpop.permute.xlu0 %8203 }
 0x136   : > { %v711_v0 = vmul.f32 %v13588_v30, %v655_v25  ;;  %3655 = vmatprep.mubr.bf16.mxu0 %v13590_v18  ;;  %v976_v23 = vrot.slane %v7711_v51, 6  ;;  %v977_v45 = vrot.slane %v7712_v9, 6  ;;  %v2897_v11 = vrot.slane %v7783_v59, 6  ;;  %2906 = vst [vmem:[#allocation3 + $0x158] sm:$0xcc] %v2898_v7 }
 0x137   : > { %v712_v10 = vmul.f32 %v13589_v29, %v654_v1  ;;  %v13591_v16 = vrot.slane %v13586_v31, %v8818_v14  ;;  %v13593_v17 = vrot.slane %v13586_v31, %v8994_v5  ;;  %v7776_v33 = vpack.c.bf16 %v13594_v22, %v2683_v57 }
 0x138   : > { %v7703_v58 = vpack.c.bf16 %v711_v0, %v13592_v42  ;;  %984 = vst [vmem:[#allocation3 + $0x118] sm:$0xcc] %v976_v23  ;;  %985 = vst [vmem:[#allocation3 + $0x98] sm:$0xcc] %v977_v45  ;;  %v8201_v51 = vunpack.i.h.bf16 %v10349_v36  ;;  %v8200_v9 = vunpack.i.l.bf16 %v10349_v36  ;;  %v8195_v59 = vunpack.i.l.bf16 %v10373_v24 }
 0x139   : > { %v2681_v26 = vmul.f32 %v13591_v16, %v655_v25  ;;  %v7704_v20 = vpack.c.bf16 %v713_v44, %v712_v10  ;;  %v2682_v40 = vmul.f32 %v13593_v17, %v654_v1  ;;  %2905 = vst [vmem:[#allocation3 + $0xa0] sm:$0xcc] %v2897_v11  ;;  %v8196_v25 = vunpack.i.h.bf16 %v10373_v24  ;;  %v8248_v44 = vld [vmem:[#allocation3 + $0x8c] ss:$-88 sps:$4 sm:$0x3f]  }
 0x13a   : > { %v744_v7 = vrot.slane %v7703_v58, 6  ;;  %v2716_v1 = vrot.slane %v7776_v33, 6  ;;  %v13595_v57 = vunpack.i.h.bf16 %v9967_v19  ;;  %v772_v0 = vsel %vm770_vm6, %v8200_v9, %v8201_v51  ;;  %v13597_v10 = vld [vmem:[#allocation33_spill] sm:$0xff]  ;;  %7452 = vmatprep.subr.msk.bf16.mxu0 %vm3516_vm7, %v8248_v44  ;;  %v13605_v44 = vld [vmem:[#allocation24_spill] sm:$0xff] }
 0x13b   : > { %v745_v21 = vrot.slane %v7704_v20, 6  ;;  %v7775_v31 = vpack.c.bf16 %v2682_v40, %v2681_v26  ;;  %v13596_v29 = vunpack.i.l.bf16 %v9967_v19  ;;  %v13598_v24 = vunpack.i.h.bf16 %v13597_v10  ;;  %v10454_v20 = vpop.permute.xlu1 %2141 }
 0x13c   : > { %v771_v30 = vsel %vm770_vm6, %v8201_v51, %v13595_v57  ;;  %752 = vst [vmem:[#allocation3 + $0x130] sm:$0xcc] %v744_v7  ;;  %2724 = vst [vmem:[#allocation3 + $0x20] sm:$0xcc] %v2716_v1  ;;  %v13599_v11 = vrot.slane %v8747_v56, %v8994_v5  ;;  %v13600_v19 = vrot.slane %v8747_v56, %v9028_v27  ;;  %v13607_v1 = vld [vmem:[#allocation25_spill] sm:$0xff]  ;;  %vm13644_vm0 = vcmp.lt.s32.totalorder %v9063_v49, 8 }
 0x13d   : > { %v773_v36 = vsel %vm770_vm6, %v13596_v29, %v8200_v9  ;;  %v539_v23 = vsel %vm538_vm5, %v8196_v25, %v13598_v24  ;;  %753 = vst [vmem:[#allocation3 + $0x48] sm:$0xcc] %v745_v21  ;;  %v2715_v45 = vrot.slane %v7775_v31, 6  ;;  %v13601_v42 = vrot.slane %v8747_v56, %v8863_v37  ;;  %vm13645_vm2 = vmmov %vm13644_vm0 }
 0x13e   : > { %v829_v16 = vmul.f32 %v13599_v11, %v773_v36  ;;  %v830_v26 = vmul.f32 %v13600_v19, %v772_v0  ;;  %v13602_v17 = vrot.slane %v8763_v53, %v8818_v14  ;;  %v13603_v22 = vrot.slane %v8763_v53, %v8994_v5 }
 0x13f   : > { %v831_v58 = vmul.f32 %v13601_v42, %v771_v30  ;;  %v13604_v51 = vrot.slane %v8763_v53, %v9028_v27  ;;  %v13606_v7 = vrot.slane %v13605_v44, %v8863_v37  ;;  %2723 = vst [vmem:[#allocation3 + $0x160] sm:$0xcc] %v2715_v45  ;;  %v13608_v57 = vrot.slane %v13607_v1, %v9028_v27 }
 0x140   : > { %v2774_v40 = vmul.f32 %v13602_v17, %v773_v36  ;;  %v2775_v33 = vmul.f32 %v13603_v22, %v772_v0  ;;  %v7707_v56 = vpack.c.bf16 %v829_v16, %v10036_v4  ;;  %v540_v36 = vsel %vm538_vm5, %v8195_v59, %v8196_v25  ;;  %v10474_v0 = vpop.permute.xlu0 %8208 }
 0x141   : > { %v2776_v9 = vmul.f32 %v13604_v51, %v771_v30  ;;  %v599_v21 = vmul.f32 %v13606_v7, %v539_v23  ;;  %v7708_v31 = vpack.c.bf16 %v831_v58, %v830_v26  ;;  %v2594_v29 = vmul.f32 %v13608_v57, %v539_v23  ;;  %v13614_v26 = vld [vmem:[#allocation45_spill] sm:$0xff]  ;;  %v13617_v51 = vld [vmem:[#allocation47_spill] sm:$0xff] }
 0x142   : > { %v7779_v24 = vpack.c.bf16 %v2775_v33, %v2774_v40  ;;  %v13609_v30 = vunpack.i.l.bf16 %v13597_v10  ;;  %v13610_v4 = vrot.slane %v13605_v44, %v9028_v27  ;;  %866 = vst [vmem:[#allocation3 + $0x118] sm:$0x33] %v7707_v56  ;;  %v13611_v23 = vrot.slane %v13605_v44, %v8994_v5  ;;  %v10509_v56 = vpop.permute.xlu1 %1692 }
 0x143   : > { %v7780_v53 = vpack.c.bf16 %v10044_v38, %v2776_v9  ;;  %867 = vst [vmem:[#allocation3 + $0x98] sm:$0x33] %v7708_v31  ;;  %v13612_v16 = vrot.slane %v13607_v1, %v8818_v14  ;;  %v13613_v38 = vrot.slane %v13607_v1, %v8994_v5  ;;  %v13615_v58 = vunpack.i.h.bf16 %v10060_v60  ;;  %v13619_v31 = vld [vmem:[#allocation34_spill] sm:$0xff] }
 0x144   : > { %v541_v45 = vsel %vm538_vm5, %v13609_v30, %v8195_v59  ;;  %v598_v11 = vmul.f32 %v13610_v4, %v540_v36  ;;  %v7772_v59 = vpack.c.bf16 %v13614_v26, %v2594_v29  ;;  %2812 = vst [vmem:[#allocation3 + $0xa0] sm:$0x33] %v7779_v24  ;;  %v13616_v40 = vrot.slane %v13504_v28, %v8818_v14  ;;  %v13624_v4 = vld [vmem:[#allocation27_spill] sm:$0xff] }
 0x145   : > { %v597_v25 = vmul.f32 %v13611_v23, %v541_v45  ;;  %v2592_v19 = vmul.f32 %v13612_v16, %v541_v45  ;;  %v2593_v10 = vmul.f32 %v13613_v38, %v540_v36  ;;  %2813 = vst [vmem:[#allocation3 + $0x158] sm:$0x33] %v7780_v53  ;;  %v2261_v17 = vsel %vm2259_vm9, %v13615_v58, %v10413_v41  ;;  %v13622_v53 = vld [vmem:[#allocation26_spill] sm:$0xff]  ;;  %v10532_v16 = vpop.permute.xlu0 %2023 }
 0x146   : > { %v7700_v42 = vpack.c.bf16 %v599_v21, %v598_v11  ;;  %v2317_v22 = vmul.f32 %v13616_v40, %v10135_v15  ;;  %v8206_v33 = vunpack.i.h.bf16 %v10424_v47  ;;  %2631 = vst [vmem:[#allocation3 + $0x20] sm:$0x33] %v7772_v59  ;;  %v13618_v7 = vrot.slane %v13504_v28, %v8994_v5 }
 0x147   : > { %v7699_v9 = vpack.c.bf16 %v597_v25, %v13617_v51  ;;  %v7771_v44 = vpack.c.bf16 %v2593_v10, %v2592_v19  ;;  %v8205_v60 = vunpack.i.l.bf16 %v10424_v47  ;;  %v13620_v1 = vunpack.i.h.bf16 %v13619_v31  ;;  %v13631_v51 = vld [vmem:[#allocation48_spill] sm:$0xff] }
 0x148   : > { %v2318_v21 = vmul.f32 %v13618_v7, %v2261_v17  ;;  %635 = vst [vmem:[#allocation3 + $0x48] sm:$0x33] %v7700_v42  ;;  %v2178_v57 = vrot.slane %v8836_v61, %v8818_v14  ;;  %v2182_v29 = vrot.slane %v8836_v61, %v8994_v5  ;;  %v13621_v36 = vunpack.i.h.bf16 %v10104_v2 }
 0x149   : > { %v421_v15 = vsel %vm420_vm8, %v8206_v33, %v13620_v1  ;;  %634 = vst [vmem:[#allocation3 + $0x130] sm:$0x33] %v7699_v9  ;;  %2630 = vst [vmem:[#allocation3 + $0x160] sm:$0x33] %v7771_v44  ;;  %v13623_v30 = vrot.slane %v13622_v53, %v8863_v37  ;;  %v13625_v11 = vrot.slane %v13624_v4, %v9028_v27  ;;  %v13626_v2 = vunpack.i.l.bf16 %v13619_v31  ;;  %v10556_v31 = vld [vmem:[#allocation3 + $0x110] sm:$0xff]  ;;  %v13632_v1 = vld [vmem:[#allocation44_spill] sm:$0xff] }
 0x14a   : > { %v2147_v47 = vsel %vm2145_vm11, %v13621_v36, %v10454_v20  ;;  %v7759_v24 = vpack.c.bf16 %v2318_v21, %v2317_v22  ;;  %v422_v25 = vsel %vm420_vm8, %v8205_v60, %v8206_v33  ;;  %v13627_v38 = vrot.slane %v13622_v53, %v9028_v27 }
 0x14b   : > { %v481_v45 = vmul.f32 %v13623_v30, %v421_v15  ;;  %v2501_v23 = vmul.f32 %v13625_v11, %v421_v15  ;;  %v423_v19 = vsel %vm420_vm8, %v13626_v2, %v8205_v60  ;;  %v13628_v26 = vrot.slane %v13624_v4, %v8994_v5  ;;  %v10561_v30 = vpop.permute.xlu1 %8218 }
 0x14c   : > { %v480_v10 = vmul.f32 %v13627_v38, %v422_v25  ;;  %v2203_v42 = vmul.f32 %v2178_v57, %v10193_v8  ;;  %v2351_v58 = vrot.slane %v7759_v24, 6  ;;  %v13629_v17 = vrot.slane %v13622_v53, %v8994_v5  ;;  %v3199_v8 = vld [vmem:[#allocation3 + $0x1a8] sm:$0xff]  ;;  %v10570_v38 = vpop.permute.xlu0 %8213 }
 0x14d   : > { %v2500_v59 = vmul.f32 %v13628_v26, %v422_v25  ;;  %v13630_v22 = vrot.slane %v13624_v4, %v8818_v14  ;;  %v7768_v9 = vpack.c.bf16 %v13631_v51, %v2501_v23  ;;  %v2204_v7 = vmul.f32 %v2182_v29, %v2147_v47  ;;  %v8250_v53 = vld [vmem:[#allocation3 + $0x88] ss:$-88 sps:$4 sm:$0x3f]  }
 0x14e   : > { %v479_v40 = vmul.f32 %v13629_v17, %v423_v19  ;;  %v7696_v44 = vpack.c.bf16 %v481_v45, %v480_v10  ;;  %v343_v21 = vrot.slane %v8820_v39, %v8994_v5  ;;  %v347_v60 = vrot.slane %v8820_v39, %v9028_v27  ;;  %2359 = vst [vmem:[#allocation3 + $0x148] sm:$0xcc] %v2351_v58 }
 0x14f   : > { %v2499_v33 = vmul.f32 %v13630_v22, %v423_v19  ;;  %v2534_v36 = vrot.slane %v7768_v9, 6  ;;  %v351_v24 = vrot.slane %v8820_v39, %v8863_v37  ;;  %v7755_v47 = vpack.c.bf16 %v2204_v7, %v2203_v42  ;;  %v3195_v39 = vld [vmem:[#allocation3 + $0x188] sm:$0xff]  ;;  %v3191_v19 = vld [vmem:[#allocation3 + $0x150] sm:$0xff] }
 0x150   : > { %v7695_v15 = vpack.c.bf16 %v479_v40, %v13632_v1  ;;  %v513_v29 = vrot.slane %v7696_v44, 6  ;;  %v2385_v45 = vrot.slane %v8828_v32, %v8818_v14  ;;  %v2389_v4 = vrot.slane %v8828_v32, %v8994_v5 }
 0x151   : > { %v7767_v57 = vpack.c.bf16 %v2500_v59, %v2499_v33  ;;  %2542 = vst [vmem:[#allocation3 + $0x1a0] sm:$0xcc] %v2534_v36  ;;  %v2393_v25 = vrot.slane %v8828_v32, %v9028_v27  ;;  %v8211_v2 = vunpack.i.h.bf16 %v10474_v0  ;;  %2241 = vst [vmem:[#allocation3 + $0x148] sm:$0x33] %v7755_v47  ;;  %v8210_v10 = vunpack.i.l.bf16 %v10474_v0 }
 0x152   : > { %v512_v11 = vrot.slane %v7695_v15, 6  ;;  %521 = vst [vmem:[#allocation3 + $0x18] sm:$0xcc] %v513_v29  ;;  %v7411_v26 = vcombine.high %v3195_v39, %v3199_v8  ;;  %v7410_v59 = vcombine.low %v3195_v39, %v3199_v8  ;;  %v7403_v42 = vcombine.high %v10556_v31, %v3191_v19 }
 0x153   : > { %v2533_v23 = vrot.slane %v7767_v57, 6  ;;  %v13633_v58 = vunpack.i.h.bf16 %v10058_v43  ;;  %v3530_v17 = vsel %vm3516_vm7, %v8250_v53, 0  ;;  %v1731_v40 = vrot.slane %v8891_v52, %v8818_v14  ;;  %v10589_v57 = vpop.permute.xlu1 %8228  ;;  %v13636_v53 = vld [vmem:[#allocation54_spill] sm:$0xff] }
 0x154   : > { %520 = vst [vmem:[#allocation3 + $0xd8] sm:$0xcc] %v512_v11  ;;  %v1735_v22 = vrot.slane %v8891_v52, %v8994_v5  ;;  %v309_v51 = vsel %vm307_vm10, %v8210_v10, %v8211_v2  ;;  %v13634_v9 = vunpack.i.l.bf16 %v10058_v43  ;;  %3592 = vmatprep.subr.bf16.mxu1 %v7411_v26  ;;  %3626 = vmatpush1.bf16.msra.mxu0 %v3530_v17  ;;  %v8220_v17 = vunpack.i.l.bf16 %v10561_v30 }
 0x155   : > { %2541 = vst [vmem:[#allocation3 + $0xd0] sm:$0xcc] %v2533_v23  ;;  %v308_v32 = vsel %vm307_vm10, %v8211_v2, %v13633_v58  ;;  %v366_v8 = vmul.f32 %v347_v60, %v309_v51  ;;  %v2411_v15 = vmul.f32 %v2389_v4, %v309_v51  ;;  %3593 = vmatpush1.bf16.msra.mxu1 %v7410_v59  ;;  %v13637_v60 = vld [vmem:[#allocation36_spill] sm:$0xff]  ;;  %v10600_v23 = vpop.permute.xlu0 %8223  ;;  %v13639_v2 = vld [vmem:[#allocation46_spill] sm:$0xff]  ;;  %vm13646_vm3 = vcmp.lt.s32.totalorder %v9063_v49, 7 }
 0x156   : > { %v367_v0 = vmul.f32 %v351_v24, %v308_v32  ;;  %v2412_v33 = vmul.f32 %v2393_v25, %v308_v32  ;;  %v310_v44 = vsel %vm307_vm10, %v13634_v9, %v8210_v10  ;;  %3594 = vmatprep.subr.bf16.mxu1 %v7403_v42  ;;  %v13635_v24 = vunpack.i.h.bf16 %v10158_v48  ;;  %v8251_v59 = vld [vmem:[#allocation3 + $0x1b4] ss:$-72 sps:$4 sm:$0xff]  }
 0x157   : > { %v365_v7 = vmul.f32 %v343_v21, %v310_v44  ;;  %v2410_v1 = vmul.f32 %v2385_v45, %v310_v44  ;;  %v1756_v29 = vmul.f32 %v1731_v40, %v13636_v53  ;;  %v8221_v21 = vunpack.i.h.bf16 %v10561_v30  ;;  %v3220_v40 = vld [vmem:[#allocation3 + $0x160] sm:$0xff]  ;;  %v8253_v53 = vld [vmem:[#allocation3 + $0x1b0] ss:$-72 sps:$4 sm:$0xff]  }
 0x158   : > { %v7764_v36 = vpack.c.bf16 %v10129_v54, %v2412_v33  ;;  %v1701_v43 = vsel %vm1698_vm13, %v13635_v24, %v10509_v56  ;;  %v7692_v45 = vpack.c.bf16 %v367_v0, %v366_v8  ;;  %v13638_v54 = vld [vmem:[#allocation31_spill] sm:$0xff]  ;;  %v13640_v39 = vunpack.i.h.bf16 %v13639_v2  ;;  %v13641_v0 = vld [vmem:[#allocation50_spill] sm:$0xff] }
 0x159   : > { %v7691_v47 = vpack.c.bf16 %v365_v7, %v13637_v60  ;;  %v7763_v4 = vpack.c.bf16 %v2411_v15, %v2410_v1  ;;  %v1757_v11 = vmul.f32 %v1735_v22, %v1701_v43  ;;  %v2060_v25 = vrot.slane %v13638_v54, %v8818_v14  ;;  %v3224_v22 = vld [vmem:[#allocation3 + $0xa0] sm:$0xff]  ;;  %v2144_v15 = vpop.permute.xlu1 %2143  ;;  %v13658_v30 = vld [vmem:[#allocation66_spill] sm:$0xff] }
 0x15a   : > { %2449 = vst [vmem:[#allocation3 + $0x1a0] sm:$0x33] %v7764_v36  ;;  %v2064_v48 = vrot.slane %v13638_v54, %v8994_v5  ;;  %v2029_v10 = vsel %vm2027_vm12, %v13640_v39, %v10532_v16  ;;  %v7402_v26 = vcombine.low %v10556_v31, %v3191_v19  ;;  %403 = vst [vmem:[#allocation3 + $0x18] sm:$0x33] %v7692_v45  ;;  %v13642_v31 = vld [vmem:[#allocation32_spill] sm:$0xff]  ;;  %v8216_v8 = vunpack.i.h.bf16 %v10570_v38 }
 0x15b   : > { %402 = vst [vmem:[#allocation3 + $0xd8] sm:$0x33] %v7691_v47  ;;  %2448 = vst [vmem:[#allocation3 + $0xd0] sm:$0x33] %v7763_v4  ;;  %v7739_v42 = vpack.c.bf16 %v1757_v11, %v1756_v29  ;;  %v1381_v58 = vrot.slane %v13433_v12, %v8818_v14  ;;  %v1385_v32 = vrot.slane %v13433_v12, %v8994_v5  ;;  %v8215_v1 = vunpack.i.l.bf16 %v10570_v38  ;;  %v13643_v47 = vld [vmem:[#allocation49_spill] sm:$0xff] }
 0x15c   : > { %v2085_v33 = vmul.f32 %v2060_v25, %v13641_v0  ;;  %v2086_v51 = vmul.f32 %v2064_v48, %v2029_v10  ;;  %3595 = vmatpush1.bf16.msra.mxu1 %v7402_v26  ;;  %v1946_v19 = vrot.slane %v13642_v31, %v8818_v14  ;;  %v1950_v9 = vrot.slane %v13642_v31, %v8994_v5  ;;  %v8256_v25 = vld [vmem:[#allocation3 + $0x170] ss:$40 sps:$4 sm:$0x3f]   ;;  %v2258_v48 = vpop.permute.xlu0 %2257 }
 0x15d   : > { %1794 = vst [vmem:[#allocation3 + $0x190] sm:$0x33] %v7739_v42  ;;  %3596 = vmatprep.subr.bf16.mxu1 %v8251_v59  ;;  %v1351_v44 = vsel %vm1348_vm15, %v8220_v17, %v8221_v21  ;;  %v1352_v7 = vsel %vm1348_vm15, %v10204_v6, %v8220_v17  ;;  %v7437_v29 = vcombine.high %v3220_v40, %v3224_v22  ;;  %v8254_v6 = vld [vmem:[#allocation3 + $0x174] ss:$40 sps:$4 sm:$0x3f]   ;;  %v8231_v42 = vunpack.i.h.bf16 %v10589_v57 }
 0x15e   : > { %v7751_v36 = vpack.c.bf16 %v2086_v51, %v2085_v33  ;;  %v1406_v24 = vmul.f32 %v1381_v58, %v1352_v7  ;;  %v1407_v43 = vmul.f32 %v1385_v32, %v1351_v44  ;;  %v1915_v60 = vsel %vm1913_vm14, %v8215_v1, %v8216_v8  ;;  %v8257_v7 = vld [vmem:[#allocation3 + $0x24] ss:$312 sps:$4 sm:$0xff]  }
 0x15f   : > { %v1916_v45 = vsel %vm1913_vm14, %v13643_v47, %v8215_v1  ;;  %v7436_v4 = vcombine.low %v3220_v40, %v3224_v22  ;;  %v1499_v11 = vrot.slane %v13468_v13, %v8818_v14  ;;  %v1972_v26 = vmul.f32 %v1950_v9, %v1915_v60  ;;  %3627 = vmatprep.subr.bf16.mxu0 %v7437_v29 }
 0x160   : > { %v2119_v2 = vrot.slane %v7751_v36, 6  ;;  %v7727_v39 = vpack.c.bf16 %v1407_v43, %v1406_v24  ;;  %v1971_v10 = vmul.f32 %v1946_v19, %v1916_v45  ;;  %3597 = vmatpush1.bf16.msra.mxu1 %v8253_v53  ;;  %v1503_v59 = vrot.slane %v13468_v13, %v8994_v5  ;;  %v1695_v36 = vpop.permute.xlu1 %1694  ;;  %v13648_v45 = vld [vmem:[#allocation59_spill] sm:$0xff] }
 0x161   : > { %7454 = vmatprep.subr.msk.bf16.mxu1 %vm3516_vm7, %v8254_v6  ;;  %3628 = vmatpush1.bf16.msra.mxu0 %v7436_v4  ;;  %v8230_v58 = vunpack.i.l.bf16 %v10589_v57  ;;  %v1613_v32 = vrot.slane %v13445_v62, %v8818_v14  ;;  %v1617_v22 = vrot.slane %v13445_v62, %v8994_v5  ;;  %v8226_v0 = vunpack.i.h.bf16 %v10600_v23 }
 0x162   : > { %2127 = vst [vmem:[#allocation3 + $0x178] sm:$0xcc] %v2119_v2  ;;  %v1440_v17 = vrot.slane %v7727_v39, 6  ;;  %v7747_v40 = vpack.c.bf16 %v1972_v26, %v1971_v10  ;;  %v8260_v33 = vld [vmem:[#allocation3 + $0x14c] ss:$-120 sps:$4 sm:$0xff]   ;;  %v8225_v9 = vunpack.i.l.bf16 %v10600_v23  ;;  %v3536_v44 = vsel %vm3516_vm7, %v8256_v25, 0 }
 0x163   : > { %v1469_v51 = vsel %vm13644_vm0, %v8230_v58, %v8231_v42  ;;  %v1470_v19 = vsel %vm13645_vm2, %v10272_v63, %v8230_v58  ;;  %7451 = vmatmul.mubr.msk.bf16.vlgmr.msra.gmra.mxu1 %vm13143_vm1, %v10359_v46  ;;  %v8262_v1 = vld [vmem:[#allocation3 + $0x148] ss:$-120 sps:$4 sm:$0xff]   ;;  %v2186_v53 = vrot.slane %v8836_v61, %v9028_v27  ;;  %v2190_v63 = vrot.slane %v8836_v61, %v8863_v37  ;;  %vm13647_vm0 = vmmov %vm13646_vm3  ;;  %v2026_v61 = vpop.permute.xlu0 %2025  ;;  %v8259_v10 = vld [vmem:[#allocation3 + $0x20] ss:$312 sps:$4 sm:$0xff]  }
 0x164   : > { %1448 = vst [vmem:[#allocation3 + $0x138] sm:$0xcc] %v1440_v17  ;;  %2009 = vst [vmem:[#allocation3 + $0x178] sm:$0x33] %v7747_v40  ;;  %v1524_v24 = vmul.f32 %v1499_v11, %v1470_v19  ;;  %v1525_v43 = vmul.f32 %v1503_v59, %v1469_v51  ;;  %3667 = vmatpush1.bf16.msra.mxu1 %v3536_v44  ;;  %v1583_v29 = vsel %vm13646_vm3, %v8225_v9, %v8226_v0  ;;  %v13650_v58 = vld [vmem:[#allocation53_spill] sm:$0xff]  ;;  %v13652_v19 = vld [vmem:[#allocation67_spill] sm:$0xff]  ;;  %v1345_v44 = vpop.permute.xlu1 %1344 }
 0x165   : > { %v1584_v60 = vsel %vm13647_vm0, %v10237_v3, %v8225_v9  ;;  %3668 = vmatprep.subr.bf16.mxu1 %v8257_v7  ;;  %v2146_v47 = vsel %vm2145_vm11, %v10454_v20, %v2144_v15  ;;  %v13649_v6 = vunpack.i.l.bf16 %v13648_v45  ;;  %v1639_v2 = vmul.f32 %v1617_v22, %v1583_v29  ;;  %3629 = vmatprep.subr.bf16.mxu0 %v8260_v33  ;;  %vm13662_vm3 = vmmov %vm13645_vm2 }
 0x166   : > { %v7731_v11 = vpack.c.bf16 %v1525_v43, %v1524_v24  ;;  %v1638_v25 = vmul.f32 %v1613_v32, %v1584_v60  ;;  %v2205_v39 = vmul.f32 %v2186_v53, %v2146_v47  ;;  %v2300_v3 = vrot.slane %v13504_v28, %v9028_v27  ;;  %3630 = vmatpush1.bf16.msra.mxu0 %v8262_v1  ;;  %v13654_v60 = vld [vmem:[#allocation62_spill] sm:$0xff] }
 0x167   : > { %v2153_v4 = vsel %vm2145_vm11, %v2144_v15, %v13649_v6  ;;  %v2304_v59 = vrot.slane %v13504_v28, %v8863_v37  ;;  %v2260_v20 = vsel %vm2259_vm9, %v10413_v41, %v2258_v48  ;;  %v13651_v32 = vunpack.i.l.bf16 %v13650_v58  ;;  %3696 = vmatprep.mubr.bf16.mxu1 %v13590_v18  ;;  %v1912_v29 = vpop.permute.xlu0 %1911 }
 0x168   : > { %v2206_v26 = vmul.f32 %v2190_v63, %v2153_v4  ;;  %1562 = vst [vmem:[#allocation3 + $0x1b8] sm:$0x33] %v7731_v11  ;;  %v7735_v15 = vpack.c.bf16 %v1639_v2, %v1638_v25  ;;  %3669 = vmatpush1.bf16.msra.mxu1 %v8259_v10  ;;  %v1739_v40 = vrot.slane %v8891_v52, %v9028_v27  ;;  %v13653_v41 = vunpack.i.l.bf16 %v13652_v19  ;;  %v13656_v25 = vld [vmem:[#allocation42_spill] sm:$0xff] }
 0x169   : > { %v2267_v17 = vsel %vm2259_vm9, %v2258_v48, %v13651_v32  ;;  %v1743_v22 = vrot.slane %v8891_v52, %v8863_v37  ;;  %v2319_v33 = vmul.f32 %v2300_v3, %v2260_v20  ;;  %v1700_v48 = vsel %vm1698_vm13, %v10509_v56, %v1695_v36 }
 0x16a   : > { %v7756_v28 = vpack.c.bf16 %v2206_v26, %v2205_v39  ;;  %v2320_v51 = vmul.f32 %v2304_v59, %v2267_v17  ;;  %v1699_v9 = vsel %vm1698_vm13, %v1695_v36, %v13653_v41  ;;  %v1672_v7 = vrot.slane %v7735_v15, 6  ;;  %v1463_v15 = vpop.permute.xlu1 %1462  ;;  %v13660_v17 = vld [vmem:[#allocation14_spill] sm:$0xff] }
 0x16b   : > { %v1759_v1 = vmul.f32 %v1743_v22, %v1699_v9  ;;  %v2068_v52 = vrot.slane %v13638_v54, %v9028_v27  ;;  %v1758_v43 = vmul.f32 %v1739_v40, %v1700_v48  ;;  %v2072_v53 = vrot.slane %v13638_v54, %v8863_v37 }
 0x16c   : > { %2242 = vst [vmem:[#allocation3 + $0x8] sm:$0x33] %v7756_v28  ;;  %v7760_v24 = vpack.c.bf16 %v2320_v51, %v2319_v33  ;;  %v2028_v63 = vsel %vm2027_vm12, %v10532_v16, %v2026_v61  ;;  %1680 = vst [vmem:[#allocation3 + $0x1b8] sm:$0xcc] %v1672_v7  ;;  %v13655_v47 = vunpack.i.l.bf16 %v13654_v60  ;;  %v1389_v45 = vrot.slane %v13433_v12, %v9028_v27  ;;  %v1577_v33 = vpop.permute.xlu0 %1576 }
 0x16d   : > { %v2087_v36 = vmul.f32 %v2068_v52, %v2028_v63  ;;  %v1393_v6 = vrot.slane %v13433_v12, %v8863_v37  ;;  %v7740_v54 = vpack.c.bf16 %v1759_v1, %v1758_v43  ;;  %v13657_v2 = vunpack.i.l.bf16 %v13656_v25  ;;  %v13663_v52 = vld [vmem:[#allocation9_spill] sm:$0xff] }
 0x16e   : > { %v2035_v56 = vsel %vm2027_vm12, %v2026_v61, %v13655_v47  ;;  %v2352_v4 = vrot.slane %v7760_v24, 6  ;;  %v1350_v61 = vsel %vm1348_vm15, %v8221_v21, %v1345_v44  ;;  %v1954_v10 = vrot.slane %v13642_v31, %v9028_v27 }
 0x16f   : > { %v2088_v11 = vmul.f32 %v2072_v53, %v2035_v56  ;;  %v1349_v16 = vsel %vm1348_vm15, %v1345_v44, %v13657_v2  ;;  %v1958_v12 = vrot.slane %v13642_v31, %v8863_v37  ;;  %1795 = vst [vmem:[#allocation3 + $0xb8] sm:$0x33] %v7740_v54  ;;  %v1408_v3 = vmul.f32 %v1389_v45, %v1350_v61  ;;  %v3196_v61 = vld [vmem:[#allocation3 + $0x138] sm:$0xff] }
 0x170   : > { %v1409_v39 = vmul.f32 %v1393_v6, %v1349_v16  ;;  %2360 = vst [vmem:[#allocation3 + $0x8] sm:$0xcc] %v2352_v4  ;;  %v1914_v59 = vsel %vm1913_vm14, %v8216_v8, %v1912_v29  ;;  %v13659_v20 = vunpack.i.l.bf16 %v13658_v30  ;;  %v1820_v31 = vrot.slane %v13660_v17, %v8818_v14  ;;  %v13666_v4 = vld [vmem:[#allocation8_spill] sm:$0xff] }
 0x171   : > { %v7752_v26 = vpack.c.bf16 %v2088_v11, %v2087_v36  ;;  %v1973_v58 = vmul.f32 %v1954_v10, %v1914_v59  ;;  %v1824_v40 = vrot.slane %v13660_v17, %v8994_v5  ;;  %v1507_v38 = vrot.slane %v13468_v13, %v9028_v27 }
 0x172   : > { %v1921_v21 = vsel %vm1913_vm14, %v1912_v29, %v13659_v20  ;;  %v7728_v28 = vpack.c.bf16 %v1409_v39, %v1408_v3  ;;  %v1511_v8 = vrot.slane %v13468_v13, %v8863_v37  ;;  %v13661_v41 = vunpack.i.l.bf16 %v10002_v50  ;;  %v8266_v3 = vld [vmem:[#allocation3 + $0x11c] ss:$-16 sps:$4 sm:$0xff]  }
 0x173   : > { %v1974_v32 = vmul.f32 %v1958_v12, %v1921_v21  ;;  %v2120_v22 = vrot.slane %v7752_v26, 6  ;;  %v1835_v19 = vcombine.low %v1820_v31, %v1824_v40  ;;  %v1468_v44 = vsel %vm13662_vm3, %v8231_v42, %v1463_v15  ;;  %v3200_v2 = vld [vmem:[#allocation3 + $0x1b8] sm:$0xff] }
 0x174   : > { %v1467_v9 = vsel %vm13645_vm2, %v1463_v15, %v13661_v41  ;;  %v1441_v7 = vrot.slane %v7728_v28, 6  ;;  %v1526_v48 = vmul.f32 %v1507_v38, %v1468_v44  ;;  %v1621_v13 = vrot.slane %v13445_v62, %v9028_v27  ;;  %vm13665_vm2 = vmmov %vm13647_vm0  ;;  %v8271_v21 = vld [vmem:[#allocation3 + $0x118] ss:$-16 sps:$4 sm:$0xff]   ;;  %v8284_v40 = vld [vmem:[#allocation3 + $0x1c] ss:$48 sps:$4 sm:$0xff]  }
 0x175   : > { %v7748_v51 = vpack.c.bf16 %v1974_v32, %v1973_v58  ;;  %2128 = vst [vmem:[#allocation3 + $0xc8] sm:$0xcc] %v2120_v22  ;;  %v1527_v1 = vmul.f32 %v1511_v8, %v1467_v9  ;;  %v1843_v24 = vmul.f32 %v1835_v19, %v13663_v52  ;;  %v1625_v50 = vrot.slane %v13445_v62, %v8863_v37  ;;  %v8272_v58 = vld [vmem:[#allocation3 + $0xdc] ss:$88 sps:$4 sm:$0xff]   ;;  %v8283_v31 = vld [vmem:[#allocation3 + $0x98] ss:$-56 sps:$4 sm:$0xff]  }
 0x176   : > { %v13664_v43 = vunpack.i.l.bf16 %v9930_v55  ;;  %v1582_v42 = vsel %vm13665_vm2, %v8226_v0, %v1577_v33  ;;  %1449 = vst [vmem:[#allocation3 + $0x140] sm:$0xcc] %v1441_v7  ;;  %v1828_v62 = vrot.slane %v13660_v17, %v9028_v27  ;;  %v1832_v55 = vrot.slane %v13660_v17, %v8863_v37  ;;  %v8281_v32 = vld [vmem:[#allocation3 + $0x9c] ss:$-56 sps:$4 sm:$0xff]   ;;  %v8276_v17 = vld [vmem:[#allocation3 + $0xd8] ss:$88 sps:$4 sm:$0xff]  }
 0x177   : > { %2010 = vst [vmem:[#allocation3 + $0xc8] sm:$0x33] %v7748_v51  ;;  %v7732_v53 = vpack.c.bf16 %v1527_v1, %v1526_v48  ;;  %v1640_v63 = vmul.f32 %v1621_v13, %v1582_v42  ;;  %v1851_v29 = vcombine.high %v1843_v24, %v1843_v24  ;;  %v8268_v47 = vld [vmem:[#allocation3 + $0xc] ss:$408 sps:$4 sm:$0xff]   ;;  %v8270_v56 = vld [vmem:[#allocation3 + $0x8] ss:$408 sps:$4 sm:$0xff]   ;;  %v7413_v12 = vcombine.high %v3196_v61, %v3200_v2 }
 0x178   : > { %v1581_v57 = vsel %vm13647_vm0, %v1577_v33, %v13664_v43  ;;  %3670 = vmatprep.subr.bf16.mxu1 %v8268_v47  ;;  %v1836_v23 = vcombine.low %v1828_v62, %v1832_v55  ;;  %v7412_v26 = vcombine.low %v3196_v61, %v3200_v2  ;;  %v8286_v22 = vld [vmem:[#allocation3 + $0x18] ss:$48 sps:$4 sm:$0xff]   ;;  %v7532_v28 = vld [vmem:[%s12974_s0 + $0x45] ss:$8 sm:$0xf]  ;;  %vm13690_vm3 = vcmp.lt.s32.totalorder %v9063_v49, 57 }
 0x179   : > { %v1641_v60 = vmul.f32 %v1625_v50, %v1581_v57  ;;  %1563 = vst [vmem:[#allocation3 + $0x28] sm:$0x33] %v7732_v53  ;;  %v7743_v36 = vpack.c.bf16 %v1851_v29, %v1843_v24  ;;  %3671 = vmatpush1.bf16.msra.mxu1 %v8270_v56  ;;  %v7533_v38 = vld [vmem:[%s12974_s0 + $0x45] ss:$8 sm:$0xf0]  ;;  %v10785_v33 = vpop.permute.xlu0 %3237  ;;  %vm13691_vm0 = vmmov %vm13690_vm3 }
 0x17a   : > { %v1844_v54 = vmul.f32 %v1836_v23, %v13666_v4  ;;  %v10783_v8 = vor.u32 %v7533_v38, %v7532_v28  ;;  %v13667_v41 = vld [vmem:[#allocation12_spill] sm:$0xff]  ;;  %v13668_v48 = vld [vmem:[#allocation13_spill] sm:$0xff]  ;;  %vm13698_vm2 = vmmov %vm13691_vm0 }
 0x17b   : > { %v7736_v45 = vpack.c.bf16 %v1641_v60, %v1640_v63  ;;  %v1887_v0 = vrot.slane %v7743_v36, 6  ;;  %v7497_v4 = vld [vmem:[%s12974_s0 + $0x7] ss:$8 sm:$0xf0] }
 0x17c   : > { %v1852_v11 = vcombine.high %v1844_v54, %v1844_v54  ;;  %v5205_v1 = vrot.slane %v10783_v8, %v13668_v48  ;;  %v5209_v62 = vrot.slane %v10783_v8, %v8560_v34  ;;  %v5213_v55 = vrot.slane %v10783_v8, %v8563_v35 }
 0x17d   : > { %v1673_v6 = vrot.slane %v7736_v45, 6  ;;  %1895 = vst [vmem:[#allocation3 + $0x190] sm:$0xcc] %v1887_v0 }
 0x17e   : > { %v7744_v25 = vpack.c.bf16 %v1852_v11, %v1844_v54 }
 0x17f   : > { %1681 = vst [vmem:[#allocation3 + $0x28] sm:$0xcc] %v1673_v6 }
 0x180   : > { %v1888_v16 = vrot.slane %v7744_v25, 6 }
 0x182   : > { %1896 = vst [vmem:[#allocation3 + $0xb8] sm:$0xcc] %v1888_v16 }
 0x184   : > { %v8263_v39 = vld [vmem:[#allocation3 + $0x194] ss:$-24 sps:$4 sm:$0xff]   ;;  %v8265_v10 = vld [vmem:[#allocation3 + $0x190] ss:$-24 sps:$4 sm:$0xff]  }
 0x185   : > { %3631 = vmatprep.subr.bf16.mxu0 %v8263_v39 }
 0x186   : > { %3632 = vmatpush1.bf16.msra.mxu0 %v8265_v10  ;;  %v8278_v59 = vld [vmem:[#allocation3 + $0x144] ss:$-280 sps:$4 sm:$0xff]   ;;  %v8280_v15 = vld [vmem:[#allocation3 + $0x140] ss:$-280 sps:$4 sm:$0xff]  }
 0x187   : > { %3633 = vmatprep.subr.bf16.mxu0 %v7413_v12  ;;  %v5217_v12 = vrot.slane %v10783_v8, %v8818_v14 }
 0x189   : > { %v8274_v30 = vld [vmem:[#allocation3 + $0xbc] ss:$16 sps:$4 sm:$0xff]   ;;  %v8277_v20 = vld [vmem:[#allocation3 + $0xb8] ss:$16 sps:$4 sm:$0xff]  }
 0x18a   : > { %3634 = vmatpush1.bf16.msra.mxu0 %v7412_v26  ;;  %3672 = vmatprep.subr.bf16.mxu1 %v8274_v30  ;;  %v5221_v26 = vrot.slane %v10783_v8, %v8994_v5 }
 0x18b   : > { %3635 = vmatprep.subr.bf16.mxu0 %v8266_v3  ;;  %3673 = vmatpush1.bf16.msra.mxu1 %v8277_v20 }
 0x18c   : > { %3674 = vmatprep.subr.bf16.mxu1 %v8278_v59 }
 0x18e   : > { %3636 = vmatpush1.bf16.msra.mxu0 %v8271_v21 }
 0x18f   : > { %3637 = vmatprep.subr.bf16.mxu0 %v8272_v58  ;;  %3675 = vmatpush1.bf16.msra.mxu1 %v8280_v15 }
 0x190   : > { %3676 = vmatprep.subr.bf16.mxu1 %v8281_v32 }
 0x192   : > { %3638 = vmatpush1.bf16.msra.mxu0 %v8276_v17 }
 0x193   : > { %3677 = vmatpush1.bf16.msra.mxu1 %v8283_v31  ;;  %v5225_v31 = vrot.slane %v10783_v8, %v9028_v27 }
 0x194   : > { %3678 = vmatprep.subr.bf16.mxu1 %v8284_v40  ;;  %v5229_v40 = vrot.slane %v10783_v8, %v8863_v37  ;;  %v7611_v37 = vld [vmem:[%s12974_s0 + $0xc2] ss:$8 sm:$0xf0] }
 0x195   : > { %7453 = vmatmul.mubr.msk.bf16.vlgmr.msra.gmra.mxu0 %vm13143_vm1, %v10359_v46 }
 0x196   : > { %6943 = vmatprep.mubr.bf16.mxu0 %v13590_v18 }
 0x197   : > { %3679 = vmatpush1.bf16.msra.mxu1 %v8286_v22 }
 0x19a   : > { %7455 = vmatmul.mubr.msk.bf16.vlgmr.msra.gmra.mxu1 %vm13143_vm1, %v10359_v46  ;;  %v5201_v46 = vrot.slane %v10783_v8, %v13667_v41 }
 0x19b   : > { %6984 = vmatprep.mubr.bf16.mxu1 %v13590_v18 }
 0x1ef   : > { %v3575_v51 = vpop.f32.mrf.mxu0 }
 0x1f0   : > { %v3576_v19 = vadd.f32 %v3575_v51, %v10785_v33 }
 0x1f1   : > { %v3577_v9 = vpop.f32.mrf.mxu0 }
 0x1f2   : > { %v10790_v44 = vmax.f32 %v3576_v19, 0.0  ;;  %v3578_v7 = vadd.f32 %v3577_v9, %v10785_v33 }
 0x1f3   : > { %v3579_v13 = vpop.f32.mrf.mxu0 }
 0x1f4   : > { %v10795_v24 = vmax.f32 %v3578_v7, 0.0  ;;  %4510 = vrot.lane.b32.xlu1 %v10790_v44, %s8350_s29  ;;  %v5238_v50 = vmul.f32 %v5201_v46, %v10790_v44 }
 0x1f5   : > { %v3580_v43 = vpop.f32.mrf.mxu0 }
 0x1f6   : > { %v5239_v57 = vmul.f32 %v5205_v1, %v10795_v24 }
 0x1f8   : > { %4398 = vrot.lane.b32.xlu1 %v10790_v44, %s8349_s28  ;;  %v7849_v42 = vpack.c.bf16 %v5239_v57, %v5238_v50 }
 0x1fa   : > { %v5274_v53 = vrot.slane %v7849_v42, 6 }
 0x1fc   : > { %5282 = vst [vmem:[#allocation3 + $0xe8] sm:$0xcc] %v5274_v53 }
 0x223   : > { %v3616_v63 = vpop.f32.mrf.mxu1 }
 0x224   : > { %v3617_v29 = vadd.f32 %v3616_v63, %v10785_v33 }
 0x225   : > { %v3618_v60 = vpop.f32.mrf.mxu1 }
 0x226   : > { %v10804_v47 = vmax.f32 %v3617_v29, 0.0  ;;  %v3619_v56 = vadd.f32 %v3618_v60, %v10785_v33 }
 0x227   : > { %v3620_v36 = vpop.f32.mrf.mxu1 }
 0x228   : > { %v10811_v45 = vmax.f32 %v3619_v56, 0.0  ;;  %4514 = vrot.lane.b32.xlu0 %v10804_v47, %s8350_s29  ;;  %4402 = vrot.lane.b32.xlu1 %v10804_v47, %s8349_s28  ;;  %v5240_v0 = vmul.f32 %v5209_v62, %v10804_v47 }
 0x229   : > { %v3621_v23 = vpop.f32.mrf.mxu1 }
 0x22a   : > { %v5241_v6 = vmul.f32 %v5213_v55, %v10811_v45 }
 0x22c   : > { %4626 = vrot.lane.b32.xlu0 %v10790_v44, %s8351_s30  ;;  %4054 = vrot.lane.b32.xlu1 %v10790_v44, %s13279_s17  ;;  %v7850_v54 = vpack.c.bf16 %v5241_v6, %v5240_v0 }
 0x22e   : > { %v5275_v11 = vrot.slane %v7850_v54, 6 }
 0x230   : > { %4630 = vrot.lane.b32.xlu0 %v10804_v47, %s8351_s30  ;;  %4058 = vrot.lane.b32.xlu1 %v10804_v47, %s13279_s17  ;;  %5283 = vst [vmem:[#allocation3 + $0xf8] sm:$0xcc] %v5275_v11 }
 0x234   : > { %4282 = vrot.lane.b32.xlu0 %v10790_v44, %s8353_s8  ;;  %3942 = vrot.lane.b32.xlu1 %v10790_v44, %s13281_s20 }
 0x238   : > { %4286 = vrot.lane.b32.xlu0 %v10804_v47, %s8353_s8  ;;  %3946 = vrot.lane.b32.xlu1 %v10804_v47, %s13281_s20 }
 0x23c   : > { %4170 = vrot.lane.b32.xlu0 %v10790_v44, %s13280_s18  ;;  %3826 = vrot.lane.b32.xlu1 %v10790_v44, %s8356_s11 }
 0x240   : > { %4174 = vrot.lane.b32.xlu0 %v10804_v47, %s13280_s18  ;;  %3830 = vrot.lane.b32.xlu1 %v10804_v47, %s8356_s11 }
 0x244   : > { %5626 = vrot.lane.b32.xlu0 %v10790_v44, %s8357_s12  ;;  %3714 = vrot.lane.b32.xlu1 %v10790_v44, %s8358_s13 }
 0x248   : > { %5630 = vrot.lane.b32.xlu0 %v10804_v47, %s8357_s12  ;;  %3718 = vrot.lane.b32.xlu1 %v10804_v47, %s8358_s13 }
 0x24c   : > { %5514 = vrot.lane.b32.xlu0 %v10790_v44, %s13122_s14  ;;  %5398 = vrot.lane.b32.xlu1 %v10790_v44, %s8360_s19 }
 0x250   : > { %5518 = vrot.lane.b32.xlu0 %v10804_v47, %s13122_s14  ;;  %5402 = vrot.lane.b32.xlu1 %v10804_v47, %s8360_s19 }
 0x254   : > { %5082 = vrot.lane.b32.xlu0 %v10790_v44, %s8361_s27  ;;  %5286 = vrot.lane.b32.xlu1 %v10790_v44, %s13118_s15 }
 0x255   : > { %v3657_v25 = vpop.f32.mrf.mxu0 }
 0x256   : > { %v3658_v2 = vadd.f32 %v3657_v25, %v10785_v33 }
 0x257   : > { %v3659_v16 = vpop.f32.mrf.mxu0 }
 0x258   : > { %v3660_v61 = vadd.f32 %v3659_v16, %v10785_v33  ;;  %5086 = vrot.lane.b32.xlu0 %v10804_v47, %s8361_s27  ;;  %5290 = vrot.lane.b32.xlu1 %v10804_v47, %s13118_s15  ;;  %v10869_v39 = vmax.f32 %v3658_v2, 0.0 }
 0x259   : > { %v3661_v10 = vpop.f32.mrf.mxu0 }
 0x25a   : > { %v10875_v3 = vmax.f32 %v3660_v61, 0.0  ;;  %v3698_v59 = vpop.f32.mrf.mxu1  ;;  %v5242_v15 = vmul.f32 %v5217_v12, %v10869_v39  ;;  %v7598_v10 = vld [vmem:[%s12974_s0 + $0xc0] ss:$8 sm:$0xf] }
 0x25b   : > { %v3662_v30 = vpop.f32.mrf.mxu0  ;;  %v3699_v20 = vadd.f32 %v3698_v59, %v10785_v33  ;;  %v7599_v12 = vld [vmem:[%s12974_s0 + $0xc0] ss:$8 sm:$0xf0] }
 0x25c   : > { %4738 = vrot.lane.b32.xlu0 %v10790_v44, %s13120_s7  ;;  %4966 = vrot.lane.b32.xlu1 %v10790_v44, %s13126_s22  ;;  %v3700_v21 = vpop.f32.mrf.mxu1  ;;  %v5243_v58 = vmul.f32 %v5221_v26, %v10875_v3  ;;  %v11077_v30 = vor.u32 %v7599_v12, %v7598_v10 }
 0x25d   : > { %v10884_v32 = vmax.f32 %v3699_v20, 0.0  ;;  %v3701_v17 = vadd.f32 %v3700_v21, %v10785_v33  ;;  %v7490_v20 = vld [vmem:[%s12974_s0 + $0x6] ss:$8 sm:$0xf] }
 0x25e   : > { %v3702_v22 = vpop.f32.mrf.mxu1  ;;  %v7851_v28 = vpack.c.bf16 %v5243_v58, %v5242_v15  ;;  %v7491_v21 = vld [vmem:[%s12974_s0 + $0x6] ss:$8 sm:$0xf0] }
 0x25f   : > { %v10891_v38 = vmax.f32 %v3701_v17, 0.0  ;;  %v5244_v33 = vmul.f32 %v5225_v31, %v10884_v32  ;;  %v11093_v17 = vor.u32 %v7491_v21, %v7490_v20  ;;  %v6289_v31 = vrot.slane %v11077_v30, %v13667_v41  ;;  %v7580_v22 = vld [vmem:[%s12974_s0 + $0x85] ss:$8 sm:$0xf] }
 0x260   : > { %4742 = vrot.lane.b32.xlu0 %v10804_v47, %s13120_s7  ;;  %4970 = vrot.lane.b32.xlu1 %v10804_v47, %s13126_s22  ;;  %v3703_v51 = vpop.f32.mrf.mxu1  ;;  %v5276_v19 = vrot.slane %v7851_v28, 6  ;;  %v7581_v28 = vld [vmem:[%s12974_s0 + $0x85] ss:$8 sm:$0xf0] }
 0x261   : > { %v5245_v46 = vmul.f32 %v5229_v40, %v10891_v38  ;;  %v6293_v40 = vrot.slane %v11077_v30, %v13668_v48  ;;  %v7472_v51 = vld [vmem:[%s12974_s0 + $0x3] ss:$8 sm:$0xf]  ;;  %v11127_v20 = vor.u32 %v7581_v28, %v7580_v22  ;;  %v7496_v21 = vld [vmem:[%s12974_s0 + $0x7] ss:$8 sm:$0xf]  ;;  %v4437_v52 = vrot.slane %v11093_v17, %v8560_v34 }
 0x262   : > { %5284 = vst [vmem:[#allocation3 + $0x190] sm:$0xcc] %v5276_v19  ;;  %v7473_v19 = vld [vmem:[%s12974_s0 + $0x3] ss:$8 sm:$0xf0]  ;;  %v4441_v22 = vrot.slane %v11093_v17, %v8563_v35 }
 0x263   : > { %v7852_v8 = vpack.c.bf16 %v5245_v46, %v5244_v33  ;;  %13693 = vst [vmem:[#allocation70_spill] sm:$0xff] %v11127_v20 }
 0x264   : > { %4400 = vrot.lane.b32.xlu0 %v10795_v24, %s8349_s28  ;;  %4854 = vrot.lane.b32.xlu1 %v10790_v44, %s13124_s24 }
 0x265   : > { %v5277_v9 = vrot.slane %v7852_v8, 6  ;;  %v7604_v8 = vld [vmem:[%s12974_s0 + $0xc1] ss:$8 sm:$0xf] }
 0x266   : > { %v10943_v44 = vpop.permute.xlu1 %4510 }
 0x267   : > { %5285 = vst [vmem:[#allocation3 + $0xb8] sm:$0xcc] %v5277_v9  ;;  %13669 = vst [vmem:[#allocation51_spill] sm:$0xff] %v10943_v44  ;;  %v7605_v9 = vld [vmem:[%s12974_s0 + $0xc1] ss:$8 sm:$0xf0] }
 0x268   : > { %4404 = vrot.lane.b32.xlu0 %v10811_v45, %s8349_s28  ;;  %4858 = vrot.lane.b32.xlu1 %v10804_v47, %s13124_s24  ;;  %v11144_v28 = vor.u32 %v7605_v9, %v7604_v8  ;;  %v7574_v8 = vld [vmem:[%s12974_s0 + $0x84] ss:$8 sm:$0xf] }
 0x269   : > { %v7575_v9 = vld [vmem:[%s12974_s0 + $0x84] ss:$8 sm:$0xf0] }
 0x26a   : > { %v10953_v7 = vpop.permute.xlu1 %4398  ;;  %13694 = vst [vmem:[#allocation40_spill] sm:$0xff] %v11144_v28 }
 0x26b   : > { %13670 = vst [vmem:[#allocation57_spill] sm:$0xff] %v10953_v7 }
 0x26c   : > { %4056 = vrot.lane.b32.xlu0 %v10795_v24, %s13279_s17  ;;  %4512 = vrot.lane.b32.xlu1 %v10795_v24, %s8350_s29 }
 0x270   : > { %4060 = vrot.lane.b32.xlu0 %v10811_v45, %s13279_s17  ;;  %4516 = vrot.lane.b32.xlu1 %v10811_v45, %s8350_s29 }
 0x274   : > { %3944 = vrot.lane.b32.xlu0 %v10795_v24, %s13281_s20  ;;  %4628 = vrot.lane.b32.xlu1 %v10795_v24, %s8351_s30 }
 0x278   : > { %3948 = vrot.lane.b32.xlu0 %v10811_v45, %s13281_s20  ;;  %4632 = vrot.lane.b32.xlu1 %v10811_v45, %s8351_s30 }
 0x27c   : > { %3828 = vrot.lane.b32.xlu0 %v10795_v24, %s8356_s11  ;;  %4284 = vrot.lane.b32.xlu1 %v10795_v24, %s8353_s8 }
 0x280   : > { %3832 = vrot.lane.b32.xlu0 %v10811_v45, %s8356_s11  ;;  %4288 = vrot.lane.b32.xlu1 %v10811_v45, %s8353_s8 }
 0x284   : > { %3716 = vrot.lane.b32.xlu0 %v10795_v24, %s8358_s13  ;;  %4172 = vrot.lane.b32.xlu1 %v10795_v24, %s13280_s18 }
 0x288   : > { %3720 = vrot.lane.b32.xlu0 %v10811_v45, %s8358_s13  ;;  %4176 = vrot.lane.b32.xlu1 %v10811_v45, %s13280_s18 }
 0x28c   : > { %5400 = vrot.lane.b32.xlu0 %v10795_v24, %s8360_s19  ;;  %5628 = vrot.lane.b32.xlu1 %v10795_v24, %s8357_s12 }
 0x290   : > { %5404 = vrot.lane.b32.xlu0 %v10811_v45, %s8360_s19  ;;  %5632 = vrot.lane.b32.xlu1 %v10811_v45, %s8357_s12 }
 0x294   : > { %5288 = vrot.lane.b32.xlu0 %v10795_v24, %s13118_s15  ;;  %5516 = vrot.lane.b32.xlu1 %v10795_v24, %s13122_s14 }
 0x298   : > { %5292 = vrot.lane.b32.xlu0 %v10811_v45, %s13118_s15  ;;  %5520 = vrot.lane.b32.xlu1 %v10811_v45, %s13122_s14 }
 0x29a   : > { %v10959_v1 = vpop.permute.xlu0 %4514  ;;  %v10961_v13 = vpop.permute.xlu1 %4402 }
 0x29c   : > { %4968 = vrot.lane.b32.xlu0 %v10795_v24, %s13126_s22  ;;  %5084 = vrot.lane.b32.xlu1 %v10795_v24, %s8361_s27 }
 0x29e   : > { %v10967_v50 = vpop.permute.xlu0 %4626  ;;  %v10969_v43 = vpop.permute.xlu1 %4054 }
 0x29f   : > { %13671 = vst [vmem:[#allocation55_spill] sm:$0xff] %v10967_v50  ;;  %13672 = vst [vmem:[#allocation56_spill] sm:$0xff] %v10969_v43 }
 0x2a0   : > { %4972 = vrot.lane.b32.xlu0 %v10811_v45, %s13126_s22  ;;  %5088 = vrot.lane.b32.xlu1 %v10811_v45, %s8361_s27 }
 0x2a2   : > { %v10975_v57 = vpop.permute.xlu0 %4630  ;;  %v10977_v42 = vpop.permute.xlu1 %4058 }
 0x2a4   : > { %4856 = vrot.lane.b32.xlu0 %v10795_v24, %s13124_s24  ;;  %4740 = vrot.lane.b32.xlu1 %v10795_v24, %s13120_s7 }
 0x2a6   : > { %v10983_v53 = vpop.permute.xlu0 %4282  ;;  %v10985_v63 = vpop.permute.xlu1 %3942 }
 0x2a7   : > { %13673 = vst [vmem:[#allocation52_spill] sm:$0xff] %v10983_v53  ;;  %13674 = vst [vmem:[#allocation28_spill] sm:$0xff] %v10985_v63 }
 0x2a8   : > { %4860 = vrot.lane.b32.xlu0 %v10811_v45, %s13124_s24  ;;  %4744 = vrot.lane.b32.xlu1 %v10811_v45, %s13120_s7 }
 0x2aa   : > { %v10991_v29 = vpop.permute.xlu0 %4286  ;;  %v10993_v60 = vpop.permute.xlu1 %3946 }
 0x2ac   : > { %4518 = vrot.lane.b32.xlu0 %v10869_v39, %s8350_s29  ;;  %4406 = vrot.lane.b32.xlu1 %v10869_v39, %s8349_s28 }
 0x2ae   : > { %v10999_v24 = vpop.permute.xlu0 %4170  ;;  %v11001_v47 = vpop.permute.xlu1 %3826 }
 0x2af   : > { %13675 = vst [vmem:[#allocation61_spill] sm:$0xff] %v10999_v24  ;;  %13676 = vst [vmem:[#allocation60_spill] sm:$0xff] %v11001_v47 }
 0x2b0   : > { %4634 = vrot.lane.b32.xlu0 %v10869_v39, %s8351_s30  ;;  %4062 = vrot.lane.b32.xlu1 %v10869_v39, %s13279_s17 }
 0x2b2   : > { %v11007_v56 = vpop.permute.xlu0 %4174  ;;  %v11009_v62 = vpop.permute.xlu1 %3830 }
 0x2b4   : > { %4290 = vrot.lane.b32.xlu0 %v10869_v39, %s8353_s8  ;;  %3950 = vrot.lane.b32.xlu1 %v10869_v39, %s13281_s20 }
 0x2b6   : > { %v11015_v55 = vpop.permute.xlu0 %5626  ;;  %v11017_v36 = vpop.permute.xlu1 %3714 }
 0x2b7   : > { %13677 = vst [vmem:[#allocation58_spill] sm:$0xff] %v11015_v55  ;;  %13678 = vst [vmem:[#allocation15_spill] sm:$0xff] %v11017_v36 }
 0x2b8   : > { %4178 = vrot.lane.b32.xlu0 %v10869_v39, %s13280_s18  ;;  %3834 = vrot.lane.b32.xlu1 %v10869_v39, %s8356_s11 }
 0x2ba   : > { %v11023_v45 = vpop.permute.xlu0 %5630  ;;  %v11025_v23 = vpop.permute.xlu1 %3718 }
 0x2bc   : > { %5634 = vrot.lane.b32.xlu0 %v10869_v39, %s8357_s12  ;;  %3722 = vrot.lane.b32.xlu1 %v10869_v39, %s8358_s13 }
 0x2be   : > { %v11031_v0 = vpop.permute.xlu0 %5514  ;;  %v11033_v6 = vpop.permute.xlu1 %5398 }
 0x2bf   : > { %13679 = vst [vmem:[#allocation16_spill] sm:$0xff] %v11031_v0  ;;  %13680 = vst [vmem:[#allocation64_spill] sm:$0xff] %v11033_v6 }
 0x2c0   : > { %5522 = vrot.lane.b32.xlu0 %v10869_v39, %s13122_s14  ;;  %5406 = vrot.lane.b32.xlu1 %v10869_v39, %s8360_s19 }
 0x2c2   : > { %v11039_v54 = vpop.permute.xlu0 %5518  ;;  %v11041_v11 = vpop.permute.xlu1 %5402 }
 0x2c3   : > { %13681 = vst [vmem:[#allocation65_spill] sm:$0xff] %v11039_v54  ;;  %13682 = vst [vmem:[#allocation63_spill] sm:$0xff] %v11041_v11 }
 0x2c4   : > { %3726 = vrot.lane.b32.xlu0 %v10884_v32, %s8358_s13  ;;  %5294 = vrot.lane.b32.xlu1 %v10869_v39, %s13118_s15 }
 0x2c6   : > { %v11047_v25 = vpop.permute.xlu0 %5082  ;;  %v11049_v2 = vpop.permute.xlu1 %5286 }
 0x2c7   : > { %13683 = vst [vmem:[#allocation18_spill] sm:$0xff] %v11047_v25  ;;  %13684 = vst [vmem:[#allocation19_spill] sm:$0xff] %v11049_v2  ;;  %v11158_v25 = vor.u32 %v7497_v4, %v7496_v21 }
 0x2c8   : > { %5526 = vrot.lane.b32.xlu0 %v10884_v32, %s13122_s14  ;;  %4522 = vrot.lane.b32.xlu1 %v10884_v32, %s8350_s29 }
 0x2c9   : > { %13697 = vst [vmem:[#allocation43_spill] sm:$0xff] %v11158_v25 }
 0x2ca   : > { %v11055_v16 = vpop.permute.xlu0 %5086  ;;  %v11057_v61 = vpop.permute.xlu1 %5290 }
 0x2cb   : > { %13685 = vst [vmem:[#allocation68_spill] sm:$0xff] %v11057_v61 }
 0x2cc   : > { %5096 = vrot.lane.b32.xlu0 %v10891_v38, %s8361_s27  ;;  %4410 = vrot.lane.b32.xlu1 %v10884_v32, %s8349_s28 }
 0x2ce   : > { %v11069_v26 = vpop.permute.xlu0 %4738  ;;  %v11071_v59 = vpop.permute.xlu1 %4966 }
 0x2cf   : > { %13686 = vst [vmem:[#allocation69_spill] sm:$0xff] %v11069_v26  ;;  %13687 = vst [vmem:[#allocation39_spill] sm:$0xff] %v11071_v59  ;;  %v11156_v26 = vor.u32 %v7473_v19, %v7472_v51  ;;  %v6017_v51 = vrot.slane %v11127_v20, %v13667_v41 }
 0x2d0   : > { %4752 = vrot.lane.b32.xlu0 %v10891_v38, %s13120_s7  ;;  %4638 = vrot.lane.b32.xlu1 %v10884_v32, %s8351_s30  ;;  %s13733_s7 = smov 8  }
 0x2d2   : > { %v11085_v15 = vpop.permute.xlu0 %4742  ;;  %v11087_v58 = vpop.permute.xlu1 %4970 }
 0x2d3   : > { %13688 = vst [vmem:[#allocation22_spill] sm:$0xff] %v11085_v15  ;;  %v7569_v15 = vld [vmem:[%s12974_s0 + $0x83] ss:$8 sm:$0xf0] }
 0x2d4   : > { %4640 = vrot.lane.b32.xlu0 %v10891_v38, %s8351_s30  ;;  %4066 = vrot.lane.b32.xlu1 %v10884_v32, %s13279_s17 }
 0x2d6   : > { %v4401_v33 = vpop.permute.xlu0 %4400  ;;  %v11111_v46 = vpop.permute.xlu1 %4854 }
 0x2d7   : > { %13689 = vst [vmem:[#allocation23_spill] sm:$0xff] %v11111_v46  ;;  %v4419_v10 = vsel %vm13690_vm3, %v4401_v33, %v10961_v13  ;;  %v11125_v12 = vsel %vm13691_vm0, %v10953_v7, %v4401_v33  ;;  %v7466_v33 = vld [vmem:[%s12974_s0 + $0x2] ss:$8 sm:$0xf]  ;;  %vm13701_vm3 = vcmp.lt.s32.totalorder %v9063_v49, 65 }
 0x2d8   : > { %13692 = vst [vmem:[#allocation41_spill] sm:$0xff] %v11125_v12  ;;  %v6326_v46 = vmul.f32 %v6289_v31, %v11125_v12  ;;  %v6327_v18 = vmul.f32 %v6293_v40, %v4419_v10  ;;  %4296 = vrot.lane.b32.xlu0 %v10891_v38, %s8353_s8  ;;  %4294 = vrot.lane.b32.xlu1 %v10884_v32, %s8353_s8  ;;  %v7467_v31 = vld [vmem:[%s12974_s0 + $0x2] ss:$8 sm:$0xf0]  ;;  %vm13702_vm0 = vmmov %vm13701_vm3 }
 0x2d9   : > { %v4468_v19 = vmul.f32 %v4437_v52, %v4419_v10  ;;  %v11179_v21 = vor.u32 %v7467_v31, %v7466_v33  ;;  %v6381_v52 = vrot.slane %v11144_v28, %v13668_v48  ;;  %v11187_v10 = vor.u32 %v7575_v9, %v7574_v8  ;;  %v7503_v33 = vld [vmem:[%s12974_s0 + $0x40] ss:$8 sm:$0xf0]  ;;  %v7610_v9 = vld [vmem:[%s12974_s0 + $0xc2] ss:$8 sm:$0xf] }
 0x2da   : > { %v7893_v40 = vpack.c.bf16 %v6327_v18, %v6326_v46  ;;  %v11152_v7 = vpop.permute.xlu0 %4404  ;;  %v11154_v59 = vpop.permute.xlu1 %4858  ;;  %v6021_v46 = vrot.slane %v11127_v20, %v13668_v48  ;;  %v4549_v12 = vrot.slane %v11158_v25, %v8560_v34  ;;  %v4097_v8 = vrot.slane %v11156_v26, %v8563_v35 }
 0x2db   : > { %13695 = vst [vmem:[#allocation20_spill] sm:$0xff] %v11152_v7  ;;  %13696 = vst [vmem:[#allocation21_spill] sm:$0xff] %v11154_v59  ;;  %v11170_v18 = vsel %vm13698_vm2, %v10961_v13, %v11152_v7  ;;  %v6377_v13 = vrot.slane %v11144_v28, %v13667_v41  ;;  %vm13704_vm2 = vcmp.lt.s32.totalorder %v9063_v49, 56  ;;  %v7568_v7 = vld [vmem:[%s12974_s0 + $0x83] ss:$8 sm:$0xf]  ;;  %v4553_v59 = vrot.slane %v11158_v25, %v8563_v35 }
 0x2dc   : > { %13699 = vst [vmem:[#allocation38_spill] sm:$0xff] %v11170_v18  ;;  %6366 = vst [vmem:[#allocation3 + $0x128] sm:$0x33] %v7893_v40  ;;  %v4469_v4 = vmul.f32 %v4441_v22, %v11170_v18  ;;  %4184 = vrot.lane.b32.xlu0 %v10891_v38, %s13280_s18  ;;  %3954 = vrot.lane.b32.xlu1 %v10884_v32, %s13281_s20  ;;  %v7502_v22 = vld [vmem:[%s12974_s0 + $0x40] ss:$8 sm:$0xf]  ;;  %v4093_v40 = vrot.slane %v11156_v26, %v8560_v34 }
 0x2dd   : > { %13700 = vst [vmem:[#allocation33_spill] sm:$0xff] %v11187_v10  ;;  %vm13705_vm1 = vmmov %vm13704_vm2  ;;  %v5933_v25 = vrot.slane %v11187_v10, %v13668_v48 }
 0x2de   : > { %v7822_v31 = vpack.c.bf16 %v4469_v4, %v4468_v19  ;;  %v4057_v5 = vpop.permute.xlu0 %4056  ;;  %v4513_v27 = vpop.permute.xlu1 %4512 }
 0x2df   : > { %v4075_v19 = vsel %vm13701_vm3, %v4057_v5, %v10977_v42  ;;  %v11213_v4 = vsel %vm13702_vm0, %v10969_v43, %v4057_v5  ;;  %v4531_v14 = vsel %vm13704_vm2, %v4513_v27, %v10959_v1  ;;  %v11221_v18 = vsel %vm13705_vm1, %v10943_v44, %v4513_v27  ;;  %vm13711_vm1 = vmmov %vm13702_vm0 }
 0x2e0   : > { %13703 = vst [vmem:[#allocation24_spill] sm:$0xff] %v11213_v4  ;;  %13706 = vst [vmem:[#allocation25_spill] sm:$0xff] %v11221_v18  ;;  %v6054_v5 = vmul.f32 %v6017_v51, %v11213_v4  ;;  %v6055_v43 = vmul.f32 %v6021_v46, %v4075_v19  ;;  %3840 = vrot.lane.b32.xlu0 %v10891_v38, %s8356_s11  ;;  %v6414_v44 = vmul.f32 %v6377_v13, %v11221_v18 }
 0x2e1   : > { %4507 = vst [vmem:[#allocation3 + $0x150] sm:$0x33] %v7822_v31  ;;  %v6415_v28 = vmul.f32 %v6381_v52, %v4531_v14  ;;  %4182 = vrot.lane.b32.xlu1 %v10884_v32, %s13280_s18  ;;  %v5929_v31 = vrot.slane %v11187_v10, %v13667_v41  ;;  %v11241_v51 = vor.u32 %v7503_v33, %v7502_v22  ;;  %vm13713_vm3 = vmmov %vm13704_vm2  ;;  %vm13716_vm0 = vcmp.lt.s32.totalorder %v9063_v49, 55 }
 0x2e2   : > { %v7881_v46 = vpack.c.bf16 %v6055_v43, %v6054_v5  ;;  %v11243_v4 = vpop.permute.xlu0 %4060  ;;  %v11245_v20 = vpop.permute.xlu1 %4516  ;;  %v11249_v27 = vor.u32 %v7611_v37, %v7610_v9  ;;  %v11251_v13 = vor.u32 %v7569_v15, %v7568_v7  ;;  %v4124_v52 = vmul.f32 %v4093_v40, %v4075_v19  ;;  %v7460_v37 = vld [vmem:[%s12974_s0 + $0x1] ss:$8 sm:$0xf]  ;;  %vm13717_vm2 = vmmov %vm13716_vm0 }
 0x2e3   : > { %13707 = vst [vmem:[#allocation45_spill] sm:$0xff] %v11241_v51  ;;  %13708 = vst [vmem:[#allocation47_spill] sm:$0xff] %v11243_v4  ;;  %v7897_v18 = vpack.c.bf16 %v6415_v28, %v6414_v44  ;;  %v11257_v22 = vsel %vm13711_vm1, %v10977_v42, %v11243_v4  ;;  %v11263_v43 = vsel %vm13713_vm3, %v10959_v1, %v11245_v20  ;;  %v7461_v42 = vld [vmem:[%s12974_s0 + $0x1] ss:$8 sm:$0xf0]  ;;  %vm13745_vm3 = vcmp.lt.s32.totalorder %v9063_v49, 7 }
 0x2e4   : > { %13709 = vst [vmem:[#allocation34_spill] sm:$0xff] %v11245_v20  ;;  %13710 = vst [vmem:[#allocation26_spill] sm:$0xff] %v11249_v27  ;;  %v6090_v7 = vrot.slane %v7881_v46, 6  ;;  %v4580_v15 = vmul.f32 %v4549_v12, %v4531_v14  ;;  %v4125_v44 = vmul.f32 %v4097_v8, %v11257_v22  ;;  %v4581_v28 = vmul.f32 %v4553_v59, %v11263_v43  ;;  %v7484_v12 = vld [vmem:[%s12974_s0 + $0x5] ss:$8 sm:$0xf] }
 0x2e5   : > { %13712 = vst [vmem:[#allocation27_spill] sm:$0xff] %v11257_v22  ;;  %13714 = vst [vmem:[#allocation48_spill] sm:$0xff] %v11263_v43  ;;  %3728 = vrot.lane.b32.xlu0 %v10891_v38, %s8358_s13  ;;  %v6450_v33 = vrot.slane %v7897_v18, 6  ;;  %3838 = vrot.lane.b32.xlu1 %v10884_v32, %s8356_s11  ;;  %v4665_v1 = vrot.slane %v11241_v51, %v8560_v34  ;;  %v3985_v14 = vrot.slane %v11179_v21, %v8563_v35  ;;  %v7485_v18 = vld [vmem:[%s12974_s0 + $0x5] ss:$8 sm:$0xf0] }
 0x2e6   : > { %v4669_v59 = vrot.slane %v11241_v51, %v8563_v35  ;;  %6098 = vst [vmem:[#allocation3 + $0x10] sm:$0xcc] %v6090_v7  ;;  %v7810_v40 = vpack.c.bf16 %v4125_v44, %v4124_v52  ;;  %v7826_v8 = vpack.c.bf16 %v4581_v28, %v4580_v15  ;;  %v3945_v9 = vpop.permute.xlu0 %3944  ;;  %v6469_v19 = vrot.slane %v11249_v27, %v13667_v41  ;;  %v4629_v46 = vpop.permute.xlu1 %4628  ;;  %v7592_v22 = vld [vmem:[%s12974_s0 + $0x87] ss:$8 sm:$0xf]  ;;  %vm13721_vm1 = vmmov %vm13716_vm0 }
 0x2e7   : > { %v6473_v5 = vrot.slane %v11249_v27, %v13668_v48  ;;  %v7593_v4 = vld [vmem:[%s12974_s0 + $0x87] ss:$8 sm:$0xf0]  ;;  %6458 = vst [vmem:[#allocation3 + $0x128] sm:$0xcc] %v6450_v33  ;;  %v3963_v52 = vsel %vm538_vm5, %v3945_v9, %v10993_v60  ;;  %v11305_v7 = vsel %vm538_vm5, %v10985_v63, %v3945_v9  ;;  %v4647_v15 = vsel %vm13716_vm0, %v4629_v46, %v10975_v57  ;;  %vm13750_vm0 = vmmov %vm13745_vm3 }
 0x2e8   : > { %13715 = vst [vmem:[#allocation44_spill] sm:$0xff] %v11305_v7  ;;  %v11313_v44 = vsel %vm13717_vm2, %v10967_v50, %v4629_v46  ;;  %v3738_v28 = vld [vmem:[%s12974_s0] ss:$8 sm:$0xf]  ;;  %v4159_v43 = vrot.slane %v7810_v40, 6  ;;  %v4615_v9 = vrot.slane %v7826_v8, 6  ;;  %v11323_v63 = vor.u32 %v7461_v42, %v7460_v37 }
 0x2e9   : > { %13718 = vst [vmem:[#allocation54_spill] sm:$0xff] %v11313_v44  ;;  %v3739_v33 = vld [vmem:[%s12974_s0] ss:$8 sm:$0xf0]  ;;  %4520 = vrot.lane.b32.xlu0 %v10875_v3, %s8350_s29  ;;  %v5837_v20 = vrot.slane %v11251_v13, %v13667_v41  ;;  %v5966_v46 = vmul.f32 %v5929_v31, %v11305_v7  ;;  %v5967_v50 = vmul.f32 %v5933_v25, %v3963_v52  ;;  %vm13759_vm2 = vcmp.lt.s32.totalorder %v9063_v49, 8 }
 0x2ea   : > { %5638 = vrot.lane.b32.xlu1 %v10884_v32, %s8357_s12  ;;  %v5841_v27 = vrot.slane %v11251_v13, %v13668_v48  ;;  %v11332_v10 = vor.u32 %v7593_v4, %v7592_v22  ;;  %4167 = vst [vmem:[#allocation3 + $0x168] sm:$0xcc] %v4159_v43  ;;  %4623 = vst [vmem:[#allocation3 + $0x150] sm:$0xcc] %v4615_v9  ;;  %v6506_v40 = vmul.f32 %v6469_v19, %v11313_v44  ;;  %v11335_v42 = vpop.permute.xlu0 %3948  ;;  %v11337_v8 = vpop.permute.xlu1 %4632 }
 0x2eb   : > { %v6507_v37 = vmul.f32 %v6473_v5, %v4647_v15  ;;  %v11339_v51 = vor.u32 %v7485_v18, %v7484_v12  ;;  %v11341_v25 = vor.u32 %v3739_v33, %v3738_v28  ;;  %v7562_v31 = vld [vmem:[%s12974_s0 + $0x82] ss:$8 sm:$0xf]  ;;  %v13719_v22 = vrot.slane %v11179_v21, %v8560_v34 }
 0x2ec   : > { %v7563_v4 = vld [vmem:[%s12974_s0 + $0x82] ss:$8 sm:$0xf0]  ;;  %v7877_v19 = vpack.c.bf16 %v5967_v50, %v5966_v46  ;;  %v11356_v12 = vsel %vm538_vm5, %v10993_v60, %v11335_v42  ;;  %v11362_v18 = vsel %vm13721_vm1, %v10975_v57, %v11337_v8  ;;  %v4696_v5 = vmul.f32 %v4665_v1, %v4647_v15  ;;  %v7478_v50 = vld [vmem:[%s12974_s0 + $0x4] ss:$8 sm:$0xf]  ;;  %vm13764_vm1 = vmmov %vm13759_vm2 }
 0x2ed   : > { %v4012_v43 = vmul.f32 %v13719_v22, %v3963_v52  ;;  %13720 = vst [vmem:[#allocation36_spill] sm:$0xff] %v11356_v12  ;;  %v7901_v28 = vpack.c.bf16 %v6507_v37, %v6506_v40  ;;  %v4013_v33 = vmul.f32 %v3985_v14, %v11356_v12  ;;  %v4697_v9 = vmul.f32 %v4669_v59, %v11362_v18  ;;  %v7479_v59 = vld [vmem:[%s12974_s0 + $0x4] ss:$8 sm:$0xf0] }
 0x2ee   : > { %4408 = vrot.lane.b32.xlu0 %v10875_v3, %s8349_s28  ;;  %6006 = vst [vmem:[#allocation3 + $0x10] sm:$0x33] %v7877_v19  ;;  %5410 = vrot.lane.b32.xlu1 %v10884_v32, %s8360_s19  ;;  %v3865_v57 = vrot.slane %v11323_v63, %v8560_v34  ;;  %v6197_v60 = vrot.slane %v11332_v10, %v13667_v41  ;;  %v7586_v52 = vld [vmem:[%s12974_s0 + $0x86] ss:$8 sm:$0xf]  ;;  %v3829_v40 = vpop.permute.xlu0 %3828  ;;  %v4285_v22 = vpop.permute.xlu1 %4284 }
 0x2ef   : > { %v6201_v1 = vrot.slane %v11332_v10, %v13668_v48  ;;  %v11379_v14 = vor.u32 %v7563_v4, %v7562_v31  ;;  %6546 = vst [vmem:[#allocation3 + $0x58] sm:$0x33] %v7901_v28  ;;  %v7806_v15 = vpack.c.bf16 %v4013_v33, %v4012_v43  ;;  %v7830_v46 = vpack.c.bf16 %v4697_v9, %v4696_v5  ;;  %v7587_v4 = vld [vmem:[%s12974_s0 + $0x86] ss:$8 sm:$0xf0] }
 0x2f0   : > { %v4321_v37 = vrot.slane %v11339_v51, %v8560_v34  ;;  %v3869_v31 = vrot.slane %v11323_v63, %v8563_v35  ;;  %v3847_v19 = vsel %vm420_vm8, %v3829_v40, %v11009_v62  ;;  %v11400_v43 = vsel %vm420_vm8, %v11001_v47, %v3829_v40  ;;  %v7544_v33 = vld [vmem:[%s12974_s0 + $0x47] ss:$8 sm:$0xf] }
 0x2f1   : > { %13722 = vst [vmem:[#allocation31_spill] sm:$0xff] %v11379_v14  ;;  %13723 = vst [vmem:[#allocation46_spill] sm:$0xff] %v11400_v43  ;;  %v4303_v5 = vsel %vm884_vm4, %v4285_v22, %v10991_v29  ;;  %v11408_v28 = vsel %vm884_vm4, %v10983_v53, %v4285_v22  ;;  %v7545_v9 = vld [vmem:[%s12974_s0 + $0x47] ss:$8 sm:$0xf0]  ;;  %v5874_v40 = vmul.f32 %v5837_v20, %v11400_v43 }
 0x2f2   : > { %13724 = vst [vmem:[#allocation50_spill] sm:$0xff] %v11408_v28  ;;  %4051 = vst [vmem:[#allocation3 + $0x168] sm:$0x33] %v7806_v15  ;;  %v5875_v47 = vmul.f32 %v5841_v27, %v3847_v19  ;;  %4636 = vrot.lane.b32.xlu0 %v10875_v3, %s8351_s30  ;;  %v4325_v22 = vrot.slane %v11339_v51, %v8563_v35  ;;  %v6234_v44 = vmul.f32 %v6197_v60, %v11408_v28  ;;  %v11432_v43 = vpop.permute.xlu1 %4288  ;;  %s13746_s30 = smov 120  }
 0x2f3   : > { %4735 = vst [vmem:[#allocation3 + $0x188] sm:$0x33] %v7830_v46  ;;  %v6235_v7 = vmul.f32 %v6201_v1, %v4303_v5  ;;  %5090 = vrot.lane.b32.xlu1 %v10869_v39, %s8361_s27  ;;  %v5749_v15 = vrot.slane %v11379_v14, %v13667_v41  ;;  %v11428_v20 = vor.u32 %v7479_v59, %v7478_v50  ;;  %v11430_v46 = vpop.permute.xlu0 %3832  ;;  %v7556_v1 = vld [vmem:[%s12974_s0 + $0x81] ss:$8 sm:$0xf] }
 0x2f4   : > { %v7873_v27 = vpack.c.bf16 %v5875_v47, %v5874_v40  ;;  %13725 = vst [vmem:[#allocation32_spill] sm:$0xff] %v11430_v46  ;;  %v5753_v12 = vrot.slane %v11379_v14, %v13668_v48  ;;  %v11436_v53 = vor.u32 %v7587_v4, %v7586_v52  ;;  %v11438_v60 = vor.u32 %v7545_v9, %v7544_v33  ;;  %v7557_v50 = vld [vmem:[%s12974_s0 + $0x81] ss:$8 sm:$0xf0] }
 0x2f5   : > { %v3896_v47 = vmul.f32 %v3865_v57, %v3847_v19  ;;  %v7889_v59 = vpack.c.bf16 %v6235_v7, %v6234_v44  ;;  %v11450_v40 = vsel %vm420_vm8, %v11009_v62, %v11430_v46  ;;  %v11456_v52 = vsel %vm884_vm4, %v10991_v29, %v11432_v43  ;;  %v7539_v46 = vld [vmem:[%s12974_s0 + $0x46] ss:$8 sm:$0xf0] }
 0x2f6   : > { %13726 = vst [vmem:[#allocation49_spill] sm:$0xff] %v11438_v60  ;;  %13727 = vst [vmem:[#allocation59_spill] sm:$0xff] %v11450_v40  ;;  %v5910_v4 = vrot.slane %v7873_v27, 6  ;;  %v4352_v33 = vmul.f32 %v4321_v37, %v4303_v5  ;;  %v3897_v9 = vmul.f32 %v3869_v31, %v11450_v40  ;;  %v4353_v28 = vmul.f32 %v4325_v22, %v11456_v52  ;;  %v8287_v62 = vld [vmem:[#allocation3 + $0x12c] ss:$-208 sps:$4 sm:$0x3f]   ;;  %v4173_v27 = vpop.permute.xlu1 %4172 }
 0x2f7   : > { %13728 = vst [vmem:[#allocation53_spill] sm:$0xff] %v11456_v52  ;;  %4064 = vrot.lane.b32.xlu0 %v10875_v3, %s13279_s17  ;;  %v6270_v7 = vrot.slane %v7889_v59, 6  ;;  %4980 = vrot.lane.b32.xlu1 %v10891_v38, %s13729_s25  ;;  %v4209_v44 = vrot.slane %v11428_v20, %v8560_v34  ;;  %v3757_v29 = vrot.slane %v11341_v25, %v8563_v35  ;;  %v3717_v19 = vpop.permute.xlu0 %3716  ;;  %v8289_v59 = vld [vmem:[#allocation3 + $0x128] ss:$-208 sps:$4 sm:$0x3f]  }
 0x2f8   : > { %v11468_v57 = vor.u32 %v7557_v50, %v7556_v1  ;;  %5918 = vst [vmem:[#allocation3 + $0x40] sm:$0xcc] %v5910_v4  ;;  %v7802_v37 = vpack.c.bf16 %v3897_v9, %v3896_v47  ;;  %v7818_v31 = vpack.c.bf16 %v4353_v28, %v4352_v33  ;;  %v6109_v5 = vrot.slane %v11436_v53, %v13667_v41 }
 0x2f9   : > { %v6113_v22 = vrot.slane %v11436_v53, %v13668_v48  ;;  %6278 = vst [vmem:[#allocation3 + $0x70] sm:$0xcc] %v6270_v7  ;;  %v3735_v40 = vsel %vm307_vm10, %v3717_v19, %v11025_v23  ;;  %v11480_v1 = vsel %vm307_vm10, %v11017_v36, %v3717_v19  ;;  %7672 = vmatprep.subr.msk.bf16.mxu0 %vm3516_vm7, %v8287_v62 }
 0x2fa   : > { %13730 = vst [vmem:[#allocation67_spill] sm:$0xff] %v11468_v57  ;;  %13731 = vst [vmem:[#allocation62_spill] sm:$0xff] %v11480_v1  ;;  %v4191_v28 = vsel %vm770_vm6, %v4173_v27, %v11007_v56  ;;  %v11489_v50 = vsel %vm770_vm6, %v10999_v24, %v4173_v27  ;;  %v3931_v47 = vrot.slane %v7802_v37, 6  ;;  %v4387_v4 = vrot.slane %v7818_v31, 6  ;;  %v11511_v24 = vpop.permute.xlu1 %4176 }
 0x2fb   : > { %13732 = vst [vmem:[#allocation42_spill] sm:$0xff] %v11489_v50  ;;  %4292 = vrot.lane.b32.xlu0 %v10875_v3, %s8353_s8  ;;  %v4213_v33 = vrot.slane %v11428_v20, %v8563_v35  ;;  %v5429_v9 = vrot.slane %v11438_v60, %v13667_v41  ;;  %v5786_v7 = vmul.f32 %v5749_v15, %v11480_v1  ;;  %v7538_v31 = vld [vmem:[%s12974_s0 + $0x46] ss:$8 sm:$0xf]  ;;  %v11509_v15 = vpop.permute.xlu0 %3720  ;;  %13735 = vst [vmem:[#allocation14_spill] sm:$0xff] %v11511_v24 }
 0x2fc   : > { %v5787_v62 = vmul.f32 %v5753_v12, %v3735_v40  ;;  %4868 = vrot.lane.b32.xlu1 %v10891_v38, %s13733_s7  ;;  %v5433_v19 = vrot.slane %v11438_v60, %v13668_v48  ;;  %v5657_v37 = vrot.slane %v11468_v57, %v13667_v41  ;;  %3939 = vst [vmem:[#allocation3 + $0x1b0] sm:$0xcc] %v3931_v47  ;;  %4395 = vst [vmem:[#allocation3 + $0x110] sm:$0xcc] %v4387_v4 }
 0x2fd   : > { %v6146_v27 = vmul.f32 %v6109_v5, %v11489_v50  ;;  %v6147_v36 = vmul.f32 %v6113_v22, %v4191_v28  ;;  %v6888_v12 = vsel %vm3516_vm7, %v8289_v59, 0  ;;  %13734 = vst [vmem:[#allocation66_spill] sm:$0xff] %v11509_v15  ;;  %v5661_v1 = vrot.slane %v11468_v57, %v13668_v48  ;;  %v7550_v59 = vld [vmem:[%s12974_s0 + $0x80] ss:$8 sm:$0xf] }
 0x2fe   : > { %v13736_v47 = vrot.slane %v11341_v25, %v8560_v34  ;;  %v7869_v52 = vpack.c.bf16 %v5787_v62, %v5786_v7  ;;  %6914 = vmatpush1.bf16.msra.mxu0 %v6888_v12  ;;  %v11525_v5 = vsel %vm307_vm10, %v11025_v23, %v11509_v15  ;;  %v11531_v22 = vsel %vm770_vm6, %v11007_v56, %v11511_v24  ;;  %v5629_v15 = vpop.permute.xlu1 %5628 }
 0x2ff   : > { %13737 = vst [vmem:[#allocation12_spill] sm:$0xff] %v11525_v5  ;;  %v4240_v7 = vmul.f32 %v4209_v44, %v4191_v28  ;;  %v7885_v62 = vpack.c.bf16 %v6147_v36, %v6146_v27  ;;  %v3785_v12 = vmul.f32 %v3757_v29, %v11525_v5  ;;  %v4241_v23 = vmul.f32 %v4213_v33, %v11531_v22  ;;  %v5401_v50 = vpop.permute.xlu0 %5400  ;;  %v13766_v5 = vld [vmem:[#allocation34_spill] sm:$0xff] }
 0x300   : > { %v3784_v4 = vmul.f32 %v13736_v47, %v3735_v40  ;;  %v7551_v40 = vld [vmem:[%s12974_s0 + $0x80] ss:$8 sm:$0xf0]  ;;  %3952 = vrot.lane.b32.xlu0 %v10875_v3, %s13281_s20  ;;  %5826 = vst [vmem:[#allocation3 + $0x40] sm:$0x33] %v7869_v52  ;;  %4524 = vrot.lane.b32.xlu1 %v10891_v38, %s8350_s29  ;;  %v11545_v24 = vor.u32 %v7539_v46, %v7538_v31  ;;  %s14061_s29 = sshll.u32 %s14067_s23, 3 }
 0x301   : > { %6186 = vst [vmem:[#allocation3 + $0x70] sm:$0x33] %v7885_v62  ;;  %v7814_v47 = vpack.c.bf16 %v4241_v23, %v4240_v7  ;;  %v11547_v44 = vor.u32 %v7551_v40, %v7550_v59  ;;  %v5419_v36 = vsel %vm2027_vm12, %v5401_v50, %v11041_v11  ;;  %v5420_v52 = vsel %vm2027_vm12, %v11033_v6, %v5401_v50  ;;  %v6590_v62 = vld [vmem:[#allocation3 + $0x10] sm:$0xff] }
 0x302   : > { %v7798_v56 = vpack.c.bf16 %v3785_v12, %v3784_v4  ;;  %13738 = vst [vmem:[#allocation13_spill] sm:$0xff] %v11545_v24  ;;  %v5647_v29 = vsel %vm2259_vm9, %v5629_v15, %v11023_v45  ;;  %v5648_v28 = vsel %vm2259_vm9, %v11015_v55, %v5629_v15  ;;  %v5466_v46 = vmul.f32 %v5429_v9, %v5420_v52  ;;  %v11567_v40 = vpop.permute.xlu1 %5632  ;;  %v7520_v52 = vld [vmem:[%s12974_s0 + $0x43] ss:$8 sm:$0xf] }
 0x303   : > { %13739 = vst [vmem:[#allocation71_spill] sm:$0xff] %v11547_v44  ;;  %4279 = vst [vmem:[#allocation3 + $0x110] sm:$0x33] %v7814_v47  ;;  %v5467_v33 = vmul.f32 %v5433_v19, %v5419_v36  ;;  %v5694_v31 = vmul.f32 %v5657_v37, %v5648_v28  ;;  %v5695_v27 = vmul.f32 %v5661_v1, %v5647_v29  ;;  %v11565_v59 = vpop.permute.xlu0 %5404 }
 0x304   : > { %3823 = vst [vmem:[#allocation3 + $0x1b0] sm:$0x33] %v7798_v56  ;;  %4180 = vrot.lane.b32.xlu0 %v10875_v3, %s13280_s18  ;;  %4412 = vrot.lane.b32.xlu1 %v10891_v38, %s8349_s28  ;;  %13740 = vst [vmem:[#allocation72_spill] sm:$0xff] %v11565_v59  ;;  %v5317_v15 = vrot.slane %v11545_v24, %v13667_v41  ;;  %v5321_v9 = vrot.slane %v11545_v24, %v13668_v48  ;;  %s258_s18 = scalar_lea.vmem %s12980_s6, %s14061_s29 }
 0x305   : > { %v7857_v50 = vpack.c.bf16 %v5467_v33, %v5466_v46  ;;  %v7865_v4 = vpack.c.bf16 %v5695_v27, %v5694_v31  ;;  %v5545_v37 = vrot.slane %v11547_v44, %v13667_v41  ;;  %v5549_v7 = vrot.slane %v11547_v44, %v13668_v48  ;;  %v7521_v31 = vld [vmem:[%s12974_s0 + $0x43] ss:$8 sm:$0xf0] }
 0x306   : > { %v5517_v36 = vpop.permute.xlu1 %5516 }
 0x307   : > { %v5502_v19 = vrot.slane %v7857_v50, 6  ;;  %v5730_v1 = vrot.slane %v7865_v4, 6  ;;  %v5289_v23 = vpop.permute.xlu0 %5288  ;;  %v5535_v46 = vsel %vm2145_vm11, %v5517_v36, %v11039_v54  ;;  %v5536_v33 = vsel %vm2145_vm11, %v11031_v0, %v5517_v36  ;;  %v7514_v36 = vld [vmem:[%s12974_s0 + $0x42] ss:$8 sm:$0xf] }
 0x308   : > { %3836 = vrot.lane.b32.xlu0 %v10875_v3, %s8356_s11  ;;  %4068 = vrot.lane.b32.xlu1 %v10891_v38, %s13279_s17  ;;  %v6594_v12 = vld [vmem:[#allocation3 + $0x70] sm:$0xff]  ;;  %v5307_v29 = vsel %vm1913_vm14, %v5289_v23, %v11057_v61  ;;  %v5308_v28 = vsel %vm1913_vm14, %v11049_v2, %v5289_v23  ;;  %v5582_v4 = vmul.f32 %v5545_v37, %v5536_v33 }
 0x309   : > { %5510 = vst [vmem:[#allocation3 + $0x90] sm:$0xcc] %v5502_v19  ;;  %5738 = vst [vmem:[#allocation3] sm:$0xcc] %v5730_v1  ;;  %v7656_v56 = vcombine.low %v6590_v62, %v6594_v12  ;;  %v7657_v47 = vcombine.high %v6590_v62, %v6594_v12  ;;  %v5354_v27 = vmul.f32 %v5317_v15, %v5308_v28 }
 0x30a   : > { %v5355_v50 = vmul.f32 %v5321_v9, %v5307_v29  ;;  %v5583_v19 = vmul.f32 %v5549_v7, %v5535_v46  ;;  %v7526_v1 = vld [vmem:[%s12974_s0 + $0x44] ss:$8 sm:$0xf]  ;;  %v11611_v9 = vpop.permute.xlu1 %5520  ;;  %v11613_v37 = vor.u32 %v7521_v31, %v7520_v52  ;;  %v7515_v52 = vld [vmem:[%s12974_s0 + $0x42] ss:$8 sm:$0xf0] }
 0x30b   : > { %6915 = vmatprep.subr.bf16.mxu0 %v7657_v47  ;;  %v7527_v62 = vld [vmem:[%s12974_s0 + $0x44] ss:$8 sm:$0xf0]  ;;  %v11609_v15 = vpop.permute.xlu0 %5292  ;;  %13742 = vst [vmem:[#allocation74_spill] sm:$0xff] %v11611_v9 }
 0x30c   : > { %6916 = vmatpush1.bf16.msra.mxu0 %v7656_v56  ;;  %5636 = vrot.lane.b32.xlu0 %v10875_v3, %s8357_s12  ;;  %v7853_v12 = vpack.c.bf16 %v5355_v50, %v5354_v27  ;;  %v7861_v23 = vpack.c.bf16 %v5583_v19, %v5582_v4  ;;  %13741 = vst [vmem:[#allocation73_spill] sm:$0xff] %v11609_v15  ;;  %v7508_v46 = vld [vmem:[%s12974_s0 + $0x41] ss:$8 sm:$0xf] }
 0x30d   : > { %3956 = vrot.lane.b32.xlu1 %v10891_v38, %s13281_s20  ;;  %v11615_v7 = vor.u32 %v7527_v62, %v7526_v1  ;;  %v5005_v29 = vrot.slane %v11613_v37, %v8560_v34  ;;  %v7509_v33 = vld [vmem:[%s12974_s0 + $0x41] ss:$8 sm:$0xf0]  ;;  %v5009_v50 = vrot.slane %v11613_v37, %v8563_v35  ;;  %v11661_v62 = vor.u32 %v7515_v52, %v7514_v36 }
 0x30e   : > { %5394 = vst [vmem:[#allocation3 + $0x90] sm:$0x33] %v7853_v12  ;;  %5622 = vst [vmem:[#allocation3] sm:$0x33] %v7861_v23  ;;  %v11623_v47 = vpop.permute.xlu1 %5084  ;;  %v11663_v12 = vor.u32 %v7509_v33, %v7508_v46  ;;  %v13758_v46 = vld [vmem:[#allocation21_spill] sm:$0xff] }
 0x30f   : > { %v11621_v56 = vpop.permute.xlu0 %4968  ;;  %13744 = vst [vmem:[#allocation76_spill] sm:$0xff] %v11623_v47  ;;  %v5121_v28 = vrot.slane %v11615_v7, %v8560_v34  ;;  %v5103_v27 = vsel %vm1698_vm13, %v11623_v47, %v11055_v16  ;;  %v5125_v4 = vrot.slane %v11615_v7, %v8563_v35 }
 0x310   : > { %5640 = vrot.lane.b32.xlu0 %v10891_v38, %s8357_s12  ;;  %13743 = vst [vmem:[#allocation75_spill] sm:$0xff] %v11621_v56  ;;  %v4987_v31 = vsel %vm13745_vm3, %v11621_v56, %v11087_v58  ;;  %13749 = vst [vmem:[#allocation79_spill] sm:$0xff] %v11663_v12  ;;  %v6586_v56 = vld [vmem:[#allocation3 + $0x40] sm:$0xff]  ;;  %vm13767_vm3 = vcmp.lt.s32.totalorder %v9063_v49, 56 }
 0x311   : > { %3724 = vrot.lane.b32.xlu1 %v10875_v3, %s8358_s13  ;;  %v5036_v23 = vmul.f32 %v5005_v29, %v4987_v31  ;;  %v5152_v2 = vmul.f32 %v5121_v28, %v5103_v27  ;;  %v6297_v28 = vrot.slane %v11077_v30, %v8560_v34  ;;  %v13755_v27 = vld [vmem:[#allocation40_spill] sm:$0xff]  ;;  %v13756_v31 = vld [vmem:[#allocation45_spill] sm:$0xff] }
 0x312   : > { %v11659_v1 = vpop.permute.xlu1 %5088  ;;  %v6389_v29 = vrot.slane %v13755_v27, %v8563_v35 }
 0x313   : > { %v11657_v19 = vpop.permute.xlu0 %4972  ;;  %13748 = vst [vmem:[#allocation78_spill] sm:$0xff] %v11659_v1  ;;  %v5102_v6 = vsel %vm1698_vm13, %v11055_v16, %v11659_v1  ;;  %v13751_v16 = vld [vmem:[#allocation70_spill] sm:$0xff] }
 0x314   : > { %5408 = vrot.lane.b32.xlu0 %v10875_v3, %s8360_s19  ;;  %13747 = vst [vmem:[#allocation77_spill] sm:$0xff] %v11657_v19  ;;  %v4986_v0 = vsel %vm13750_vm0, %v11087_v58, %v11657_v19  ;;  %v5153_v61 = vmul.f32 %v5125_v4, %v5102_v6  ;;  %v13757_v4 = vld [vmem:[#allocation33_spill] sm:$0xff]  ;;  %v13761_v19 = vld [vmem:[#allocation26_spill] sm:$0xff]  ;;  %vm13769_vm0 = vcmp.lt.s32.totalorder %v9063_v49, 57 }
 0x315   : > { %5524 = vrot.lane.b32.xlu1 %v10875_v3, %s13746_s30  ;;  %v6582_v55 = vld [vmem:[#allocation3] sm:$0xff]  ;;  %v5037_v47 = vmul.f32 %v5009_v50, %v4986_v0  ;;  %v6385_v50 = vrot.slane %v13755_v27, %v8560_v34  ;;  %v6477_v1 = vrot.slane %v13761_v19, %v8560_v34 }
 0x316   : > { %v7648_v36 = vcombine.low %v6582_v55, %v6586_v56  ;;  %v7649_v52 = vcombine.high %v6582_v55, %v6586_v56  ;;  %v7846_v0 = vpack.c.bf16 %v5153_v61, %v5152_v2  ;;  %v11687_v6 = vpop.permute.xlu1 %4740  ;;  %v13754_v56 = vld [vmem:[#allocation43_spill] sm:$0xff]  ;;  %v4893_v2 = vrot.slane %v11661_v62, %v8560_v34 }
 0x317   : > { %v7842_v33 = vpack.c.bf16 %v5037_v47, %v5036_v23  ;;  %v11685_v55 = vpop.permute.xlu0 %4856  ;;  %13753 = vst [vmem:[#allocation80_spill] sm:$0xff] %v11687_v6  ;;  %v4777_v47 = vrot.slane %v11663_v12, %v8560_v34  ;;  %v4897_v23 = vrot.slane %v11661_v62, %v8563_v35 }
 0x318   : > { %5412 = vrot.lane.b32.xlu0 %v10891_v38, %s8360_s19  ;;  %13752 = vst [vmem:[#allocation70_spill] sm:$0xff] %v11685_v55  ;;  %6917 = vmatprep.subr.bf16.mxu0 %v7649_v52  ;;  %5191 = vst [vmem:[#allocation3 + $0xf8] sm:$0x33] %v7846_v0  ;;  %v4781_v52 = vrot.slane %v11663_v12, %v8563_v35  ;;  %s13765_s19 = smov 127  }
 0x319   : > { %5528 = vrot.lane.b32.xlu1 %v10891_v38, %s13746_s30  ;;  %6918 = vmatpush1.bf16.msra.mxu0 %v7648_v36  ;;  %v5071_v61 = vrot.slane %v7842_v33, 6  ;;  %v4875_v36 = vsel %vm13759_vm2, %v11685_v55, %v13758_v46  ;;  %v13760_v33 = vld [vmem:[#allocation22_spill] sm:$0xff]  ;;  %vm13775_vm2 = vcmp.lt.s32.totalorder %v9063_v49, 55 }
 0x31a   : > { %v4759_v0 = vsel %vm1348_vm15, %v11687_v6, %v13760_v33  ;;  %v11729_v15 = vpop.permute.xlu1 %4744  ;;  %v4924_v55 = vmul.f32 %v4893_v2, %v4875_v36 }
 0x31b   : > { %5079 = vst [vmem:[#allocation3 + $0x1a8] sm:$0xcc] %v5071_v61  ;;  %v11727_v6 = vpop.permute.xlu0 %4860  ;;  %13763 = vst [vmem:[#allocation40_spill] sm:$0xff] %v11729_v15  ;;  %v4758_v61 = vsel %vm1348_vm15, %v13760_v33, %v11729_v15  ;;  %v4808_v9 = vmul.f32 %v4777_v47, %v4759_v0  ;;  %v6301_v33 = vrot.slane %v11077_v30, %v8563_v35 }
 0x31c   : > { %5092 = vrot.lane.b32.xlu0 %v10875_v3, %s8361_s27  ;;  %13762 = vst [vmem:[#allocation43_spill] sm:$0xff] %v11727_v6  ;;  %v4874_v58 = vsel %vm13764_vm1, %v13758_v46, %v11727_v6  ;;  %v4809_v59 = vmul.f32 %v4781_v52, %v4758_v61  ;;  %v6481_v61 = vrot.slane %v13761_v19, %v8563_v35  ;;  %v13771_v46 = vld [vmem:[#allocation38_spill] sm:$0xff]  ;;  %vm13777_vm1 = vcmp.lt.s32.totalorder %v9063_v49, 65 }
 0x31d   : > { %5094 = vrot.lane.b32.xlu1 %v10884_v32, %s8361_s27  ;;  %v4925_v11 = vmul.f32 %v4897_v23, %v4874_v58  ;;  %v6328_v2 = vmul.f32 %v6297_v28, %v13771_v46  ;;  %s13772_s27 = smov 9  }
 0x31e   : > { %v7834_v23 = vpack.c.bf16 %v4809_v59, %v4808_v9  ;;  %v11761_v36 = vpop.permute.xlu1 %4406  ;;  %v13770_v9 = vld [vmem:[#allocation48_spill] sm:$0xff] }
 0x31f   : > { %v7838_v47 = vpack.c.bf16 %v4925_v11, %v4924_v55  ;;  %v11759_v52 = vpop.permute.xlu0 %4518  ;;  %v13768_v11 = vld [vmem:[#allocation20_spill] sm:$0xff]  ;;  %v6416_v55 = vmul.f32 %v6385_v50, %v13770_v9  ;;  %v6029_v50 = vrot.slane %v13751_v16, %v8563_v35  ;;  %v13776_v9 = vld [vmem:[#allocation47_spill] sm:$0xff] }
 0x320   : > { %5296 = vrot.lane.b32.xlu0 %v10875_v3, %s13765_s19  ;;  %v11771_v54 = vsel %vm13767_vm3, %v13766_v5, %v11759_v52  ;;  %v11777_v59 = vsel %vm13769_vm0, %v13768_v11, %v11761_v36  ;;  %v4843_v58 = vrot.slane %v7834_v23, 6  ;;  %v13781_v5 = vld [vmem:[#allocation29_spill] sm:$0xff]  ;;  %vm13856_vm3 = vmmov %vm13775_vm2 }
 0x321   : > { %5298 = vrot.lane.b32.xlu1 %v10884_v32, %s13765_s19  ;;  %4963 = vst [vmem:[#allocation3 + $0x1a8] sm:$0x33] %v7838_v47  ;;  %v6417_v0 = vmul.f32 %v6389_v29, %v11771_v54  ;;  %v6329_v6 = vmul.f32 %v6301_v33, %v11777_v59  ;;  %v13779_v47 = vld [vmem:[#allocation27_spill] sm:$0xff]  ;;  %vm13858_vm0 = vmmov %vm13775_vm2 }
 0x322   : > { %4851 = vst [vmem:[#allocation3 + $0x188] sm:$0xcc] %v4843_v58 }
 0x323   : > { %v7898_v46 = vpack.c.bf16 %v6417_v0, %v6416_v55  ;;  %v11799_v33 = vpop.permute.xlu0 %4634  ;;  %v7894_v23 = vpack.c.bf16 %v6329_v6, %v6328_v2  ;;  %v6209_v0 = vrot.slane %v11332_v10, %v8563_v35  ;;  %v6508_v55 = vmul.f32 %v6477_v1, %v11362_v18 }
 0x324   : > { %5300 = vrot.lane.b32.xlu0 %v10891_v38, %s13765_s19  ;;  %13773 = vst [vmem:[#allocation45_spill] sm:$0xff] %v11799_v33  ;;  %v11801_v38 = vpop.permute.xlu1 %4062  ;;  %v11807_v11 = vsel %vm13775_vm2, %v11337_v8, %v11799_v33  ;;  %v5941_v2 = vrot.slane %v13757_v4, %v8563_v35  ;;  %v13780_v8 = vrot.slane %v13751_v16, %v8560_v34  ;;  %vm13873_vm2 = vcmp.lt.s32.totalorder %v9063_v49, 7 }
 0x325   : > { %4746 = vrot.lane.b32.xlu1 %v10869_v39, %s13772_s27  ;;  %13774 = vst [vmem:[#allocation33_spill] sm:$0xff] %v11801_v38  ;;  %v11813_v58 = vsel %vm13777_vm1, %v13776_v9, %v11801_v38  ;;  %v6451_v28 = vrot.slane %v7898_v46, 6  ;;  %v6509_v6 = vmul.f32 %v6481_v61, %v11807_v11  ;;  %6367 = vst [vmem:[#allocation3 + $0x38] sm:$0x33] %v7894_v23  ;;  %v13786_v46 = vld [vmem:[#allocation36_spill] sm:$0xff]  ;;  %vm13876_vm1 = vcmask 883712  }
 0x326   : > { %13778 = vst [vmem:[#allocation21_spill] sm:$0xff] %v11813_v58  ;;  %v6056_v29 = vmul.f32 %v13780_v8, %v13779_v47  ;;  %v6057_v18 = vmul.f32 %v6029_v50, %v11813_v58  ;;  %v13787_v61 = vrot.slane %v13757_v4, %v8560_v34  ;;  %v13789_v1 = vrot.slane %v11332_v10, %v8560_v34 }
 0x327   : > { %6459 = vst [vmem:[#allocation3 + $0x38] sm:$0xcc] %v6451_v28  ;;  %v7902_v47 = vpack.c.bf16 %v6509_v6, %v6508_v55  ;;  %v11840_v23 = vpop.permute.xlu0 %4290  ;;  %v6121_v6 = vrot.slane %v11436_v53, %v8563_v35 }
 0x328   : > { %4748 = vrot.lane.b32.xlu0 %v10875_v3, %s13772_s27  ;;  %13782 = vst [vmem:[#allocation22_spill] sm:$0xff] %v11840_v23  ;;  %v11842_v50 = vpop.permute.xlu1 %3950  ;;  %v7882_v8 = vpack.c.bf16 %v6057_v18, %v6056_v29  ;;  %v11848_v28 = vsel %vm884_vm4, %v11432_v43, %v11840_v23  ;;  %v5968_v29 = vmul.f32 %v13787_v61, %v13786_v46  ;;  %v13788_v18 = vld [vmem:[#allocation53_spill] sm:$0xff] }
 0x329   : > { %4750 = vrot.lane.b32.xlu1 %v10884_v32, %s13772_s27  ;;  %13783 = vst [vmem:[#allocation34_spill] sm:$0xff] %v11842_v50  ;;  %13784 = vst [vmem:[#allocation20_spill] sm:$0xff] %v11848_v28  ;;  %v11854_v55 = vsel %vm538_vm5, %v11335_v42, %v11842_v50  ;;  %v6236_v43 = vmul.f32 %v13789_v1, %v13788_v18  ;;  %v6237_v15 = vmul.f32 %v6209_v0, %v11848_v28  ;;  %v13792_v18 = vld [vmem:[#allocation14_spill] sm:$0xff]  ;;  %v13809_v28 = vld [vmem:[#allocation65_spill] sm:$0xff] }
 0x32a   : > { %13785 = vst [vmem:[#allocation48_spill] sm:$0xff] %v11854_v55  ;;  %6547 = vst [vmem:[#allocation3 + $0xf0] sm:$0x33] %v7902_v47  ;;  %v5969_v9 = vmul.f32 %v5941_v2, %v11854_v55  ;;  %v6091_v42 = vrot.slane %v7882_v8, 6  ;;  %v5849_v61 = vrot.slane %v11251_v13, %v8563_v35  ;;  %v5761_v50 = vrot.slane %v11379_v14, %v8563_v35 }
 0x32b   : > { %v7890_v46 = vpack.c.bf16 %v6237_v15, %v6236_v43  ;;  %v11880_v2 = vpop.permute.xlu0 %4178  ;;  %v5669_v43 = vrot.slane %v11468_v57, %v8563_v35  ;;  %v5646_v47 = vsel %vm2259_vm9, %v11023_v45, %v11567_v40  ;;  %v5441_v45 = vrot.slane %v11438_v60, %v8563_v35 }
 0x32c   : > { %4974 = vrot.lane.b32.xlu0 %v10869_v39, %s13729_s25  ;;  %v7878_v1 = vpack.c.bf16 %v5969_v9, %v5968_v29  ;;  %13790 = vst [vmem:[#allocation38_spill] sm:$0xff] %v11880_v2  ;;  %v11884_v8 = vpop.permute.xlu1 %3834  ;;  %6099 = vst [vmem:[#allocation3 + $0x100] sm:$0xcc] %v6091_v42  ;;  %v11890_v15 = vsel %vm770_vm6, %v13792_v18, %v11880_v2  ;;  %v13794_v9 = vld [vmem:[#allocation32_spill] sm:$0xff]  ;;  %v13796_v42 = vrot.slane %v11436_v53, %v8560_v34 }
 0x32d   : > { %4976 = vrot.lane.b32.xlu1 %v10875_v3, %s13729_s25  ;;  %13791 = vst [vmem:[#allocation47_spill] sm:$0xff] %v11884_v8  ;;  %13793 = vst [vmem:[#allocation27_spill] sm:$0xff] %v11890_v15  ;;  %v11896_v29 = vsel %vm420_vm8, %v13794_v9, %v11884_v8  ;;  %v6271_v23 = vrot.slane %v7890_v46, 6  ;;  %v6149_v18 = vmul.f32 %v6121_v6, %v11890_v15  ;;  %v13797_v9 = vld [vmem:[#allocation59_spill] sm:$0xff]  ;;  %v13805_v15 = vld [vmem:[#allocation72_spill] sm:$0xff] }
 0x32e   : > { %13795 = vst [vmem:[#allocation29_spill] sm:$0xff] %v11896_v29  ;;  %v6148_v0 = vmul.f32 %v13796_v42, %v11531_v22  ;;  %6007 = vst [vmem:[#allocation3 + $0x100] sm:$0x33] %v7878_v1  ;;  %v13798_v8 = vrot.slane %v11251_v13, %v8560_v34  ;;  %v5877_v38 = vmul.f32 %v5849_v61, %v11896_v29  ;;  %v13801_v42 = vld [vmem:[#allocation12_spill] sm:$0xff] }
 0x32f   : > { %v5557_v22 = vrot.slane %v11547_v44, %v8563_v35  ;;  %6279 = vst [vmem:[#allocation3 + $0x78] sm:$0xcc] %v6271_v23  ;;  %v11924_v46 = vpop.permute.xlu0 %5634  ;;  %v5329_v61 = vrot.slane %v11545_v24, %v8563_v35  ;;  %v13802_v23 = vrot.slane %v11379_v14, %v8560_v34 }
 0x330   : > { %v5876_v2 = vmul.f32 %v13798_v8, %v13797_v9  ;;  %4978 = vrot.lane.b32.xlu0 %v10884_v32, %s13729_s25  ;;  %v7886_v6 = vpack.c.bf16 %v6149_v18, %v6148_v0  ;;  %13799 = vst [vmem:[#allocation36_spill] sm:$0xff] %v11924_v46  ;;  %v11926_v1 = vpop.permute.xlu1 %3722  ;;  %v13803_v9 = vld [vmem:[#allocation66_spill] sm:$0xff]  ;;  %v13806_v8 = vld [vmem:[#allocation63_spill] sm:$0xff] }
 0x331   : > { %4862 = vrot.lane.b32.xlu1 %v10869_v39, %s13733_s7  ;;  %13800 = vst [vmem:[#allocation53_spill] sm:$0xff] %v11926_v1  ;;  %v5788_v0 = vmul.f32 %v13802_v23, %v13801_v42  ;;  %v5645_v39 = vsel %vm2259_vm9, %v11567_v40, %v11924_v46  ;;  %v11946_v29 = vsel %vm307_vm10, %v13803_v9, %v11926_v1  ;;  %v8290_v35 = vld [vmem:[#allocation3 + $0x3c] ss:$184 sps:$4 sm:$0x3f]  }
 0x332   : > { %v7874_v18 = vpack.c.bf16 %v5877_v38, %v5876_v2  ;;  %13804 = vst [vmem:[#allocation14_spill] sm:$0xff] %v11946_v29  ;;  %v5418_v55 = vsel %vm2027_vm12, %v13806_v8, %v13805_v15  ;;  %v13807_v38 = vrot.slane %v11468_v57, %v8560_v34  ;;  %6187 = vst [vmem:[#allocation3 + $0x78] sm:$0x33] %v7886_v6  ;;  %v8292_v23 = vld [vmem:[#allocation3 + $0x38] ss:$184 sps:$4 sm:$0x3f]   ;;  %7674 = vmatprep.subr.msk.bf16.mxu1 %vm3516_vm7, %v8290_v35 }
 0x333   : > { %v5697_v42 = vmul.f32 %v5669_v43, %v5645_v39  ;;  %v5789_v40 = vmul.f32 %v5761_v50, %v11946_v29  ;;  %v13808_v46 = vld [vmem:[#allocation74_spill] sm:$0xff]  ;;  %v11969_v6 = vpop.permute.xlu0 %5522  ;;  %v13817_v8 = vld [vmem:[#allocation68_spill] sm:$0xff] }
 0x334   : > { %v5696_v2 = vmul.f32 %v13807_v38, %v5646_v47  ;;  %v5534_v9 = vsel %vm2145_vm11, %v13809_v28, %v13808_v46  ;;  %v5911_v1 = vrot.slane %v7874_v18, 6  ;;  %4864 = vrot.lane.b32.xlu0 %v10875_v3, %s13733_s7  ;;  %13810 = vst [vmem:[#allocation32_spill] sm:$0xff] %v11969_v6  ;;  %v11971_v28 = vpop.permute.xlu1 %5406  ;;  %v6894_v18 = vsel %vm3516_vm7, %v8292_v23, 0  ;;  %v6606_v3 = vld [vmem:[%s12979_s5] sm:$0xf]  ;;  %v13812_v39 = vld [vmem:[#allocation30_spill] sm:$0xff] }
 0x335   : > { %v7870_v50 = vpack.c.bf16 %v5789_v40, %v5788_v0  ;;  %4866 = vrot.lane.b32.xlu1 %v10884_v32, %s13733_s7  ;;  %13811 = vst [vmem:[#allocation59_spill] sm:$0xff] %v11971_v28  ;;  %v13813_v38 = vrot.slane %v11438_v60, %v8560_v34  ;;  %v5533_v32 = vsel %vm2145_vm11, %v13808_v46, %v11969_v6  ;;  %v13816_v47 = vld [vmem:[#allocation73_spill] sm:$0xff] }
 0x336   : > { %v7866_v43 = vpack.c.bf16 %v5697_v42, %v5696_v2  ;;  %5919 = vst [vmem:[#allocation3 + $0xa8] sm:$0xcc] %v5911_v1  ;;  %v5417_v2 = vsel %vm2027_vm12, %v13805_v15, %v11971_v28  ;;  %6955 = vmatpush1.bf16.msra.mxu1 %v6894_v18  ;;  %v13814_v42 = vld [vmem:[#allocation37_spill] sm:$0xff]  ;;  %v13815_v23 = vrot.slane %v11547_v44, %v8560_v34 }
 0x337   : > { %v5468_v0 = vmul.f32 %v13813_v38, %v5418_v55  ;;  %5827 = vst [vmem:[#allocation3 + $0xa8] sm:$0x33] %v7870_v50  ;;  %v5585_v1 = vmul.f32 %v5557_v22, %v5533_v32  ;;  %v5469_v38 = vmul.f32 %v5441_v45, %v5417_v2  ;;  %v5306_v46 = vsel %vm1913_vm14, %v13817_v8, %v13816_v47  ;;  %v12005_v22 = vpop.permute.xlu0 %3726  ;;  %v13821_v50 = vld [vmem:[#allocation41_spill] sm:$0xff] }
 0x338   : > { %v5584_v35 = vmul.f32 %v13815_v23, %v5534_v9  ;;  %v5731_v55 = vrot.slane %v7866_v43, 6  ;;  %6609 = vperm.xlu0 %8232, %v6606_v3   ;;  %13818 = vst [vmem:[#allocation12_spill] sm:$0xff] %v12005_v22  ;;  %v12007_v45 = vpop.permute.xlu1 %5294  ;;  %v13843_v28 = vld [vmem:[#allocation69_spill] sm:$0xff]  ;;  %v13860_v29 = vrot.slane %v13761_v19, %v13814_v42 }
 0x339   : > { %v7858_v43 = vpack.c.bf16 %v5469_v38, %v5468_v0  ;;  %13819 = vst [vmem:[#allocation66_spill] sm:$0xff] %v12007_v45  ;;  %v5305_v3 = vsel %vm1913_vm14, %v13816_v47, %v12007_v45  ;;  %v8293_v32 = vld [vmem:[#allocation3 + $0x100] ss:$-136 sps:$4 sm:$0xff]   ;;  %v8295_v2 = vld [vmem:[#allocation3 + $0x104] ss:$-136 sps:$4 sm:$0xff]   ;;  %v13841_v45 = vrot.slane %v11615_v7, %v13667_v41 }
 0x33a   : > { %5739 = vst [vmem:[#allocation3 + $0x68] sm:$0xcc] %v5731_v55  ;;  %v7862_v9 = vpack.c.bf16 %v5585_v1, %v5584_v35  ;;  %v13820_v55 = vrot.slane %v11545_v24, %v8560_v34  ;;  %v5357_v8 = vmul.f32 %v5329_v61, %v5305_v3  ;;  %v13822_v35 = vrot.slane %v11093_v17, %v13668_v48  ;;  %v13831_v47 = vld [vmem:[#allocation35_spill] sm:$0xff]  ;;  %v13833_v3 = vld [vmem:[#allocation18_spill] sm:$0xff]  ;;  %v13834_v0 = vld [vmem:[#allocation44_spill] sm:$0xff] }
 0x33b   : > { %v5503_v38 = vrot.slane %v7858_v43, 6  ;;  %6956 = vmatprep.subr.bf16.mxu1 %v8295_v2  ;;  %v13838_v34 = vrot.slane %v13756_v31, %v13668_v48  ;;  %v13840_v2 = vrot.slane %v11615_v7, %v13668_v48 }
 0x33c   : > { %v5356_v1 = vmul.f32 %v13820_v55, %v5306_v46  ;;  %5623 = vst [vmem:[#allocation3 + $0x68] sm:$0x33] %v7862_v9  ;;  %v12032_v40 = vmul.f32 %v13822_v35, %v13821_v50  ;;  %v12040_v9 = vpop.permute.xlu0 %5526  ;;  %v12042_v43 = vpop.permute.xlu1 %4522  ;;  %6957 = vmatpush1.bf16.msra.mxu1 %v8293_v32  ;;  %v13825_v35 = vld [vmem:[#allocation24_spill] sm:$0xff]  ;;  %v13826_v55 = vrot.slane %v11156_v26, %v13668_v48 }
 0x33d   : > { %5511 = vst [vmem:[#allocation3 + $0xc0] sm:$0xcc] %v5503_v38  ;;  %13824 = vst [vmem:[#allocation63_spill] sm:$0xff] %v12040_v9  ;;  %v13842_v9 = vld [vmem:[#allocation80_spill] sm:$0xff] }
 0x33e   : > { %13823 = vst [vmem:[#allocation72_spill] sm:$0xff] %v12032_v40  ;;  %v7854_v61 = vpack.c.bf16 %v5357_v8, %v5356_v1  ;;  %v12054_v38 = vmul.f32 %v13826_v55, %v13825_v35  ;;  %v13828_v8 = vld [vmem:[#allocation25_spill] sm:$0xff]  ;;  %v13829_v1 = vrot.slane %v13754_v56, %v13668_v48  ;;  %v13835_v55 = vrot.slane %v11179_v21, %v13668_v48 }
 0x33f   : > { %v6587_v18 = vld [vmem:[#allocation3 + $0xa8] sm:$0xff] }
 0x340   : > { %13827 = vst [vmem:[#allocation74_spill] sm:$0xff] %v12054_v38  ;;  %v12060_v32 = vmul.f32 %v13829_v1, %v13828_v8  ;;  %5395 = vst [vmem:[#allocation3 + $0xc0] sm:$0x33] %v7854_v61  ;;  %v13832_v1 = vld [vmem:[#allocation76_spill] sm:$0xff]  ;;  %v12088_v46 = vmul.f32 %v13835_v55, %v13834_v0  ;;  %v13837_v8 = vld [vmem:[#allocation54_spill] sm:$0xff]  ;;  %v12096_v23 = vpop.permute.xlu0 %5096  ;;  %v12098_v61 = vpop.permute.xlu1 %4410 }
 0x341   : > { %v5104_v50 = vsel %vm1698_vm13, %v13833_v3, %v13832_v1  ;;  %v12094_v1 = vmul.f32 %v13838_v34, %v13837_v8  ;;  %13839 = vst [vmem:[#allocation37_spill] sm:$0xff] %v12096_v23  ;;  %v5105_v0 = vsel %vm1698_vm13, %v12096_v23, %v13833_v3  ;;  %v4760_v34 = vsel %vm1348_vm15, %v13843_v28, %v13842_v9  ;;  %v6567_v38 = vld [vmem:[#allocation3 + $0x188] sm:$0xff] }
 0x342   : > { %13830 = vst [vmem:[#allocation65_spill] sm:$0xff] %v12060_v32  ;;  %13836 = vst [vmem:[#allocation30_spill] sm:$0xff] %v12088_v46  ;;  %v5151_v35 = vmul.f32 %v13840_v2, %v5104_v50  ;;  %v5150_v6 = vmul.f32 %v13841_v45, %v5105_v0  ;;  %v13844_v2 = vld [vmem:[#allocation46_spill] sm:$0xff]  ;;  %v13845_v45 = vrot.slane %v11323_v63, %v13668_v48 }
 0x343   : > { %v6583_v55 = vld [vmem:[#allocation3 + $0x68] sm:$0xff] }
 0x344   : > { %v7650_v3 = vcombine.low %v6583_v55, %v6587_v18  ;;  %v7651_v23 = vcombine.high %v6583_v55, %v6587_v18  ;;  %v12134_v0 = vmul.f32 %v13845_v45, %v13844_v2  ;;  %v13846_v18 = vld [vmem:[#allocation50_spill] sm:$0xff]  ;;  %v13847_v55 = vrot.slane %v11339_v51, %v13668_v48  ;;  %v12142_v8 = vpop.permute.xlu0 %4752  ;;  %v12144_v15 = vpop.permute.xlu1 %4638 }
 0x345   : > { %v7845_v46 = vpack.c.bf16 %v5151_v35, %v5150_v6  ;;  %13848 = vst [vmem:[#allocation73_spill] sm:$0xff] %v12142_v8  ;;  %v4761_v2 = vsel %vm1348_vm15, %v12142_v8, %v13843_v28  ;;  %v13849_v35 = vrot.slane %v11663_v12, %v13668_v48  ;;  %v13850_v28 = vrot.slane %v11663_v12, %v13667_v41  ;;  %v13851_v8 = vld [vmem:[#allocation62_spill] sm:$0xff] }
 0x346   : > { %v12140_v9 = vmul.f32 %v13847_v55, %v13846_v18  ;;  %6958 = vmatprep.subr.bf16.mxu1 %v7651_v23  ;;  %v13852_v6 = vrot.slane %v11341_v25, %v13668_v48  ;;  %v13854_v18 = vrot.slane %v11428_v20, %v13668_v48 }
 0x347   : > { %6959 = vmatpush1.bf16.msra.mxu1 %v7650_v3  ;;  %v8298_v45 = vld [vmem:[#allocation3 + $0xfc] ss:$-56 sps:$4 sm:$0xff]   ;;  %v4807_v55 = vmul.f32 %v13849_v35, %v4760_v34  ;;  %5190 = vst [vmem:[#allocation3 + $0xe8] sm:$0x33] %v7845_v46  ;;  %v4806_v3 = vmul.f32 %v13850_v28, %v4761_v2  ;;  %v8296_v40 = vld [vmem:[#allocation3 + $0xf8] ss:$-56 sps:$4 sm:$0xff]   ;;  %v13859_v46 = vrot.slane %v13756_v31, %v13667_v41 }
 0x348   : > { %v12172_v23 = vmul.f32 %v13852_v6, %v13851_v8  ;;  %6960 = vmatprep.subr.bf16.mxu1 %v8298_v45  ;;  %v6571_v34 = vld [vmem:[#allocation3 + $0x1a8] sm:$0xff]  ;;  %v13853_v28 = vld [vmem:[#allocation42_spill] sm:$0xff]  ;;  %v4641_v6 = vpop.permute.xlu0 %4640  ;;  %v12186_v12 = vpop.permute.xlu1 %4066  ;;  %v13857_v35 = vld [vmem:[#allocation55_spill] sm:$0xff] }
 0x349   : > { %v12184_v50 = vmul.f32 %v13854_v18, %v13853_v28  ;;  %v7833_v8 = vpack.c.bf16 %v4807_v55, %v4806_v3  ;;  %13855 = vst [vmem:[#allocation68_spill] sm:$0xff] %v12186_v12  ;;  %v7635_v45 = vcombine.high %v6567_v38, %v6571_v34  ;;  %v12193_v2 = vsel %vm13856_vm3, %v12144_v15, %v4641_v6  ;;  %v6559_v18 = vld [vmem:[#allocation3 + $0x110] sm:$0xff] }
 0x34a   : > { %v4649_v32 = vsel %vm13858_vm0, %v4641_v6, %v13857_v35  ;;  %v6512_v58 = vmul.f32 %v13860_v29, %v12193_v2  ;;  %v13861_v35 = vrot.slane %v13761_v19, %v13812_v39  ;;  %v7634_v55 = vcombine.low %v6567_v38, %v6571_v34  ;;  %v6563_v3 = vld [vmem:[#allocation3 + $0x150] sm:$0xff]  ;;  %v13862_v38 = vld [vmem:[#allocation52_spill] sm:$0xff] }
 0x34b   : > { %6961 = vmatpush1.bf16.msra.mxu1 %v8296_v40  ;;  %v4842_v28 = vrot.slane %v7833_v8, 6  ;;  %v4694_v12 = vmul.f32 %v13859_v46, %v4649_v32  ;;  %v13863_v19 = vrot.slane %v11339_v51, %v13667_v41  ;;  %v8304_v40 = vld [vmem:[#allocation3 + $0x1b4] ss:$-72 sps:$4 sm:$0xff]   ;;  %vm13885_vm3 = vcmp.lt.s32.totalorder %v9063_v49, 56 }
 0x34c   : > { %6962 = vmatprep.subr.bf16.mxu1 %v7635_v45  ;;  %v6513_v6 = vmul.f32 %v13861_v35, %v4649_v32  ;;  %v4297_v29 = vpop.permute.xlu0 %4296  ;;  %v7627_v45 = vcombine.high %v6559_v18, %v6563_v3  ;;  %v12226_v35 = vpop.permute.xlu1 %4294  ;;  %vm13886_vm0 = vmmov %vm13885_vm3 }
 0x34d   : > { %4850 = vst [vmem:[#allocation3 + $0xe0] sm:$0xcc] %v4842_v28  ;;  %v7829_v33 = vpack.c.bf16 %v12094_v1, %v4694_v12  ;;  %v4305_v34 = vsel %vm884_vm4, %v4297_v29, %v13862_v38  ;;  %v13867_v12 = vrot.slane %v11428_v20, %v13667_v41 }
 0x34e   : > { %v7904_v32 = vpack.c.bf16 %v6513_v6, %v6512_v58  ;;  %v8299_v46 = vld [vmem:[#allocation3 + $0xe8] ss:$-88 sps:$4 sm:$0xff]   ;;  %v8301_v28 = vld [vmem:[#allocation3 + $0xec] ss:$-88 sps:$4 sm:$0xff]   ;;  %v4350_v58 = vmul.f32 %v13863_v19, %v4305_v34  ;;  %v13864_v6 = vrot.slane %v11332_v10, %v13812_v39  ;;  %v7626_v19 = vcombine.low %v6559_v18, %v6563_v3 }
 0x34f   : > { %6963 = vmatpush1.bf16.msra.mxu1 %v7634_v55  ;;  %4734 = vst [vmem:[#allocation3 + $0xe0] sm:$0x33] %v7829_v33  ;;  %v12241_v55 = vsel %vm884_vm4, %v12226_v35, %v4297_v29  ;;  %v13865_v33 = vrot.slane %v11332_v10, %v13814_v42  ;;  %6919 = vmatprep.subr.bf16.mxu0 %v8301_v28  ;;  %v13866_v28 = vld [vmem:[#allocation61_spill] sm:$0xff] }
 0x350   : > { %v6241_v38 = vmul.f32 %v13864_v6, %v4305_v34  ;;  %6964 = vmatprep.subr.bf16.mxu1 %v7627_v45  ;;  %6549 = vst [vmem:[#allocation3 + $0x198] sm:$0x33] %v7904_v32  ;;  %v7817_v29 = vpack.c.bf16 %v12140_v9, %v4350_v58  ;;  %v4185_v45 = vpop.permute.xlu0 %4184  ;;  %6920 = vmatpush1.bf16.msra.mxu0 %v8299_v46  ;;  %v12263_v6 = vpop.permute.xlu1 %3954  ;;  %v13868_v9 = vld [vmem:[#allocation60_spill] sm:$0xff] }
 0x351   : > { %v6240_v1 = vmul.f32 %v13865_v33, %v12241_v55  ;;  %v4193_v33 = vsel %vm770_vm6, %v4185_v45, %v13866_v28  ;;  %v13925_v24 = vld [vmem:[#allocation68_spill] sm:$0xff] }
 0x352   : > { %v4386_v58 = vrot.slane %v7817_v29, 6  ;;  %v4238_v32 = vmul.f32 %v13867_v12, %v4193_v33 }
 0x353   : > { %v7892_v3 = vpack.c.bf16 %v6241_v38, %v6240_v1  ;;  %6965 = vmatpush1.bf16.msra.mxu1 %v7626_v19  ;;  %v8302_v19 = vld [vmem:[#allocation3 + $0x1b0] ss:$-72 sps:$4 sm:$0xff]   ;;  %v13872_v1 = vld [vmem:[#allocation39_spill] sm:$0xff] }
 0x354   : > { %6966 = vmatprep.subr.bf16.mxu1 %v8304_v40  ;;  %4394 = vst [vmem:[#allocation3 + $0x180] sm:$0xcc] %v4386_v58  ;;  %v7813_v40 = vpack.c.bf16 %v12184_v50, %v4238_v32  ;;  %v3841_v12 = vpop.permute.xlu0 %3840  ;;  %v12292_v18 = vpop.permute.xlu1 %4182  ;;  %v12297_v50 = vld [vmem:[%s12978_s4] sm:$0x3]  ;;  %v13871_v58 = vld [vmem:[#allocation75_spill] sm:$0xff] }
 0x355   : > { %v6273_v28 = vrot.slane %v7892_v3, 6  ;;  %v3849_v46 = vsel %vm420_vm8, %v3841_v12, %v13868_v9  ;;  %13869 = vst [vmem:[#allocation41_spill] sm:$0xff] %v12297_v50  ;;  %v13870_v9 = vrot.slane %v11323_v63, %v13667_v41 }
 0x356   : > { %4278 = vst [vmem:[#allocation3 + $0x180] sm:$0x33] %v7813_v40  ;;  %v4988_v40 = vsel %vm13873_vm2, %v13872_v1, %v13871_v58  ;;  %v13882_v58 = vrot.slane %v11379_v14, %v13812_v39  ;;  %vm13894_vm2 = vcmp.lt.s32.totalorder %v9063_v49, 8 }
 0x357   : > { %6281 = vst [vmem:[#allocation3 + $0x158] sm:$0xcc] %v6273_v28  ;;  %6967 = vmatpush1.bf16.msra.mxu1 %v8302_v19  ;;  %v3894_v38 = vmul.f32 %v13870_v9, %v3849_v46  ;;  %v12311_v19 = vsel %vm770_vm6, %v12292_v18, %v4185_v45  ;;  %v13874_v28 = vrot.slane %v11436_v53, %v13812_v39 }
 0x358   : > { %v13875_v45 = vrot.slane %v11436_v53, %v13814_v42  ;;  %v3729_v32 = vpop.permute.xlu0 %3728  ;;  %v12347_v3 = vpop.permute.xlu1 %3838 }
 0x359   : > { %v6153_v9 = vmul.f32 %v13874_v28, %v4193_v33  ;;  %v7801_v34 = vpack.c.bf16 %v12134_v0, %v3894_v38  ;;  %v13877_v0 = vld [vmem:[#allocation15_spill] sm:$0xff]  ;;  %v13879_v28 = vrot.slane %v11613_v37, %v13668_v48  ;;  %v13880_v33 = vrot.slane %v11341_v25, %v13667_v41 }
 0x35a   : > { %v6152_v29 = vmul.f32 %v13875_v45, %v12311_v19  ;;  %7675 = vmatmul.mubr.msk.bf16.vlgmr.msra.gmra.mxu1 %vm13876_vm1, %v12297_v50  ;;  %v12342_v45 = vsel %vm307_vm10, %v12005_v22, %v3729_v32  ;;  %v3737_v38 = vsel %vm307_vm10, %v3729_v32, %v13877_v0  ;;  %v13878_v50 = vmov 0  }
 0x35b   : > { %7066 = vmatprep.mubr.bf16.mxu1 %v13878_v50  ;;  %v3782_v22 = vmul.f32 %v13880_v33, %v3737_v38  ;;  %v13881_v32 = vrot.slane %v11379_v14, %v13814_v42  ;;  %v5793_v50 = vmul.f32 %v13882_v58, %v3737_v38  ;;  %v13884_v58 = vrot.slane %v11251_v13, %v13814_v42 }
 0x35c   : > { %v7888_v8 = vpack.c.bf16 %v6153_v9, %v6152_v29  ;;  %v12355_v29 = vmul.f32 %v13879_v28, %v4988_v40  ;;  %v3930_v9 = vrot.slane %v7801_v34, 6  ;;  %v12370_v40 = vsel %vm420_vm8, %v12347_v3, %v3841_v12  ;;  %v4521_v12 = vpop.permute.xlu0 %4520 }
 0x35d   : > { %v5792_v0 = vmul.f32 %v13881_v32, %v12342_v45  ;;  %v13883_v28 = vrot.slane %v11251_v13, %v13812_v39  ;;  %v7797_v32 = vpack.c.bf16 %v12172_v23, %v3782_v22  ;;  %v5880_v38 = vmul.f32 %v13884_v58, %v12370_v40  ;;  %v12394_v22 = vpop.permute.xlu1 %5638 }
 0x35e   : > { %6189 = vst [vmem:[#allocation3 + $0x158] sm:$0x33] %v7888_v8  ;;  %3938 = vst [vmem:[#allocation3 + $0xb0] sm:$0xcc] %v3930_v9  ;;  %v12389_v9 = vsel %vm13885_vm3, %v4521_v12, %v12042_v43  ;;  %v13890_v14 = vrot.slane %v13755_v27, %v13781_v5  ;;  %vm13895_vm1 = vcmp.lt.s32.totalorder %v9063_v49, 57 }
 0x35f   : > { %v5881_v8 = vmul.f32 %v13883_v28, %v3849_v46  ;;  %v7872_v34 = vpack.c.bf16 %v5793_v50, %v5792_v0  ;;  %v4528_v46 = vsel %vm13886_vm0, %v11759_v52, %v4521_v12  ;;  %13887 = vst [vmem:[#allocation24_spill] sm:$0xff] %v12394_v22  ;;  %v13888_v28 = vrot.slane %v13754_v56, %v13781_v5  ;;  %vm13896_vm3 = vmmov %vm13895_vm1 }
 0x360   : > { %3822 = vst [vmem:[#allocation3 + $0xb0] sm:$0x33] %v7797_v32  ;;  %v13889_v0 = vrot.slane %v13754_v56, %v13831_v47  ;;  %v6418_v52 = vmul.f32 %v13890_v14, %v4528_v46  ;;  %v13891_v12 = vrot.slane %v13755_v27, %v13831_v47  ;;  %vm13905_vm0 = vcmp.lt.s32.totalorder %v9063_v49, 55 }
 0x361   : > { %v4582_v58 = vmul.f32 %v13888_v28, %v11771_v54  ;;  %v7876_v50 = vpack.c.bf16 %v5881_v8, %v5880_v38  ;;  %5829 = vst [vmem:[#allocation3 + $0x1a0] sm:$0x33] %v7872_v34  ;;  %v4409_v28 = vpop.permute.xlu0 %4408  ;;  %v13922_v22 = vrot.slane %v11323_v63, %v13781_v5 }
 0x362   : > { %v4583_v33 = vmul.f32 %v13889_v0, %v4528_v46  ;;  %v6419_v23 = vmul.f32 %v13891_v12, %v12389_v9  ;;  %v13892_v46 = vld [vmem:[#allocation70_spill] sm:$0xff]  ;;  %v13893_v0 = vld [vmem:[#allocation23_spill] sm:$0xff]  ;;  %v4415_v54 = vsel %vm13895_vm1, %v4409_v28, %v12098_v61  ;;  %vm13926_vm1 = vcmp.lt.s32.totalorder %v9063_v49, 65 }
 0x363   : > { %v5913_v32 = vrot.slane %v7876_v50, 6  ;;  %v4876_v12 = vsel %vm13894_vm2, %v13893_v0, %v13892_v46  ;;  %v13898_v50 = vrot.slane %v11093_v17, %v13781_v5  ;;  %v13900_v46 = vrot.slane %v11077_v30, %v13781_v5  ;;  %vm13907_vm2 = vmmov %vm13905_vm0 }
 0x364   : > { %v7827_v38 = vpack.c.bf16 %v4583_v33, %v4582_v58  ;;  %v7899_v57 = vpack.c.bf16 %v6419_v23, %v6418_v52  ;;  %v4416_v33 = vsel %vm13896_vm3, %v11761_v36, %v4409_v28  ;;  %v12432_v58 = vpop.permute.xlu1 %5410  ;;  %v13899_v23 = vrot.slane %v11093_v17, %v13831_v47  ;;  %vm13928_vm3 = vmmov %vm13926_vm1 }
 0x365   : > { %13897 = vst [vmem:[#allocation25_spill] sm:$0xff] %v12432_v58  ;;  %v4470_v34 = vmul.f32 %v13898_v50, %v11777_v59  ;;  %5921 = vst [vmem:[#allocation3 + $0x1a0] sm:$0xcc] %v5913_v32  ;;  %v6330_v8 = vmul.f32 %v13900_v46, %v4416_v33  ;;  %v13901_v36 = vrot.slane %v11077_v30, %v13831_v47  ;;  %v13915_v46 = vld [vmem:[#allocation20_spill] sm:$0xff] }
 0x366   : > { %v4616_v14 = vrot.slane %v7827_v38, 6  ;;  %v4471_v52 = vmul.f32 %v13899_v23, %v4416_v33  ;;  %v6452_v44 = vrot.slane %v7899_v57, 6  ;;  %v13902_v32 = vrot.slane %v11661_v62, %v13668_v48  ;;  %v4637_v23 = vpop.permute.xlu0 %4636 }
 0x367   : > { %v6331_v28 = vmul.f32 %v13901_v36, %v4415_v54  ;;  %v13903_v33 = vrot.slane %v13756_v31, %v13781_v5  ;;  %v13904_v36 = vrot.slane %v13756_v31, %v13812_v39 }
 0x368   : > { %v12454_v38 = vmul.f32 %v13902_v32, %v4876_v12  ;;  %4624 = vst [vmem:[#allocation3 + $0x108] sm:$0xcc] %v4616_v14  ;;  %v7823_v50 = vpack.c.bf16 %v4471_v52, %v4470_v34  ;;  %6460 = vst [vmem:[#allocation3 + $0x88] sm:$0xcc] %v6452_v44  ;;  %v4643_v12 = vsel %vm13905_vm0, %v4637_v23, %v12144_v15  ;;  %v13906_v32 = vld [vmem:[#allocation45_spill] sm:$0xff]  ;;  %v12472_v14 = vpop.permute.xlu1 %5090  ;;  %vm13937_vm0 = vcmp.lt.s32.totalorder %v9063_v49, 7 }
 0x369   : > { %v4698_v57 = vmul.f32 %v13903_v33, %v11807_v11  ;;  %v4701_v59 = vmul.f32 %v13904_v36, %v12193_v2  ;;  %v7895_v48 = vpack.c.bf16 %v6331_v28, %v6330_v8  ;;  %v4644_v11 = vsel %vm13907_vm2, %v13906_v32, %v4637_v23  ;;  %v13910_v8 = vld [vmem:[#allocation26_spill] sm:$0xff]  ;;  %v13913_v23 = vld [vmem:[#allocation21_spill] sm:$0xff] }
 0x36a   : > { %4508 = vst [vmem:[#allocation3 + $0x108] sm:$0x33] %v7823_v50  ;;  %v13908_v34 = vrot.slane %v13756_v31, %v13831_v47  ;;  %v13909_v2 = vrot.slane %v13756_v31, %v13814_v42  ;;  %v13911_v28 = vrot.slane %v13910_v8, %v13781_v5  ;;  %v13912_v15 = vrot.slane %v13910_v8, %v13831_v47  ;;  %v13917_v31 = vld [vmem:[#allocation48_spill] sm:$0xff] }
 0x36b   : > { %v13914_v50 = vrot.slane %v11156_v26, %v13781_v5  ;;  %6368 = vst [vmem:[#allocation3 + $0x88] sm:$0x33] %v7895_v48  ;;  %v13920_v8 = vrot.slane %v11428_v20, %v13781_v5  ;;  %v13923_v48 = vld [vmem:[#allocation14_spill] sm:$0xff]  ;;  %vm13956_vm2 = vcmp.lt.s32.totalorder %v9063_v49, 56 }
 0x36c   : > { %v4699_v52 = vmul.f32 %v13908_v34, %v4644_v11  ;;  %v4700_v44 = vmul.f32 %v13909_v2, %v4643_v12  ;;  %v6510_v33 = vmul.f32 %v13911_v28, %v4644_v11  ;;  %v6511_v36 = vmul.f32 %v13912_v15, %v4643_v12  ;;  %v13919_v11 = vld [vmem:[#allocation27_spill] sm:$0xff] }
 0x36d   : > { %v4126_v32 = vmul.f32 %v13914_v50, %v13913_v23  ;;  %v13916_v34 = vrot.slane %v11339_v51, %v13781_v5  ;;  %v13918_v2 = vrot.slane %v11179_v21, %v13781_v5  ;;  %v12506_v28 = vmul.f32 %v13920_v8, %v13919_v11 }
 0x36e   : > { %v7831_v15 = vpack.c.bf16 %v4699_v52, %v4698_v57  ;;  %v7832_v23 = vpack.c.bf16 %v4701_v59, %v4700_v44  ;;  %v7903_v50 = vpack.c.bf16 %v6511_v36, %v6510_v33  ;;  %v13927_v57 = vld [vmem:[#allocation33_spill] sm:$0xff]  ;;  %v12526_v52 = vpop.permute.xlu1 %4980  ;;  %v13931_v33 = vrot.slane %v11156_v26, %v13831_v47 }
 0x36f   : > { %v4354_v60 = vmul.f32 %v13916_v34, %v13915_v46  ;;  %v12498_v58 = vmul.f32 %v13918_v2, %v13917_v31  ;;  %v4065_v46 = vpop.permute.xlu0 %4064  ;;  %v13921_v34 = vld [vmem:[#allocation29_spill] sm:$0xff]  ;;  %v13924_v2 = vrot.slane %v11341_v25, %v13781_v5  ;;  %13929 = vst [vmem:[#allocation35_spill] sm:$0xff] %v12526_v52  ;;  %v13932_v8 = vrot.slane %v13751_v16, %v13781_v5 }
 0x370   : > { %v12512_v31 = vmul.f32 %v13922_v22, %v13921_v34  ;;  %v4071_v11 = vsel %vm13926_vm1, %v4065_v46, %v13925_v24  ;;  %v4072_v59 = vsel %vm13928_vm3, %v13927_v57, %v4065_v46  ;;  %v13930_v22 = vrot.slane %v11339_v51, %v13812_v39  ;;  %4736 = vst [vmem:[#allocation3 + $0x138] sm:$0x33] %v7831_v15  ;;  %vm13958_vm1 = vmmov %vm13956_vm2 }
 0x371   : > { %v12518_v12 = vmul.f32 %v13924_v2, %v13923_v48  ;;  %4737 = vst [vmem:[#allocation3 + $0x140] sm:$0x33] %v7832_v23  ;;  %6548 = vst [vmem:[#allocation3 + $0x30] sm:$0x33] %v7903_v50  ;;  %v4127_v36 = vmul.f32 %v13931_v33, %v4072_v59  ;;  %v6058_v34 = vmul.f32 %v13932_v8, %v4072_v59  ;;  %vm13964_vm3 = vcmp.lt.s32.totalorder %v9063_v49, 57 }
 0x372   : > { %v4357_v44 = vmul.f32 %v13930_v22, %v12241_v55  ;;  %v13933_v46 = vrot.slane %v13751_v16, %v13831_v47  ;;  %v13934_v2 = vrot.slane %v11428_v20, %v13812_v39  ;;  %v13935_v15 = vrot.slane %v11341_v25, %v13812_v39 }
 0x373   : > { %v13936_v50 = vrot.slane %v11323_v63, %v13812_v39  ;;  %v4989_v59 = vsel %vm13937_vm0, %v12526_v52, %v13872_v1  ;;  %v7811_v33 = vpack.c.bf16 %v4127_v36, %v4126_v32  ;;  %v13939_v8 = vrot.slane %v11613_v37, %v13667_v41  ;;  %v13941_v1 = vld [vmem:[#allocation78_spill] sm:$0xff] }
 0x374   : > { %v6059_v48 = vmul.f32 %v13933_v46, %v4071_v11  ;;  %v12545_v55 = vmul.f32 %v13934_v2, %v12311_v19  ;;  %v12551_v23 = vmul.f32 %v13935_v15, %v12342_v45  ;;  %v13938_v19 = vrot.slane %v13754_v56, %v13814_v42  ;;  %v4293_v2 = vpop.permute.xlu0 %4292  ;;  %v13942_v32 = vld [vmem:[#allocation22_spill] sm:$0xff] }
 0x375   : > { %v12557_v57 = vmul.f32 %v13936_v50, %v12370_v40  ;;  %v5034_v46 = vmul.f32 %v13939_v8, %v4989_v59  ;;  %v13940_v40 = vrot.slane %v11093_v17, %v13814_v42  ;;  %v5101_v50 = vsel %vm1698_vm13, %v13941_v1, %v12472_v14 }
 0x376   : > { %v12567_v22 = vmul.f32 %v13938_v19, %v12389_v9  ;;  %v7883_v45 = vpack.c.bf16 %v6059_v48, %v6058_v34  ;;  %v4299_v9 = vsel %vm884_vm4, %v4293_v2, %v12226_v35  ;;  %v4300_v36 = vsel %vm884_vm4, %v13942_v32, %v4293_v2  ;;  %v12587_v34 = vpop.permute.xlu1 %4868 }
 0x377   : > { %v12575_v15 = vmul.f32 %v13940_v40, %v4415_v54  ;;  %v4160_v48 = vrot.slane %v7811_v33, 6  ;;  %v7841_v54 = vpack.c.bf16 %v12355_v29, %v5034_v46  ;;  %v13943_v19 = vrot.slane %v11339_v51, %v13831_v47 }
 0x378   : > { %v6092_v59 = vrot.slane %v7883_v45, 6  ;;  %v13944_v40 = vrot.slane %v11339_v51, %v13814_v42  ;;  %v13945_v35 = vrot.slane %v11332_v10, %v13781_v5  ;;  %v13946_v2 = vrot.slane %v11332_v10, %v13831_v47  ;;  %v3953_v10 = vpop.permute.xlu0 %3952 }
 0x379   : > { %v4355_v8 = vmul.f32 %v13943_v19, %v4300_v36  ;;  %vm13947_vm4 = vcmp.lt.s32.totalorder %v9063_v49, 8  ;;  %v13948_v33 = vrot.slane %v11615_v7, %v13781_v5  ;;  %4168 = vst [vmem:[#allocation3 + $0x130] sm:$0xcc] %v4160_v48  ;;  %v5070_v51 = vrot.slane %v7841_v54, 6 }
 0x37a   : > { %v4356_v1 = vmul.f32 %v13944_v40, %v4299_v9  ;;  %v6238_v52 = vmul.f32 %v13945_v35, %v4300_v36  ;;  %v6239_v32 = vmul.f32 %v13946_v2, %v4299_v9  ;;  %v4877_v29 = vsel %vm13947_vm4, %v12587_v34, %v13893_v0  ;;  %6100 = vst [vmem:[#allocation3 + $0x160] sm:$0xcc] %v6092_v59  ;;  %v13950_v35 = vld [vmem:[#allocation34_spill] sm:$0xff]  ;;  %v4525_v2 = vpop.permute.xlu1 %4524 }
 0x37b   : > { %v12609_v45 = vmul.f32 %v13948_v33, %v5101_v50  ;;  %v7819_v46 = vpack.c.bf16 %v4355_v8, %v4354_v60  ;;  %v13949_v36 = vrot.slane %v11661_v62, %v13667_v41  ;;  %v3959_v0 = vsel %vm538_vm5, %v3953_v10, %v12263_v6  ;;  %5078 = vst [vmem:[#allocation3 + $0x80] sm:$0xcc] %v5070_v51 }
 0x37c   : > { %v7820_v9 = vpack.c.bf16 %v4357_v44, %v4356_v1  ;;  %v7891_v40 = vpack.c.bf16 %v6239_v32, %v6238_v52  ;;  %v3960_v50 = vsel %vm538_vm5, %v13950_v35, %v3953_v10  ;;  %v13951_v48 = vrot.slane %v11156_v26, %v13814_v42 }
 0x37d   : > { %v4922_v19 = vmul.f32 %v13949_v36, %v4877_v29  ;;  %v4388_v59 = vrot.slane %v7819_v46, 6  ;;  %v13952_v52 = vrot.slane %v11179_v21, %v13831_v47  ;;  %v13953_v32 = vrot.slane %v13757_v4, %v13781_v5 }
 0x37e   : > { %v12623_v60 = vmul.f32 %v13951_v48, %v4071_v11  ;;  %v4389_v8 = vrot.slane %v7820_v9, 6  ;;  %v6272_v1 = vrot.slane %v7891_v40, 6  ;;  %v13954_v33 = vrot.slane %v13757_v4, %v13831_v47  ;;  %v4181_v9 = vpop.permute.xlu0 %4180 }
 0x37f   : > { %v7837_v54 = vpack.c.bf16 %v12454_v38, %v4922_v19  ;;  %v4015_v44 = vmul.f32 %v13952_v52, %v3960_v50  ;;  %v5970_v29 = vmul.f32 %v13953_v32, %v3960_v50  ;;  %4396 = vst [vmem:[#allocation3 + $0x118] sm:$0xcc] %v4388_v59  ;;  %v13955_v11 = vrot.slane %v11179_v21, %v13814_v42  ;;  %v13957_v19 = vld [vmem:[#allocation51_spill] sm:$0xff]  ;;  %v4413_v59 = vpop.permute.xlu1 %4412 }
 0x380   : > { %v5971_v36 = vmul.f32 %v13954_v33, %v3959_v0  ;;  %v4526_v46 = vsel %vm13956_vm2, %v12042_v43, %v4525_v2  ;;  %v4533_v10 = vsel %vm13958_vm1, %v4525_v2, %v13957_v19  ;;  %4397 = vst [vmem:[#allocation3 + $0x98] sm:$0xcc] %v4389_v8  ;;  %6280 = vst [vmem:[#allocation3 + $0xa0] sm:$0xcc] %v6272_v1  ;;  %v13965_v1 = vld [vmem:[#allocation65_spill] sm:$0xff] }
 0x381   : > { %4962 = vst [vmem:[#allocation3 + $0x80] sm:$0x33] %v7837_v54  ;;  %v12638_v38 = vmul.f32 %v13955_v11, %v3959_v0  ;;  %v7807_v51 = vpack.c.bf16 %v4015_v44, %v12498_v58  ;;  %v13959_v35 = vrot.slane %v13754_v56, %v13667_v41  ;;  %v13960_v0 = vrot.slane %v13754_v56, %v13812_v39  ;;  %v13963_v44 = vld [vmem:[#allocation38_spill] sm:$0xff] }
 0x382   : > { %v7879_v40 = vpack.c.bf16 %v5971_v36, %v5970_v29  ;;  %v13961_v48 = vrot.slane %v13755_v27, %v13814_v42  ;;  %v13962_v2 = vrot.slane %v13755_v27, %v13812_v39  ;;  %v4187_v52 = vsel %vm770_vm6, %v4181_v9, %v12292_v18 }
 0x383   : > { %v4578_v50 = vmul.f32 %v13959_v35, %v4533_v10  ;;  %v4585_v58 = vmul.f32 %v13960_v0, %v4526_v46  ;;  %4052 = vst [vmem:[#allocation3 + $0x130] sm:$0x33] %v7807_v51  ;;  %v4188_v8 = vsel %vm770_vm6, %v13963_v44, %v4181_v9  ;;  %v4414_v56 = vsel %vm13964_vm3, %v12098_v61, %v4413_v59  ;;  %vm13971_vm6 = vmmov %vm13964_vm3  ;;  %v3837_v9 = vpop.permute.xlu0 %3836  ;;  %v4069_v0 = vpop.permute.xlu1 %4068 }
 0x384   : > { %v6420_v43 = vmul.f32 %v13961_v48, %v4526_v46  ;;  %v6421_v54 = vmul.f32 %v13962_v2, %v4533_v10  ;;  %6008 = vst [vmem:[#allocation3 + $0x160] sm:$0x33] %v7879_v40  ;;  %v13966_v27 = vrot.slane %v11428_v20, %v13831_v47  ;;  %v13967_v18 = vrot.slane %v11428_v20, %v13814_v42  ;;  %v13970_v10 = vld [vmem:[#allocation57_spill] sm:$0xff] }
 0x385   : > { %v7825_v32 = vpack.c.bf16 %v13965_v1, %v4578_v50  ;;  %v7828_v29 = vpack.c.bf16 %v4585_v58, %v12567_v22  ;;  %v13968_v51 = vrot.slane %v11436_v53, %v13781_v5  ;;  %v13969_v61 = vrot.slane %v11436_v53, %v13831_v47  ;;  %v13977_v1 = vld [vmem:[#allocation72_spill] sm:$0xff] }
 0x386   : > { %v4243_v33 = vmul.f32 %v13966_v27, %v4188_v8  ;;  %v4244_v36 = vmul.f32 %v13967_v18, %v4187_v52  ;;  %v7900_v11 = vpack.c.bf16 %v6421_v54, %v6420_v43  ;;  %v4421_v22 = vsel %vm13971_vm6, %v4413_v59, %v13970_v10 }
 0x387   : > { %v6150_v46 = vmul.f32 %v13968_v51, %v4188_v8  ;;  %v6151_v19 = vmul.f32 %v13969_v61, %v4187_v52  ;;  %v4614_v40 = vrot.slane %v7825_v32, 6  ;;  %v4617_v35 = vrot.slane %v7828_v29, 6  ;;  %v13976_v8 = vld [vmem:[#allocation47_spill] sm:$0xff] }
 0x388   : > { %v7815_v50 = vpack.c.bf16 %v4243_v33, %v12506_v28  ;;  %v7816_v20 = vpack.c.bf16 %v12545_v55, %v4244_v36  ;;  %v6453_v58 = vrot.slane %v7900_v11, 6  ;;  %v13972_v43 = vrot.slane %v11093_v17, %v13667_v41 }
 0x389   : > { %v7887_v48 = vpack.c.bf16 %v6151_v19, %v6150_v46  ;;  %v13973_v53 = vrot.slane %v11093_v17, %v13812_v39  ;;  %4622 = vst [vmem:[#allocation3 + $0x120] sm:$0xcc] %v4614_v40  ;;  %4625 = vst [vmem:[#allocation3 + $0x60] sm:$0xcc] %v4617_v35  ;;  %v13974_v28 = vrot.slane %v11077_v30, %v13814_v42  ;;  %v5637_v46 = vpop.permute.xlu0 %5636  ;;  %v13983_v19 = vld [vmem:[#allocation56_spill] sm:$0xff] }
 0x38a   : > { %v4466_v2 = vmul.f32 %v13972_v43, %v4421_v22  ;;  %4280 = vst [vmem:[#allocation3 + $0x118] sm:$0x33] %v7815_v50  ;;  %4281 = vst [vmem:[#allocation3 + $0x98] sm:$0x33] %v7816_v20  ;;  %v13975_v55 = vrot.slane %v11077_v30, %v13812_v39  ;;  %v3843_v44 = vsel %vm420_vm8, %v3837_v9, %v12347_v3  ;;  %v13989_v43 = vld [vmem:[#allocation24_spill] sm:$0xff] }
 0x38b   : > { %v4473_v54 = vmul.f32 %v13973_v53, %v4414_v56  ;;  %v6332_v59 = vmul.f32 %v13974_v28, %v4414_v56  ;;  %v3844_v17 = vsel %vm420_vm8, %v13976_v8, %v3837_v9  ;;  %6461 = vst [vmem:[#allocation3 + $0x170] sm:$0xcc] %v6453_v58  ;;  %6188 = vst [vmem:[#allocation3 + $0xa0] sm:$0x33] %v7887_v48  ;;  %vm13982_vm8 = vcmp.lt.s32.totalorder %v9063_v49, 65  ;;  %v3957_v9 = vpop.permute.xlu1 %3956 }
 0x38c   : > { %v6333_v52 = vmul.f32 %v13975_v55, %v4421_v22  ;;  %v7821_v32 = vpack.c.bf16 %v13977_v1, %v4466_v2  ;;  %v13978_v56 = vrot.slane %v11323_v63, %v13831_v47  ;;  %v13979_v30 = vrot.slane %v11323_v63, %v13814_v42  ;;  %vm13984_vm0 = vmmov %vm13982_vm8 }
 0x38d   : > { %v7824_v29 = vpack.c.bf16 %v4473_v54, %v12575_v15  ;;  %v13980_v3 = vrot.slane %v11251_v13, %v13781_v5  ;;  %v13981_v11 = vrot.slane %v11251_v13, %v13831_v47  ;;  %v4070_v15 = vsel %vm13982_vm8, %v13925_v24, %v4069_v0  ;;  %v13990_v54 = vld [vmem:[#allocation74_spill] sm:$0xff] }
 0x38e   : > { %v3899_v27 = vmul.f32 %v13978_v56, %v3844_v17  ;;  %v3900_v33 = vmul.f32 %v13979_v30, %v3843_v44  ;;  %v7896_v18 = vpack.c.bf16 %v6333_v52, %v6332_v59  ;;  %4506 = vst [vmem:[#allocation3 + $0x120] sm:$0x33] %v7821_v32  ;;  %v4077_v10 = vsel %vm13984_vm0, %v4069_v0, %v13983_v19  ;;  %v13991_v59 = vld [vmem:[#allocation36_spill] sm:$0xff]  ;;  %v5641_v52 = vpop.permute.xlu0 %5640 }
 0x38f   : > { %v5878_v36 = vmul.f32 %v13980_v3, %v3844_v17  ;;  %v5879_v51 = vmul.f32 %v13981_v11, %v3843_v44  ;;  %4509 = vst [vmem:[#allocation3 + $0x60] sm:$0x33] %v7824_v29  ;;  %v13985_v22 = vrot.slane %v11156_v26, %v13812_v39  ;;  %v13986_v24 = vrot.slane %v11156_v26, %v13667_v41  ;;  %v13992_v44 = vld [vmem:[#allocation67_spill] sm:$0xff]  ;;  %v6570_v29 = vld [vmem:[#allocation3 + $0x80] sm:$0xff]  ;;  %v3725_v56 = vpop.permute.xlu1 %3724 }
 0x390   : > { %v7803_v61 = vpack.c.bf16 %v3899_v27, %v12512_v31  ;;  %v7804_v63 = vpack.c.bf16 %v12557_v57, %v3900_v33  ;;  %6369 = vst [vmem:[#allocation3 + $0x170] sm:$0x33] %v7896_v18  ;;  %v13987_v31 = vrot.slane %v13751_v16, %v13814_v42  ;;  %v13988_v57 = vrot.slane %v13751_v16, %v13812_v39  ;;  %v13995_v33 = vld [vmem:[#allocation28_spill] sm:$0xff] }
 0x391   : > { %v4129_v13 = vmul.f32 %v13985_v22, %v4070_v15  ;;  %v7875_v40 = vpack.c.bf16 %v5879_v51, %v5878_v36  ;;  %v4122_v35 = vmul.f32 %v13986_v24, %v4077_v10  ;;  %v5643_v2 = vsel %vm2259_vm9, %v5637_v46, %v13989_v43  ;;  %v6566_v19 = vld [vmem:[#allocation3 + $0xe0] sm:$0xff] }
 0x392   : > { %v6060_v50 = vmul.f32 %v13987_v31, %v4070_v15  ;;  %v6061_v20 = vmul.f32 %v13988_v57, %v4077_v10  ;;  %v3932_v0 = vrot.slane %v7803_v61, 6  ;;  %v3933_v58 = vrot.slane %v7804_v63, 6  ;;  %v14001_v31 = vld [vmem:[#allocation58_spill] sm:$0xff] }
 0x393   : > { %v7812_v48 = vpack.c.bf16 %v4129_v13, %v12623_v60  ;;  %v5912_v53 = vrot.slane %v7875_v40, 6  ;;  %v7809_v26 = vpack.c.bf16 %v13990_v54, %v4122_v35  ;;  %v5644_v55 = vsel %vm2259_vm9, %v13991_v59, %v5637_v46  ;;  %v14000_v40 = vld [vmem:[#allocation30_spill] sm:$0xff]  ;;  %v5525_v57 = vpop.permute.xlu1 %5524 }
 0x394   : > { %v7884_v28 = vpack.c.bf16 %v6061_v20, %v6060_v50  ;;  %3940 = vst [vmem:[#allocation3 + $0xd8] sm:$0xcc] %v3932_v0  ;;  %3941 = vst [vmem:[#allocation3 + $0x18] sm:$0xcc] %v3933_v58  ;;  %v13993_v8 = vrot.slane %v13992_v44, %v13781_v5  ;;  %v13994_v17 = vrot.slane %v13992_v44, %v13831_v47 }
 0x395   : > { %v4161_v16 = vrot.slane %v7812_v48, 6  ;;  %v3958_v32 = vsel %vm538_vm5, %v12263_v6, %v3957_v9  ;;  %5920 = vst [vmem:[#allocation3 + $0xd0] sm:$0xcc] %v5912_v53  ;;  %v4158_v27 = vrot.slane %v7809_v26, 6  ;;  %v3965_v18 = vsel %vm538_vm5, %v3957_v9, %v13995_v33  ;;  %v14004_v48 = vld [vmem:[#allocation12_spill] sm:$0xff] }
 0x396   : > { %v5698_v60 = vmul.f32 %v13993_v8, %v5644_v55  ;;  %v5699_v1 = vmul.f32 %v13994_v17, %v5643_v2  ;;  %v6093_v30 = vrot.slane %v7884_v28, 6  ;;  %v13996_v3 = vrot.slane %v11179_v21, %v13812_v39  ;;  %v14005_v2 = vld [vmem:[#allocation53_spill] sm:$0xff]  ;;  %v14008_v55 = vld [vmem:[#allocation31_spill] sm:$0xff] }
 0x397   : > { %4169 = vst [vmem:[#allocation3 + $0x48] sm:$0xcc] %v4161_v16  ;;  %v13997_v51 = vrot.slane %v11179_v21, %v13667_v41  ;;  %v13998_v6 = vrot.slane %v13757_v4, %v13814_v42  ;;  %v13999_v61 = vrot.slane %v13757_v4, %v13812_v39  ;;  %4166 = vst [vmem:[#allocation3 + $0x50] sm:$0xcc] %v4158_v27  ;;  %v5409_v21 = vpop.permute.xlu0 %5408  ;;  %vm14039_vm5 = vcmask 883712  }
 0x398   : > { %v4017_v36 = vmul.f32 %v13996_v3, %v3958_v32  ;;  %v7867_v11 = vpack.c.bf16 %v5699_v1, %v5698_v60  ;;  %6101 = vst [vmem:[#allocation3 + $0x20] sm:$0xcc] %v6093_v30  ;;  %v7632_v22 = vcombine.low %v6566_v19, %v6570_v29  ;;  %v7633_v13 = vcombine.high %v6566_v19, %v6570_v29  ;;  %v8305_v50 = vld [vmem:[#allocation3 + $0x174] ss:$40 sps:$4 sm:$0x3f]   ;;  %v14011_v1 = vld [vmem:[#allocation25_spill] sm:$0xff] }
 0x399   : > { %v4010_v15 = vmul.f32 %v13997_v51, %v3965_v18  ;;  %v5972_v46 = vmul.f32 %v13998_v6, %v3958_v32  ;;  %v5973_v63 = vmul.f32 %v13999_v61, %v3965_v18  ;;  %v5642_v41 = vsel %vm2259_vm9, %v13989_v43, %v5641_v52  ;;  %v8307_v60 = vld [vmem:[#allocation3 + $0x170] ss:$40 sps:$4 sm:$0x3f]   ;;  %7678 = vmatprep.subr.msk.bf16.mxu1 %vm3516_vm7, %v8305_v50  ;;  %v6562_v30 = vld [vmem:[#allocation3 + $0x120] sm:$0xff]  ;;  %v5529_v6 = vpop.permute.xlu1 %5528 }
 0x39a   : > { %v7808_v10 = vpack.c.bf16 %v4017_v36, %v12638_v38  ;;  %v5732_v9 = vrot.slane %v7867_v11, 6  ;;  %v5649_v4 = vsel %vm2259_vm9, %v5641_v52, %v14001_v31  ;;  %6921 = vmatprep.subr.bf16.mxu0 %v7633_v13  ;;  %v14002_v38 = vrot.slane %v13992_v44, %v13814_v42  ;;  %v14012_v29 = vld [vmem:[#allocation59_spill] sm:$0xff]  ;;  %v14014_v11 = vld [vmem:[#allocation49_spill] sm:$0xff]  ;;  %v14017_v19 = vld [vmem:[#allocation32_spill] sm:$0xff] }
 0x39b   : > { %v7805_v24 = vpack.c.bf16 %v14000_v40, %v4010_v15  ;;  %v7880_v35 = vpack.c.bf16 %v5973_v63, %v5972_v46  ;;  %v14003_v0 = vrot.slane %v13992_v44, %v13812_v39  ;;  %v3731_v43 = vsel %vm307_vm10, %v3725_v56, %v14004_v48  ;;  %6922 = vmatpush1.bf16.msra.mxu0 %v7632_v22  ;;  %v5413_v33 = vpop.permute.xlu0 %5412  ;;  %v14018_v22 = vld [vmem:[#allocation71_spill] sm:$0xff] }
 0x39c   : > { %4053 = vst [vmem:[#allocation3 + $0x48] sm:$0x33] %v7808_v10  ;;  %v5700_v20 = vmul.f32 %v14002_v38, %v5642_v41  ;;  %v3732_v53 = vsel %vm307_vm10, %v14005_v2, %v3725_v56  ;;  %5740 = vst [vmem:[#allocation3 + $0x148] sm:$0xcc] %v5732_v9  ;;  %v14006_v54 = vrot.slane %v11341_v25, %v13831_v47  ;;  %v14024_v2 = vld [vmem:[#allocation16_spill] sm:$0xff] }
 0x39d   : > { %v5701_v58 = vmul.f32 %v14003_v0, %v5649_v4  ;;  %4050 = vst [vmem:[#allocation3 + $0x50] sm:$0x33] %v7805_v24  ;;  %6009 = vst [vmem:[#allocation3 + $0x20] sm:$0x33] %v7880_v35  ;;  %v14007_v28 = vrot.slane %v11341_v25, %v13814_v42  ;;  %v14009_v52 = vrot.slane %v14008_v55, %v13781_v5  ;;  %v14013_v25 = vld [vmem:[#allocation63_spill] sm:$0xff]  ;;  %v6906_v24 = vsel %vm3516_vm7, %v8307_v60, 0 }
 0x39e   : > { %v3787_v26 = vmul.f32 %v14006_v54, %v3732_v53  ;;  %v14010_v44 = vrot.slane %v14008_v55, %v13831_v47  ;;  %v5415_v32 = vsel %vm2027_vm12, %v5409_v21, %v14011_v1  ;;  %v5416_v56 = vsel %vm2027_vm12, %v14012_v29, %v5409_v21  ;;  %7037 = vmatpush1.bf16.msra.mxu1 %v6906_v24  ;;  %v14021_v4 = vld [vmem:[#allocation64_spill] sm:$0xff]  ;;  %v5095_v54 = vpop.permute.xlu1 %5094 }
 0x39f   : > { %v3788_v59 = vmul.f32 %v14007_v28, %v3731_v43  ;;  %v5790_v16 = vmul.f32 %v14009_v52, %v3732_v53  ;;  %v7868_v17 = vpack.c.bf16 %v5701_v58, %v5700_v20  ;;  %v5531_v27 = vsel %vm2145_vm11, %v5525_v57, %v14013_v25  ;;  %v5093_v38 = vpop.permute.xlu0 %5092 }
 0x3a0   : > { %v5791_v8 = vmul.f32 %v14010_v44, %v3731_v43  ;;  %v7799_v18 = vpack.c.bf16 %v3787_v26, %v12518_v12  ;;  %v14015_v51 = vrot.slane %v14014_v11, %v13781_v5  ;;  %v14016_v61 = vrot.slane %v14014_v11, %v13831_v47 }
 0x3a1   : > { %v7800_v3 = vpack.c.bf16 %v12551_v23, %v3788_v59  ;;  %v5733_v46 = vrot.slane %v7868_v17, 6  ;;  %v5532_v10 = vsel %vm2145_vm11, %v14017_v19, %v5525_v57  ;;  %v14019_v12 = vrot.slane %v14018_v22, %v13831_v47  ;;  %v6558_v23 = vld [vmem:[#allocation3 + $0x180] sm:$0xff] }
 0x3a2   : > { %v7871_v36 = vpack.c.bf16 %v5791_v8, %v5790_v16  ;;  %v5470_v15 = vmul.f32 %v14015_v51, %v5416_v56  ;;  %v5471_v63 = vmul.f32 %v14016_v61, %v5415_v32  ;;  %3824 = vst [vmem:[#allocation3 + $0xd8] sm:$0x33] %v7799_v18  ;;  %v14020_v41 = vrot.slane %v14018_v22, %v13781_v5  ;;  %v14028_v32 = vld [vmem:[#allocation37_spill] sm:$0xff] }
 0x3a3   : > { %v5587_v13 = vmul.f32 %v14019_v12, %v5531_v27  ;;  %3825 = vst [vmem:[#allocation3 + $0x18] sm:$0x33] %v7800_v3  ;;  %v7624_v9 = vcombine.low %v6558_v23, %v6562_v30  ;;  %v7625_v40 = vcombine.high %v6558_v23, %v6562_v30  ;;  %5741 = vst [vmem:[#allocation3 + $0x8] sm:$0xcc] %v5733_v46  ;;  %v14031_v46 = vld [vmem:[#allocation66_spill] sm:$0xff] }
 0x3a4   : > { %5828 = vst [vmem:[#allocation3 + $0xd0] sm:$0x33] %v7871_v36  ;;  %v5586_v21 = vmul.f32 %v14020_v41, %v5532_v10  ;;  %v7859_v35 = vpack.c.bf16 %v5471_v63, %v5470_v15  ;;  %v5414_v31 = vsel %vm2027_vm12, %v14011_v1, %v5413_v33  ;;  %v5421_v50 = vsel %vm2027_vm12, %v5413_v33, %v14021_v4  ;;  %v8308_v44 = vld [vmem:[#allocation3 + $0x20] ss:$312 sps:$4 sm:$0xff]   ;;  %v8310_v8 = vld [vmem:[#allocation3 + $0x24] ss:$312 sps:$4 sm:$0xff]   ;;  %v5299_v63 = vpop.permute.xlu1 %5298  ;;  %vm14050_vm12 = vmmov %vm13947_vm4 }
 0x3a5   : > { %v5530_v57 = vsel %vm2145_vm11, %v14013_v25, %v5529_v6  ;;  %6923 = vmatprep.subr.bf16.mxu0 %v7625_v40  ;;  %v14022_v0 = vrot.slane %v14014_v11, %v13814_v42  ;;  %v14023_v48 = vrot.slane %v14014_v11, %v13812_v39  ;;  %v5537_v53 = vsel %vm2145_vm11, %v5529_v6, %v14024_v2  ;;  %v6550_v25 = vld [vmem:[#allocation3 + $0xb0] sm:$0xff]  ;;  %v5297_v11 = vpop.permute.xlu0 %5296 }
 0x3a6   : > { %v7863_v20 = vpack.c.bf16 %v5587_v13, %v5586_v21  ;;  %v5504_v26 = vrot.slane %v7859_v35, 6  ;;  %6924 = vmatpush1.bf16.msra.mxu0 %v7624_v9  ;;  %v14025_v28 = vrot.slane %v14018_v22, %v13814_v42  ;;  %v14026_v55 = vrot.slane %v14018_v22, %v13812_v39  ;;  %v6554_v27 = vld [vmem:[#allocation3 + $0x50] sm:$0xff]  ;;  %7038 = vmatprep.subr.bf16.mxu1 %v8310_v8  ;;  %v14032_v22 = vld [vmem:[#allocation13_spill] sm:$0xff]  ;;  %v6596_v9 = vld [vmem:[#allocation3 + $0xa0] sm:$0xff] }
 0x3a7   : > { %v5472_v58 = vmul.f32 %v14022_v0, %v5414_v31  ;;  %v5473_v43 = vmul.f32 %v14023_v48, %v5421_v50  ;;  %v5100_v16 = vsel %vm1698_vm13, %v12472_v14, %v5093_v38  ;;  %v14027_v17 = vrot.slane %v11615_v7, %v13831_v47  ;;  %7039 = vmatpush1.bf16.msra.mxu1 %v8308_v44  ;;  %v8311_v10 = vld [vmem:[#allocation3 + $0x8c] ss:$-88 sps:$4 sm:$0x3f]   ;;  %v8313_v21 = vld [vmem:[#allocation3 + $0x88] ss:$-88 sps:$4 sm:$0x3f]  }
 0x3a8   : > { %v5588_v59 = vmul.f32 %v14025_v28, %v5530_v57  ;;  %v5589_v52 = vmul.f32 %v14026_v55, %v5537_v53  ;;  %5624 = vst [vmem:[#allocation3 + $0x148] sm:$0x33] %v7863_v20  ;;  %v5098_v29 = vsel %vm1698_vm13, %v5095_v54, %v14028_v32  ;;  %v5099_v56 = vsel %vm1698_vm13, %v5093_v38, %v5095_v54  ;;  %v14035_v31 = vld [vmem:[#allocation19_spill] sm:$0xff]  ;;  %v4747_v38 = vpop.permute.xlu1 %4746  ;;  %v6592_v20 = vld [vmem:[#allocation3 + $0x160] sm:$0xff]  ;;  %v14038_v53 = vld [vmem:[#allocation41_spill] sm:$0xff] }
 0x3a9   : > { %v7860_v60 = vpack.c.bf16 %v5473_v43, %v5472_v58  ;;  %v5155_v1 = vmul.f32 %v14027_v17, %v5100_v16  ;;  %5512 = vst [vmem:[#allocation3 + $0x178] sm:$0xcc] %v5504_v26  ;;  %v14029_v14 = vrot.slane %v11615_v7, %v13814_v42  ;;  %v14030_v18 = vrot.slane %v11615_v7, %v13812_v39  ;;  %v5301_v40 = vpop.permute.xlu0 %5300  ;;  %v14036_v50 = vld [vmem:[#allocation79_spill] sm:$0xff]  ;;  %v14040_v28 = vld [vmem:[#allocation40_spill] sm:$0xff]  ;;  %vm14051_vm13 = vmmov %vm13947_vm4 }
 0x3aa   : > { %v7864_v30 = vpack.c.bf16 %v5589_v52, %v5588_v59  ;;  %v7616_v36 = vcombine.low %v6550_v25, %v6554_v27  ;;  %v7617_v6 = vcombine.high %v6550_v25, %v6554_v27  ;;  %v5304_v61 = vsel %vm1913_vm14, %v14031_v46, %v5297_v11  ;;  %v14042_v27 = vld [vmem:[#allocation73_spill] sm:$0xff] }
 0x3ab   : > { %v5156_v33 = vmul.f32 %v14029_v14, %v5099_v56  ;;  %v5157_v3 = vmul.f32 %v14030_v18, %v5098_v29  ;;  %v5505_v51 = vrot.slane %v7860_v60, 6  ;;  %v7847_v15 = vpack.c.bf16 %v5155_v1, %v12609_v45 }
 0x3ac   : > { %5625 = vst [vmem:[#allocation3 + $0x8] sm:$0x33] %v7864_v30  ;;  %v14033_v12 = vrot.slane %v14032_v22, %v13781_v5  ;;  %v5303_v13 = vsel %vm1913_vm14, %v5297_v11, %v5299_v63  ;;  %v5345_v45 = vrot.slane %v14032_v22, %v13812_v39  ;;  %6925 = vmatprep.subr.bf16.mxu0 %v7617_v6  ;;  %v6900_v54 = vsel %vm3516_vm7, %v8313_v21, 0  ;;  %v4751_v32 = vpop.permute.xlu1 %4750  ;;  %v14043_v6 = vld [vmem:[#allocation77_spill] sm:$0xff] }
 0x3ad   : > { %v7848_v19 = vpack.c.bf16 %v5157_v3, %v5156_v33  ;;  %5513 = vst [vmem:[#allocation3 + $0xc8] sm:$0xcc] %v5505_v51  ;;  %5192 = vst [vmem:[#allocation3 + $0x190] sm:$0x33] %v7847_v15  ;;  %v14034_v23 = vrot.slane %v14032_v22, %v13831_v47  ;;  %6926 = vmatpush1.bf16.msra.mxu0 %v7616_v36  ;;  %v5302_v35 = vsel %vm1913_vm14, %v5299_v63, %v5301_v40  ;;  %v4749_v16 = vpop.permute.xlu0 %4748  ;;  %v14041_v44 = vmov 0  }
 0x3ae   : > { %v5358_v7 = vmul.f32 %v14033_v12, %v5304_v61  ;;  %7676 = vmatprep.subr.msk.bf16.mxu0 %vm3516_vm7, %v8311_v10  ;;  %v5309_v4 = vsel %vm1913_vm14, %v5301_v40, %v14035_v31  ;;  %v4785_v57 = vrot.slane %v14036_v50, %v13781_v5  ;;  %v14037_v0 = vrot.slane %v14032_v22, %v13814_v42  ;;  %v14046_v40 = vld [vmem:[#allocation35_spill] sm:$0xff]  ;;  %vm14052_vm14 = vmmov %vm13947_vm4 }
 0x3af   : > { %v5359_v41 = vmul.f32 %v14034_v23, %v5303_v13  ;;  %5193 = vst [vmem:[#allocation3 + $0xb8] sm:$0x33] %v7848_v19  ;;  %v5361_v48 = vmul.f32 %v5345_v45, %v5309_v4  ;;  %v4789_v43 = vrot.slane %v14036_v50, %v13831_v47  ;;  %v4793_v2 = vrot.slane %v14036_v50, %v13814_v42  ;;  %v8316_v33 = vld [vmem:[#allocation3 + $0x14c] ss:$-120 sps:$4 sm:$0xff]   ;;  %v8314_v19 = vld [vmem:[#allocation3 + $0x148] ss:$-120 sps:$4 sm:$0xff]  }
 0x3b0   : > { %v5360_v58 = vmul.f32 %v14037_v0, %v5302_v35  ;;  %7673 = vmatmul.mubr.msk.bf16.vlgmr.msra.gmra.mxu0 %vm14039_vm5, %v14038_v53  ;;  %v7661_v26 = vcombine.high %v6592_v20, %v6596_v9  ;;  %v4757_v59 = vsel %vm1348_vm15, %v14040_v28, %v4747_v38  ;;  %v4797_v55 = vrot.slane %v14036_v50, %v13812_v39  ;;  %v4977_v61 = vpop.permute.xlu1 %4976 }
 0x3b1   : > { %v7855_v24 = vpack.c.bf16 %v5359_v41, %v5358_v7  ;;  %6996 = vmatpush1.bf16.msra.mxu0 %v6900_v54  ;;  %7025 = vmatprep.mubr.bf16.mxu0 %v14041_v44  ;;  %v7660_v8 = vcombine.low %v6592_v20, %v6596_v9  ;;  %v4756_v60 = vsel %vm1348_vm15, %v4747_v38, %v4749_v16  ;;  %v4975_v51 = vpop.permute.xlu0 %4974  ;;  %vm14044_vm7 = vcmp.lt.s32.totalorder %v9063_v49, 7  ;;  %v14049_v20 = vld [vmem:[#allocation43_spill] sm:$0xff] }
 0x3b2   : > { %v7856_v52 = vpack.c.bf16 %v5361_v48, %v5360_v58  ;;  %6997 = vmatprep.subr.bf16.mxu0 %v7661_v26  ;;  %v5013_v29 = vrot.slane %v11613_v37, %v13781_v5  ;;  %v4810_v56 = vmul.f32 %v4785_v57, %v4757_v59  ;;  %v4811_v25 = vmul.f32 %v4789_v43, %v4756_v60  ;;  %vm14045_vm9 = vmmov %vm14044_vm7  ;;  %v8329_v49 = vld [vmem:[#allocation3 + $0x118] ss:$-16 sps:$4 sm:$0xff]  }
 0x3b3   : > { %5396 = vst [vmem:[#allocation3 + $0x178] sm:$0x33] %v7855_v24  ;;  %v8317_v17 = vld [vmem:[#allocation3 + $0x8] ss:$408 sps:$4 sm:$0xff]   ;;  %v8319_v1 = vld [vmem:[#allocation3 + $0xc] ss:$408 sps:$4 sm:$0xff]   ;;  %v4754_v30 = vsel %vm1348_vm15, %v4751_v32, %v14042_v27  ;;  %v4755_v14 = vsel %vm1348_vm15, %v4749_v16, %v4751_v32  ;;  %v5017_v36 = vrot.slane %v11613_v37, %v13831_v47  ;;  %v4985_v46 = vsel %vm14044_vm7, %v14043_v6, %v4975_v51  ;;  %vm14047_vm10 = vmmov %vm14044_vm7 }
 0x3b4   : > { %5397 = vst [vmem:[#allocation3 + $0xc8] sm:$0x33] %v7856_v52  ;;  %7040 = vmatprep.subr.bf16.mxu1 %v8319_v1  ;;  %v4812_v18 = vmul.f32 %v4793_v2, %v4755_v14  ;;  %v4813_v3 = vmul.f32 %v4797_v55, %v4754_v30  ;;  %v7835_v11 = vpack.c.bf16 %v4811_v25, %v4810_v56  ;;  %vm14048_vm11 = vmmov %vm14044_vm7  ;;  %v8331_v56 = vld [vmem:[#allocation3 + $0x11c] ss:$-16 sps:$4 sm:$0xff]   ;;  %v8332_v25 = vld [vmem:[#allocation3 + $0x98] ss:$-56 sps:$4 sm:$0xff]  }
 0x3b5   : > { %6998 = vmatpush1.bf16.msra.mxu0 %v7660_v8  ;;  %7041 = vmatpush1.bf16.msra.mxu1 %v8317_v17  ;;  %v5021_v63 = vrot.slane %v11613_v37, %v13814_v42  ;;  %v5038_v22 = vmul.f32 %v5013_v29, %v4985_v46  ;;  %v4984_v12 = vsel %vm14045_vm9, %v4975_v51, %v4977_v61  ;;  %v4979_v41 = vpop.permute.xlu0 %4978  ;;  %vm14053_vm15 = vmmov %vm13947_vm4  ;;  %v8337_v27 = vld [vmem:[#allocation3 + $0xdc] ss:$88 sps:$4 sm:$0xff]   ;;  %v8335_v14 = vld [vmem:[#allocation3 + $0xd8] ss:$88 sps:$4 sm:$0xff]  }
 0x3b6   : > { %6999 = vmatprep.subr.bf16.mxu0 %v8316_v33  ;;  %v7836_v15 = vpack.c.bf16 %v4813_v3, %v4812_v18  ;;  %v4844_v10 = vrot.slane %v7835_v11, 6  ;;  %v5025_v7 = vrot.slane %v11613_v37, %v13812_v39  ;;  %v5039_v23 = vmul.f32 %v5017_v36, %v4984_v12  ;;  %v4863_v37 = vpop.permute.xlu1 %4862  ;;  %v8340_v30 = vld [vmem:[#allocation3 + $0x1c] ss:$48 sps:$4 sm:$0xff]   ;;  %v8338_v33 = vld [vmem:[#allocation3 + $0x18] ss:$48 sps:$4 sm:$0xff]   ;;  %vm14054_vm4 = vmmov %vm14039_vm5 }
 0x3b7   : > { %v4982_v24 = vsel %vm14047_vm10, %v4979_v41, %v14046_v40  ;;  %v4983_v35 = vsel %vm14048_vm11, %v4977_v61, %v4979_v41  ;;  %v4901_v31 = vrot.slane %v11661_v62, %v13781_v5  ;;  %v4873_v0 = vsel %vm14050_vm12, %v14049_v20, %v4863_v37  ;;  %vm14055_vm2 = vmmov %vm14054_vm4  ;;  %v14056_v51 = vld [vmem:[#allocation5_spill] sm:$0xff]  ;;  %v14057_v61 = vld [vmem:[#allocation7_spill] sm:$0xff] }
 0x3b8   : > { %v4845_v45 = vrot.slane %v7836_v15, 6  ;;  %4852 = vst [vmem:[#allocation3 + $0x138] sm:$0xcc] %v4844_v10  ;;  %v7843_v9 = vpack.c.bf16 %v5039_v23, %v5038_v22  ;;  %v5040_v57 = vmul.f32 %v5021_v63, %v4983_v35  ;;  %v5041_v38 = vmul.f32 %v5025_v7, %v4982_v24  ;;  %v14059_v35 = vld [vmem:[#allocation6_spill] sm:$0xff] }
 0x3b9   : > { %7000 = vmatpush1.bf16.msra.mxu0 %v8314_v19  ;;  %v4905_v58 = vrot.slane %v11661_v62, %v13831_v47  ;;  %v4909_v43 = vrot.slane %v11661_v62, %v13814_v42  ;;  %v4913_v5 = vrot.slane %v11661_v62, %v13812_v39  ;;  %v4865_v54 = vpop.permute.xlu0 %4864  ;;  %v4926_v26 = vmul.f32 %v4901_v31, %v4873_v0 }
 0x3ba   : > { %v8322_v13 = vld [vmem:[#allocation3 + $0x194] ss:$-24 sps:$4 sm:$0xff]   ;;  %v8320_v21 = vld [vmem:[#allocation3 + $0x190] ss:$-24 sps:$4 sm:$0xff]   ;;  %4853 = vst [vmem:[#allocation3 + $0x140] sm:$0xcc] %v4845_v45  ;;  %v7844_v2 = vpack.c.bf16 %v5041_v38, %v5040_v57  ;;  %v4872_v28 = vsel %vm14051_vm13, %v4863_v37, %v4865_v54  ;;  %v4867_v59 = vpop.permute.xlu1 %4866 }
 0x3bb   : > { %7001 = vmatprep.subr.bf16.mxu0 %v8322_v13  ;;  %v8323_v4 = vld [vmem:[#allocation3 + $0xb8] ss:$16 sps:$4 sm:$0xff]   ;;  %v8325_v50 = vld [vmem:[#allocation3 + $0xbc] ss:$16 sps:$4 sm:$0xff]   ;;  %v5072_v48 = vrot.slane %v7843_v9, 6  ;;  %v4927_v47 = vmul.f32 %v4905_v58, %v4872_v28  ;;  %v4870_v52 = vsel %vm14052_vm14, %v4867_v59, %v12587_v34  ;;  %v4871_v42 = vsel %vm14053_vm15, %v4865_v54, %v4867_v59 }
 0x3bc   : > { %7042 = vmatprep.subr.bf16.mxu1 %v8325_v50  ;;  %v5073_v55 = vrot.slane %v7844_v2, 6  ;;  %v4928_v62 = vmul.f32 %v4909_v43, %v4871_v42  ;;  %v4929_v39 = vmul.f32 %v4913_v5, %v4870_v52  ;;  %v8334_v34 = vld [vmem:[#allocation3 + $0x9c] ss:$-56 sps:$4 sm:$0xff]   ;;  %v8367_v7 = vmov 1983009808   ;;  %v14062_v59 = vld [vmem:[#allocation9_spill] sm:$0xff] }
 0x3bd   : > { %7002 = vmatpush1.bf16.msra.mxu0 %v8320_v21  ;;  %7043 = vmatpush1.bf16.msra.mxu1 %v8323_v4  ;;  %5080 = vst [vmem:[#allocation3 + $0x1b8] sm:$0xcc] %v5072_v48  ;;  %v7839_v16 = vpack.c.bf16 %v4927_v47, %v4926_v26  ;;  %v6610_v18 = vpop.permute.xlu0 %6609  ;;  %v7118_v13 = vunpack.c.l.s4 %v8367_v7  ;;  %v14058_v21 = vld [vmem:[#allocation4_spill] sm:$0xff]  ;;  %v14060_v4 = vld [vmem:[#allocation11_spill] sm:$0xff] }
 0x3be   : > { %5081 = vst [vmem:[#allocation3 + $0x28] sm:$0xcc] %v5073_v55  ;;  %v7840_v44 = vpack.c.bf16 %v4929_v39, %v4928_v62  ;;  %v14063_v47 = vld [vmem:[#allocation8_spill] sm:$0xff] }
 0x3bf   : > { %4964 = vst [vmem:[#allocation3 + $0x1b8] sm:$0x33] %v7839_v16  ;;  %v6568_v8 = vld [vmem:[#allocation3 + $0x138] sm:$0xff]  ;;  %v7119_v41 = vunpack.c.0.s8 %v7118_v13 }
 0x3c0   : > { %4965 = vst [vmem:[#allocation3 + $0x28] sm:$0x33] %v7840_v44  ;;  %v14064_v44 = vld [vmem:[#allocation17_spill] sm:$0xff] }
 0x3c1   : > { %v7122_v50 = vsub.s32 %v7119_v41, %v14060_v4 }
 0x3c6   : > { %v6572_v60 = vld [vmem:[#allocation3 + $0x1b8] sm:$0xff] }
 0x3c7   : > { %v7636_v17 = vcombine.low %v6568_v8, %v6572_v60  ;;  %v7637_v1 = vcombine.high %v6568_v8, %v6572_v60  ;;  %v8326_v32 = vld [vmem:[#allocation3 + $0x140] ss:$-280 sps:$4 sm:$0xff]   ;;  %v8328_v29 = vld [vmem:[#allocation3 + $0x144] ss:$-280 sps:$4 sm:$0xff]   ;;  %v14065_v60 = vld [vmem:[#allocation10_spill] sm:$0xff] }
 0x3c8   : > { %7044 = vmatprep.subr.bf16.mxu1 %v8328_v29 }
 0x3c9   : > { %7003 = vmatprep.subr.bf16.mxu0 %v7637_v1  ;;  %7045 = vmatpush1.bf16.msra.mxu1 %v8326_v32 }
 0x3ca   : > { %7004 = vmatpush1.bf16.msra.mxu0 %v7636_v17  ;;  %7046 = vmatprep.subr.bf16.mxu1 %v8334_v34 }
 0x3cb   : > { %7005 = vmatprep.subr.bf16.mxu0 %v8331_v56 }
 0x3cd   : > { %7047 = vmatpush1.bf16.msra.mxu1 %v8332_v25 }
 0x3ce   : > { %7006 = vmatpush1.bf16.msra.mxu0 %v8329_v49  ;;  %7048 = vmatprep.subr.bf16.mxu1 %v8340_v30 }
 0x3cf   : > { %7007 = vmatprep.subr.bf16.mxu0 %v8337_v27 }
 0x3d1   : > { %7049 = vmatpush1.bf16.msra.mxu1 %v8338_v33 }
 0x3d2   : > { %7008 = vmatpush1.bf16.msra.mxu0 %v8335_v14 }
 0x3d4   : > { %7679 = vmatmul.mubr.msk.bf16.vlgmr.msra.gmra.mxu1 %vm14055_vm2, %v14038_v53 }
 0x3d5   : > { %7677 = vmatmul.mubr.msk.bf16.vlgmr.msra.gmra.mxu0 %vm14054_vm4, %v14038_v53 }
 0x41a   : > { %v6986_v3 = vpop.f32.mrf.mxu1 }
 0x41b   : > { %v6987_v36 = vadd.f32 %v6986_v3, %v6610_v18 }
 0x41c   : > { %v6988_v11 = vpop.f32.mrf.mxu1 }
 0x41d   : > { %v7093_v15 = vadd.f32 %v6987_v36, %v14056_v51  ;;  %v6989_v6 = vadd.f32 %v6988_v11, %v6610_v18 }
 0x41e   : > { %v6990_v46 = vpop.f32.mrf.mxu1 }
 0x41f   : > { %v7094_v63 = vadd.f32 %v6989_v6, %v14057_v61  ;;  %v7101_v10 = vmax.f32 %v7093_v15, 0.0 }
 0x420   : > { %v6991_v19 = vpop.f32.mrf.mxu1 }
 0x421   : > { %v7102_v22 = vmax.f32 %v7094_v63, 0.0 }
 0x423   : > { %v7681_v12 = vpack.c.bf16 %v7102_v22, %v7101_v10 }
 0x425   : > { %v7130_v0 = vrot.slane %v7681_v12, %v7122_v50 }
 0x470   : > { %v6945_v45 = vpop.f32.mrf.mxu0 }
 0x471   : > { %v6946_v23 = vadd.f32 %v6945_v45, %v6610_v18 }
 0x472   : > { %v6947_v53 = vpop.f32.mrf.mxu0 }
 0x473   : > { %v7091_v9 = vadd.f32 %v6946_v23, %v14058_v21  ;;  %v6948_v40 = vadd.f32 %v6947_v53, %v6610_v18 }
 0x474   : > { %v6949_v24 = vpop.f32.mrf.mxu0 }
 0x475   : > { %v7092_v31 = vadd.f32 %v6948_v40, %v14059_v35  ;;  %v7099_v57 = vmax.f32 %v7091_v9, 0.0 }
 0x476   : > { %v6950_v37 = vpop.f32.mrf.mxu0 }
 0x477   : > { %v7100_v38 = vmax.f32 %v7092_v31, 0.0 }
 0x479   : > { %v7680_v20 = vpack.c.bf16 %v7100_v38, %v7099_v57 }
 0x47b   : > { %v7123_v58 = vrot.slane %v7680_v20, %v7122_v50 }
 0x47d   : > { %v7131_v48 = vcombine.low %v7123_v58, %v7130_v0 }
 0x47f   : > { %7133 = vst [vmem:[%s258_s18] sm:$0xff] %v7131_v48 }
 0x494   : > { %v7068_v5 = vpop.f32.mrf.mxu1 }
 0x495   : > { %v7027_v43 = vpop.f32.mrf.mxu0  ;;  %v7069_v54 = vadd.f32 %v7068_v5, %v6610_v18 }
 0x496   : > { %v7028_v2 = vadd.f32 %v7027_v43, %v6610_v18  ;;  %v7070_v28 = vpop.f32.mrf.mxu1 }
 0x497   : > { %v7029_v26 = vpop.f32.mrf.mxu0  ;;  %v7097_v52 = vadd.f32 %v7069_v54, %v14063_v47  ;;  %v7071_v62 = vadd.f32 %v7070_v28, %v6610_v18 }
 0x498   : > { %v7095_v55 = vadd.f32 %v7028_v2, %v14062_v59  ;;  %v7030_v42 = vadd.f32 %v7029_v26, %v6610_v18  ;;  %v7072_v16 = vpop.f32.mrf.mxu1 }
 0x499   : > { %v7031_v39 = vpop.f32.mrf.mxu0  ;;  %v7098_v17 = vadd.f32 %v7071_v62, %v14065_v60  ;;  %v7105_v56 = vmax.f32 %v7097_v52, 0.0 }
 0x49a   : > { %v7096_v8 = vadd.f32 %v7030_v42, %v14064_v44  ;;  %v7073_v32 = vpop.f32.mrf.mxu1  ;;  %v7103_v29 = vmax.f32 %v7095_v55, 0.0 }
 0x49b   : > { %v7032_v1 = vpop.f32.mrf.mxu0  ;;  %v7106_v49 = vmax.f32 %v7098_v17, 0.0 }
 0x49c   : > { %v7104_v34 = vmax.f32 %v7096_v8, 0.0 }
 0x49d   : > { %v7683_v27 = vpack.c.bf16 %v7106_v49, %v7105_v56 }
 0x49e   : > { %v7682_v25 = vpack.c.bf16 %v7104_v34, %v7103_v29 }
 0x49f   : > { %v7157_v14 = vrot.slane %v7683_v27, %v7122_v50 }
 0x4a0   : > { %v7150_v30 = vrot.slane %v7682_v25, %v7122_v50 }
 0x4a2   : > { %v7158_v33 = vcombine.low %v7150_v30, %v7157_v14 }
 0x4a4   : > { %7684 = vst [vmem:[%s258_s18 + $0x8] sm:$0xff] %v7158_v33 }
 0x4a5 PF: > { %s16_s21 = sadd.s32 1, %s8347_s21  }
 0x4a6   : > { %p13_p4 = scmp.ge.s32.totalorder %s16_s21, 4  }
 0x4a8   :  { %15 = sbr.rel (!%p13_p4) target bundleno = 1 (0x1), region = 102 }

</bundles_post_ra>
